<compile_context>
chip_gen: v7x
topology: tpu7x:2x2x1
jax: 0.10.0
libtpu: 0.0.40
codegen_flags: <defaults>
</compile_context>

<pallas_src>
import functools

import jax
import jax.numpy as jnp
from jax.experimental import pallas as pl
from jax.experimental.pallas import tpu as pltpu

# --- problem configuration (from the PyTorch module) ---
IN_CHANNELS = 3
OUT_CHANNELS = 64
KERNEL_SIZE = (3, 5)     # (KH, KW)
STRIDE = 1
PADDING = (1, 2)         # (pad_h, pad_w)
DILATION = (2, 1)        # (dil_h, dil_w)


def _conv_kernel(x_ref, w_ref, o_ref, *, kh, kw, dh, dw, ph, pw, h_out, w_out):
    # x_ref : (B, Cin, H, W)        raw NCHW input                     (VMEM)
    # w_ref : (B*Cout, B*K)         block-diag weight, K = KH*KW*Cin   (VMEM)
    # o_ref : (B, Cout, Hout*Wout)  flattened NCHW output              (VMEM)
    bsz, cin, h, w = x_ref.shape
    cout = o_ref.shape[1]
    hw = h_out * w_out

    x = x_ref[...].astype(jnp.float32)                       # (B, Cin, H, W)

    # Value-side zero padding: keeps data in vregs, no scratch, no masked
    # partial stores.
    if pw:
        zw = jnp.zeros((bsz, cin, h, pw), jnp.float32)
        x = jnp.concatenate([zw, x, zw], axis=3)              # (B, Cin, H, Wp)
    if ph:
        zh = jnp.zeros((bsz, cin, ph, w + 2 * pw), jnp.float32)
        x = jnp.concatenate([zh, x, zh], axis=2)              # (B, Cin, Hp, Wp)

    # im2col over the whole batch at once: one H-band slice per kernel row
    # (dh = 2), then kw width shifts of that band (dw = 1).
    taps = []
    for i in range(kh):
        band = x[:, :, i * dh:i * dh + h_out, :]              # (B, Cin, Hout, Wp)
        for j in range(kw):
            taps.append(band[:, :, :, j * dw:j * dw + w_out])  # (B,Cin,Hout,Wout)

    # One concat + one flatten:
    #   (B, K, Hout, Wout) -> (B, K, Hout*Wout) -> (B*K, Hout*Wout)
    # Rows ordered (b, i, j, c), columns (h, w) -> matches block-diag weight.
    patches = jnp.concatenate(taps, axis=1)                   # (B, K, Hout, Wout)
    patches = patches.reshape(bsz, kh * kw * cin, hw)         # flatten spatial
    patches = patches.reshape(bsz * kh * kw * cin, hw)        # (B*K, Hout*Wout)

    # Single MXU matmul for the whole batch: (B*Cout, B*K) x (B*K, Hout*Wout).
    out_all = jnp.dot(w_ref[...].astype(jnp.float32), patches,
                      preferred_element_type=jnp.float32)     # (B*Cout, HW)

    # Lane-dense (224-wide), sublane-aligned per-batch stores in NCHW order.
    for b in range(bsz):
        o_ref[b] = out_all[b * cout:(b + 1) * cout, :].astype(o_ref.dtype)


def conv2d_pallas(x, weight, *, stride=STRIDE, padding=PADDING,
                  dilation=DILATION):
    """Matches F.conv2d(x, weight, bias=None, stride, padding, dilation), NCHW."""
    assert stride == 1, "kernel written for stride=1 (as in the module config)"
    bsz, cin, h, w = x.shape
    cout, cin_w, kh, kw = weight.shape
    assert cin == cin_w
    ph, pw = padding
    dh, dw = dilation

    h_out = h + 2 * ph - dh * (kh - 1)
    w_out = w + 2 * pw - dw * (kw - 1)

    # Weight (Cout, Cin, KH, KW) -> (Cout, K), column order (i, j, c) matching
    # the kernel's tap assembly, then block-diagonal (B*Cout, B*K) so the whole
    # batch is a single MXU matmul.  Tiny one-off weight-side prep (<50 KB);
    # the activation path has no wrapper ops at all.
    k = kh * kw * cin
    w2d = jnp.transpose(weight, (0, 2, 3, 1)).reshape(cout, k)
    w_blk = jnp.kron(jnp.eye(bsz, dtype=w2d.dtype), w2d)      # (B*Cout, B*K)

    kernel = functools.partial(_conv_kernel, kh=kh, kw=kw, dh=dh, dw=dw,
                               ph=ph, pw=pw, h_out=h_out, w_out=w_out)

    out_flat = pl.pallas_call(
        kernel,
        out_shape=jax.ShapeDtypeStruct((bsz, cout, h_out * w_out), x.dtype),
        in_specs=[
            pl.BlockSpec(memory_space=pltpu.MemorySpace.VMEM),  # x (full array)
            pl.BlockSpec(memory_space=pltpu.MemorySpace.VMEM),  # w_blk
        ],
        out_specs=pl.BlockSpec(memory_space=pltpu.MemorySpace.VMEM),
    )(x, w_blk)

    # Already in NCHW element order with spatial flattened -> free reshape.
    return out_flat.reshape(bsz, cout, h_out, w_out)


def init_weight(key):
    # Deterministic init mimicking nn.Conv2d default (kaiming uniform, a=sqrt(5)):
    # uniform(-1/sqrt(fan_in), 1/sqrt(fan_in)).
    kh, kw = KERNEL_SIZE
    fan_in = IN_CHANNELS * kh * kw
    bound = 1.0 / jnp.sqrt(jnp.float32(fan_in))
    return jax.random.uniform(key, (OUT_CHANNELS, IN_CHANNELS, kh, kw),
                              dtype=jnp.float32, minval=-bound, maxval=bound)


if __name__ == "__main__":
    key = jax.random.PRNGKey(0)
    kx, kw_key = jax.random.split(key)

    batch, height, width = 2, 16, 16
    x = jax.random.normal(kx, (batch, IN_CHANNELS, height, width),
                          dtype=jnp.float32)
    weight = init_weight(kw_key)

    out = jax.block_until_ready(conv2d_pallas(x, weight))

    # Reference check against XLA's conv (same semantics as F.conv2d).
    ref = jax.lax.conv_general_dilated(
        x, weight,
        window_strides=(STRIDE, STRIDE),
        padding=[(PADDING[0], PADDING[0]), (PADDING[1], PADDING[1])],
        rhs_dilation=DILATION,
        dimension_numbers=("NCHW", "OIHW", "NCHW"),
    )
    assert out.shape == ref.shape, (out.shape, ref.shape)
    assert jnp.allclose(out, ref, atol=1e-4, rtol=1e-4)

    print("KERNEL_OK")
</pallas_src>

<mosaic_0001>
module attributes {stable_mosaic.version = 11 : i64} {
  func.func @_conv_kernel(%arg0: memref<2x3x16x16xf32, #tpu.memory_space<vmem>>, %arg1: memref<128x90xf32, #tpu.memory_space<vmem>>, %arg2: memref<2x64x224xf32, #tpu.memory_space<vmem>>) attributes {dimension_semantics = [], scalar_prefetch = 0 : i64, scratch_operands = 0 : i64, tpu.core_type = #tpu.core_type<tc>} {
    %c0 = arith.constant 0 : index
    %c0_0 = arith.constant 0 : index
    %c0_1 = arith.constant 0 : index
    %c0_2 = arith.constant 0 : index
    %0 = vector.load %arg0[%c0, %c0_0, %c0_1, %c0_2] : memref<2x3x16x16xf32, #tpu.memory_space<vmem>>, vector<2x3x16x16xf32>
    %cst = arith.constant 0.000000e+00 : f32
    %1 = vector.broadcast %cst : f32 to vector<2x3x16x2xf32>
    %2 = tpu.concatenate %1, %0, %1 in 3 : vector<2x3x16x2xf32>, vector<2x3x16x16xf32>, vector<2x3x16x2xf32> -> vector<2x3x16x20xf32>
    %cst_3 = arith.constant 0.000000e+00 : f32
    %3 = vector.broadcast %cst_3 : f32 to vector<2x3x1x20xf32>
    %4 = tpu.concatenate %3, %2, %3 in 2 : vector<2x3x1x20xf32>, vector<2x3x16x20xf32>, vector<2x3x1x20xf32> -> vector<2x3x18x20xf32>
    %5 = vector.extract_strided_slice %4 {offsets = [0, 0, 0, 0], sizes = [2, 3, 14, 20], strides = [1, 1, 1, 1]} : vector<2x3x18x20xf32> to vector<2x3x14x20xf32>
    %6 = vector.extract_strided_slice %5 {offsets = [0, 0, 0, 0], sizes = [2, 3, 14, 16], strides = [1, 1, 1, 1]} : vector<2x3x14x20xf32> to vector<2x3x14x16xf32>
    %7 = vector.extract_strided_slice %5 {offsets = [0, 0, 0, 1], sizes = [2, 3, 14, 16], strides = [1, 1, 1, 1]} : vector<2x3x14x20xf32> to vector<2x3x14x16xf32>
    %8 = vector.extract_strided_slice %5 {offsets = [0, 0, 0, 2], sizes = [2, 3, 14, 16], strides = [1, 1, 1, 1]} : vector<2x3x14x20xf32> to vector<2x3x14x16xf32>
    %9 = vector.extract_strided_slice %5 {offsets = [0, 0, 0, 3], sizes = [2, 3, 14, 16], strides = [1, 1, 1, 1]} : vector<2x3x14x20xf32> to vector<2x3x14x16xf32>
    %10 = vector.extract_strided_slice %5 {offsets = [0, 0, 0, 4], sizes = [2, 3, 14, 16], strides = [1, 1, 1, 1]} : vector<2x3x14x20xf32> to vector<2x3x14x16xf32>
    %11 = vector.extract_strided_slice %4 {offsets = [0, 0, 2, 0], sizes = [2, 3, 14, 20], strides = [1, 1, 1, 1]} : vector<2x3x18x20xf32> to vector<2x3x14x20xf32>
    %12 = vector.extract_strided_slice %11 {offsets = [0, 0, 0, 0], sizes = [2, 3, 14, 16], strides = [1, 1, 1, 1]} : vector<2x3x14x20xf32> to vector<2x3x14x16xf32>
    %13 = vector.extract_strided_slice %11 {offsets = [0, 0, 0, 1], sizes = [2, 3, 14, 16], strides = [1, 1, 1, 1]} : vector<2x3x14x20xf32> to vector<2x3x14x16xf32>
    %14 = vector.extract_strided_slice %11 {offsets = [0, 0, 0, 2], sizes = [2, 3, 14, 16], strides = [1, 1, 1, 1]} : vector<2x3x14x20xf32> to vector<2x3x14x16xf32>
    %15 = vector.extract_strided_slice %11 {offsets = [0, 0, 0, 3], sizes = [2, 3, 14, 16], strides = [1, 1, 1, 1]} : vector<2x3x14x20xf32> to vector<2x3x14x16xf32>
    %16 = vector.extract_strided_slice %11 {offsets = [0, 0, 0, 4], sizes = [2, 3, 14, 16], strides = [1, 1, 1, 1]} : vector<2x3x14x20xf32> to vector<2x3x14x16xf32>
    %17 = vector.extract_strided_slice %4 {offsets = [0, 0, 4, 0], sizes = [2, 3, 14, 20], strides = [1, 1, 1, 1]} : vector<2x3x18x20xf32> to vector<2x3x14x20xf32>
    %18 = vector.extract_strided_slice %17 {offsets = [0, 0, 0, 0], sizes = [2, 3, 14, 16], strides = [1, 1, 1, 1]} : vector<2x3x14x20xf32> to vector<2x3x14x16xf32>
    %19 = vector.extract_strided_slice %17 {offsets = [0, 0, 0, 1], sizes = [2, 3, 14, 16], strides = [1, 1, 1, 1]} : vector<2x3x14x20xf32> to vector<2x3x14x16xf32>
    %20 = vector.extract_strided_slice %17 {offsets = [0, 0, 0, 2], sizes = [2, 3, 14, 16], strides = [1, 1, 1, 1]} : vector<2x3x14x20xf32> to vector<2x3x14x16xf32>
    %21 = vector.extract_strided_slice %17 {offsets = [0, 0, 0, 3], sizes = [2, 3, 14, 16], strides = [1, 1, 1, 1]} : vector<2x3x14x20xf32> to vector<2x3x14x16xf32>
    %22 = vector.extract_strided_slice %17 {offsets = [0, 0, 0, 4], sizes = [2, 3, 14, 16], strides = [1, 1, 1, 1]} : vector<2x3x14x20xf32> to vector<2x3x14x16xf32>
    %23 = tpu.concatenate %6, %7, %8, %9, %10, %12, %13, %14, %15, %16, %18, %19, %20, %21, %22 in 1 : vector<2x3x14x16xf32>, vector<2x3x14x16xf32>, vector<2x3x14x16xf32>, vector<2x3x14x16xf32>, vector<2x3x14x16xf32>, vector<2x3x14x16xf32>, vector<2x3x14x16xf32>, vector<2x3x14x16xf32>, vector<2x3x14x16xf32>, vector<2x3x14x16xf32>, vector<2x3x14x16xf32>, vector<2x3x14x16xf32>, vector<2x3x14x16xf32>, vector<2x3x14x16xf32>, vector<2x3x14x16xf32> -> vector<2x45x14x16xf32>
    %24 = vector.shape_cast %23 : vector<2x45x14x16xf32> to vector<2x45x224xf32>
    %25 = vector.shape_cast %24 : vector<2x45x224xf32> to vector<90x224xf32>
    %c0_4 = arith.constant 0 : index
    %c0_5 = arith.constant 0 : index
    %26 = vector.load %arg1[%c0_4, %c0_5] : memref<128x90xf32, #tpu.memory_space<vmem>>, vector<128x90xf32>
    %cst_6 = arith.constant dense<0.000000e+00> : vector<128x224xf32>
    %27 = tpu.matmul %26, %25, %cst_6 {dimension_numbers = #tpu.dot_dimension_numbers<[1], [0], [0], [1], [0, 0, 1, 1], [], []>} : vector<128x90xf32>, vector<90x224xf32>, vector<128x224xf32> -> vector<128x224xf32>
    %28 = vector.extract_strided_slice %27 {offsets = [0, 0], sizes = [64, 224], strides = [1, 1]} : vector<128x224xf32> to vector<64x224xf32>
    %c0_7 = arith.constant 0 : index
    %c0_8 = arith.constant 0 : index
    %c0_9 = arith.constant 0 : index
    %29 = vector.load %arg2[%c0_7, %c0_8, %c0_9] : memref<2x64x224xf32, #tpu.memory_space<vmem>>, vector<1x64x224xf32>
    %30 = vector.shape_cast %29 : vector<1x64x224xf32> to vector<64x224xf32>
    %31 = vector.shape_cast %28 : vector<64x224xf32> to vector<1x64x224xf32>
    tpu.vector_store %arg2[%c0_7, %c0_8, %c0_9], %31 {strides = array<i32>} : memref<2x64x224xf32, #tpu.memory_space<vmem>>, vector<1x64x224xf32>,
    %32 = vector.extract_strided_slice %27 {offsets = [64, 0], sizes = [64, 224], strides = [1, 1]} : vector<128x224xf32> to vector<64x224xf32>
    %c1 = arith.constant 1 : index
    %c0_10 = arith.constant 0 : index
    %c0_11 = arith.constant 0 : index
    %33 = vector.load %arg2[%c1, %c0_10, %c0_11] : memref<2x64x224xf32, #tpu.memory_space<vmem>>, vector<1x64x224xf32>
    %34 = vector.shape_cast %33 : vector<1x64x224xf32> to vector<64x224xf32>
    %35 = vector.shape_cast %32 : vector<64x224xf32> to vector<1x64x224xf32>
    tpu.vector_store %arg2[%c1, %c0_10, %c0_11], %35 {strides = array<i32>} : memref<2x64x224xf32, #tpu.memory_space<vmem>>, vector<1x64x224xf32>,
    return
  }
}

</mosaic_0001>

<bundles_post_ra>
// kernel: tpu_custom_call.1
= control target key start
LH: loop header
LB: loop body
LE: loop exit
PB: predicated region body
PF: predicated region fallthrough
CT: control target
= control target key end

     0   :  { %s5048_s13 = smov 2   ;;  %s8251_s0 = inlined_call_operand.vmem [shape: f32[2,3,16,16], index: 0, kind: input, shape index: {}]   ;;  %s8252_s1 = inlined_call_operand.vmem [shape: f32[128,90], index: 1, kind: input, shape index: {}]   ;;  %s8253_s2 = inlined_call_operand.hbm [shape: f32[2,64,224], index: 2, kind: output, shape index: {}]  }
   0x1   :  { %v14_v0 = vld [vmem:[%s8251_s0 + $0x10] sm:$0xff]  ;;  %v12_v1 = vld [vmem:[%s8251_s0] sm:$0xff]  ;;  %v15_v2 = vld [vmem:[%s8251_s0 + $0x18] sm:$0xff] }
   0x2   :  { %40 = vrot.lane.b32.xlu1 %v14_v0, %s5048_s13  ;;  %36 = vrot.lane.b32.xlu0 %v12_v1, %s5048_s13  ;;  %v13_v3 = vld [vmem:[%s8251_s0 + $0x8] sm:$0xff] }
   0x3   :  { %7 = vsyncpa [#allocation3], 0  ;;  %v17_v4 = vld [vmem:[%s8251_s0 + $0x28] sm:$0xff]  ;;  %v16_v5 = vld [vmem:[%s8251_s0 + $0x20] sm:$0xff]  ;;  %vm72_vm0 = vcmask 15360   ;;  %vm85_vm1 = vcmask 146432  }
   0x4   :  { %v19_v6 = vld [vmem:[%s8251_s0 + $0x38] sm:$0xff]  ;;  %v18_v7 = vld [vmem:[%s8251_s0 + $0x30] sm:$0xff]  ;;  %v21_v8 = vld [vmem:[%s8251_s0 + $0x48] sm:$0xff]  ;;  %vm110_vm2 = vcmask 1040384   ;;  %s5050_s6 = smov 126   ;;  %vm490_vm3 = vcmask 1043456  }
   0x5   :  { %v20_v9 = vld [vmem:[%s8251_s0 + $0x40] sm:$0xff]  ;;  %v23_v10 = vld [vmem:[%s8251_s0 + $0x58] sm:$0xff]  ;;  %v22_v11 = vld [vmem:[%s8251_s0 + $0x50] sm:$0xff]  ;;  %s5049_s0 = smov 127   ;;  %s5051_s7 = smov 125   ;;  %vm309_vm4 = vcmask 1045504  }
   0x6   :  { %42 = vrot.lane.b32.xlu1 %v15_v2, %s5048_s13  ;;  %38 = vrot.lane.b32.xlu0 %v13_v3, %s5048_s13  ;;  %s5052_s8 = smov 124   ;;  %s5056_s9 = smov 16   ;;  %vm4156_vm5 = vcmask 130048   ;;  %vm4169_vm6 = vcmask 261120   ;;  %vm4182_vm7 = vcmask 392192   ;;  %vm4195_vm8 = vcmask 523264  }
   0x7   :  { %s5057_s10 = smov 32   ;;  %s5058_s11 = smov 48   ;;  %vm4208_vm9 = vcmask 654336   ;;  %vm4221_vm10 = vcmask 785408   ;;  %vm4234_vm11 = vcmask 916480   ;;  %vm4372_vm12 = vcmask 1041408  }
   0x8   :  { %s5059_s12 = smov 64   ;;  %s5061_s14 = smov 96   ;;  %vm5063_vm13 = vmmov 1   ;;  %vm4323_vm15 = vcmask 736256  }
   0x9   :  { %s5062_s15 = smov 112   ;;  %vm4629_vm14 = vmpackc.low %vm4372_vm12, %vm5063_vm13 }
   0xa   :  { %46 = vrot.lane.b32.xlu1 %v17_v4, %s5048_s13  ;;  %44 = vrot.lane.b32.xlu0 %v16_v5, %s5048_s13 }
   0xe   :  { %50 = vrot.lane.b32.xlu1 %v19_v6, %s5048_s13  ;;  %48 = vrot.lane.b32.xlu0 %v18_v7, %s5048_s13 }
  0x12   :  { %54 = vrot.lane.b32.xlu1 %v21_v8, %s5048_s13  ;;  %52 = vrot.lane.b32.xlu0 %v20_v9, %s5048_s13 }
  0x16   :  { %58 = vrot.lane.b32.xlu1 %v23_v10, %s5048_s13  ;;  %56 = vrot.lane.b32.xlu0 %v22_v11, %s5048_s13  ;;  %s5060_s13 = smov 80  }
  0x74   :  { %v41_v12 = vpop.permute.xlu1 %40  ;;  %v37_v13 = vpop.permute.xlu0 %36 }
  0x75   :  { %v75_v14 = vsel %vm72_vm0, 0.0, %v41_v12  ;;  %v73_v15 = vsel %vm72_vm0, 0.0, %v37_v13 }
  0x76   :  { %v88_v16 = vsel %vm85_vm1, %v75_v14, 0.0  ;;  %v86_v17 = vsel %vm85_vm1, %v73_v15, 0.0 }
  0x77   :  { %v114_v18 = vrot.slane %v88_v16, 7  ;;  %v111_v19 = vrot.slane %v86_v17, 7 }
  0x78   :  { %v43_v20 = vpop.permute.xlu1 %42  ;;  %v39_v21 = vpop.permute.xlu0 %38 }
  0x79   :  { %v5122_v22 = vsel %vm110_vm2, 0.0, %v111_v19  ;;  %v76_v23 = vsel %vm72_vm0, 0.0, %v43_v20  ;;  %v74_v24 = vsel %vm72_vm0, 0.0, %v39_v21  ;;  %v5131_v27 = vsel %vm110_vm2, 0.0, %v114_v18 }
  0x7a   :  { %v89_v25 = vsel %vm85_vm1, %v76_v23, 0.0  ;;  %v87_v26 = vsel %vm85_vm1, %v74_v24, 0.0  ;;  %165 = vrot.lane.b32.xlu0 %v5122_v22, %s5049_s0  ;;  %v313_v21 = vrot.slane %v5131_v27, 2 }
  0x7b   :  { %v115_v28 = vrot.slane %v89_v25, 7  ;;  %v112_v29 = vrot.slane %v87_v26, 7 }
  0x7c   :  { %v47_v30 = vpop.permute.xlu1 %46  ;;  %v45_v31 = vpop.permute.xlu0 %44 }
  0x7d   :  { %v5134_v32 = vsel %vm110_vm2, %v115_v28, 0.0  ;;  %v5137_v33 = vsel %vm110_vm2, %v111_v19, %v112_v29  ;;  %v5140_v34 = vsel %vm110_vm2, %v112_v29, 0.0  ;;  %v78_v35 = vsel %vm72_vm0, 0.0, %v47_v30 }
  0x7e   :  { %169 = vrot.lane.b32.xlu0 %v5131_v27, %s5049_s0  ;;  %167 = vrot.lane.b32.xlu1 %v5137_v33, %s5049_s0  ;;  %v77_v36 = vsel %vm72_vm0, 0.0, %v45_v31  ;;  %v5149_v37 = vsel %vm110_vm2, %v114_v18, %v115_v28  ;;  %v91_v38 = vsel %vm85_vm1, %v78_v35, 0.0  ;;  %v5292_v17 = vrot.slane %v5137_v33, 2 }
  0x7f   :  { %v90_v39 = vsel %vm85_vm1, %v77_v36, 0.0  ;;  %v118_v42 = vrot.slane %v91_v38, 7  ;;  %v310_v18 = vrot.slane %v5122_v22, 2  ;;  %v5300_v19 = vrot.slane %v5149_v37, 2 }
  0x80   :  { %v51_v40 = vpop.permute.xlu1 %50  ;;  %v49_v41 = vpop.permute.xlu0 %48  ;;  %v117_v43 = vrot.slane %v90_v39, 7  ;;  %8551 = vst [vmem:[#allocation8_spill] sm:$0xff] %v5292_v17 }
  0x81   :  { %v80_v44 = vsel %vm72_vm0, 0.0, %v51_v40  ;;  %v79_v45 = vsel %vm72_vm0, 0.0, %v49_v41  ;;  %v5160_v48 = vsel %vm110_vm2, %v118_v42, 0.0  ;;  %8552 = vst [vmem:[#allocation9_spill] sm:$0xff] %v5300_v19  ;;  %v5304_v20 = vsel %vm309_vm4, %v310_v18, %v5292_v17 }
  0x82   :  { %v93_v46 = vsel %vm85_vm1, %v80_v44, 0.0  ;;  %v92_v47 = vsel %vm85_vm1, %v79_v45, 0.0  ;;  %171 = vrot.lane.b32.xlu1 %v5149_v37, %s5049_s0  ;;  %v5163_v49 = vsel %vm110_vm2, 0.0, %v117_v43  ;;  %v5168_v54 = vsel %vm110_vm2, %v117_v43, %v118_v42  ;;  %8553 = vst [vmem:[#allocation10_spill] sm:$0xff] %v5304_v20 }
  0x83   :  { %v121_v50 = vrot.slane %v93_v46, 7  ;;  %v120_v51 = vrot.slane %v92_v47, 7  ;;  %173 = vrot.lane.b32.xlu0 %v5163_v49, %s5049_s0  ;;  %v5312_v23 = vrot.slane %v5168_v54, 2  ;;  %v5316_v24 = vsel %vm309_vm4, %v313_v21, %v5300_v19 }
  0x84   :  { %v55_v52 = vpop.permute.xlu1 %54  ;;  %v53_v53 = vpop.permute.xlu0 %52  ;;  %8555 = vst [vmem:[#allocation12_spill] sm:$0xff] %v5316_v24  ;;  %v316_v25 = vrot.slane %v5163_v49, 2 }
  0x85   :  { %v5171_v55 = vsel %vm110_vm2, %v121_v50, 0.0  ;;  %v82_v56 = vsel %vm72_vm0, 0.0, %v55_v52  ;;  %v81_v57 = vsel %vm72_vm0, 0.0, %v53_v53  ;;  %v5176_v58 = vsel %vm110_vm2, 0.0, %v120_v51  ;;  %8554 = vst [vmem:[#allocation11_spill] sm:$0xff] %v5312_v23 }
  0x86   :  { %v95_v59 = vsel %vm85_vm1, %v82_v56, 0.0  ;;  %175 = vrot.lane.b32.xlu1 %v5168_v54, %s5049_s0  ;;  %v5182_v60 = vsel %vm110_vm2, %v120_v51, %v121_v50  ;;  %v94_v62 = vsel %vm85_vm1, %v81_v57, 0.0  ;;  %v5328_v28 = vsel %vm309_vm4, %v316_v25, %v5312_v23 }
  0x87   :  { %v124_v61 = vrot.slane %v95_v59, 7  ;;  %v123_v63 = vrot.slane %v94_v62, 7  ;;  %177 = vrot.lane.b32.xlu0 %v5176_v58, %s5049_s0  ;;  %v5324_v26 = vrot.slane %v5182_v60, 2  ;;  %8556 = vst [vmem:[#allocation13_spill] sm:$0xff] %v5328_v28  ;;  %v319_v29 = vrot.slane %v5176_v58, 2 }
  0x88   :  { %v59_v0 = vpop.permute.xlu1 %58  ;;  %v57_v1 = vpop.permute.xlu0 %56  ;;  %v5053_v56 = vmov 1983009808   ;;  %v682_v59 = vlaneseq }
  0x89   :  { %v5188_v2 = vsel %vm110_vm2, %v124_v61, 0.0  ;;  %v84_v3 = vsel %vm72_vm0, 0.0, %v59_v0  ;;  %v83_v4 = vsel %vm72_vm0, 0.0, %v57_v1  ;;  %v5193_v5 = vsel %vm110_vm2, 0.0, %v123_v63 }
  0x8a   :  { %8548 = vst [vmem:[#allocation5_spill] sm:$0xff] %v5193_v5  ;;  %v97_v6 = vsel %vm85_vm1, %v84_v3, 0.0  ;;  %179 = vrot.lane.b32.xlu1 %v5182_v60, %s5049_s0  ;;  %v5199_v7 = vsel %vm110_vm2, %v123_v63, %v124_v61  ;;  %v96_v9 = vsel %vm85_vm1, %v83_v4, 0.0  ;;  %v5340_v31 = vsel %vm309_vm4, %v319_v29, %v5324_v26 }
  0x8b   :  { %8549 = vst [vmem:[#allocation6_spill] sm:$0xff] %v5199_v7  ;;  %v127_v8 = vrot.slane %v97_v6, 7  ;;  %v126_v10 = vrot.slane %v96_v9, 7  ;;  %181 = vrot.lane.b32.xlu0 %v5193_v5, %s5049_s0  ;;  %v5336_v30 = vrot.slane %v5199_v7, 2  ;;  %v322_v35 = vrot.slane %v5193_v5, 2 }
  0x8c   :  { %v680_v57 = vunpack.c.l.s4 %v5053_v56  ;;  %v683_v0 = vshrl.u32 %v682_v59, 7 }
  0x8d   :  { %v158_v11 = vsel %vm110_vm2, %v127_v8, 0.0  ;;  %v5206_v12 = vsel %vm110_vm2, 0.0, %v126_v10  ;;  %v5213_v13 = vsel %vm110_vm2, %v126_v10, %v127_v8  ;;  %8557 = vst [vmem:[#allocation14_spill] sm:$0xff] %v5336_v30  ;;  %v5352_v38 = vsel %vm309_vm4, %v322_v35, %v5336_v30 }
  0x8e   :  { %183 = vrot.lane.b32.xlu1 %v5199_v7, %s5049_s0  ;;  %v519_v14 = vrot.slane %v158_v11, 4  ;;  %v8254_v15 = vrot.slane %v5213_v13, 4  ;;  %v5348_v36 = vrot.slane %v5213_v13, 2  ;;  %8558 = vst [vmem:[#allocation15_spill] sm:$0xff] %v5352_v38  ;;  %v325_v39 = vrot.slane %v5206_v12, 2 }
  0x8f   :  { %185 = vrot.lane.b32.xlu0 %v5206_v12, %s5049_s0  ;;  %v681_v63 = vunpack.c.0.s8 %v680_v57  ;;  %v5054_v8 = vmov 1934713408   ;;  %v677_v35 = vcombine.low %v5122_v22, %v5163_v49 }
  0x90   :  { %v5225_v16 = vsel %vm490_vm3, %v8254_v15, %v519_v14  ;;  %v5363_v41 = vsel %vm309_vm4, %v325_v39, %v5348_v36  ;;  %v744_v9 = vunpack.c.l.s4 %v5054_v8  ;;  %v2239_v39 = vcombine.low %v5137_v33, %v5168_v54 }
  0x91   :  { %8550 = vst [vmem:[#allocation7_spill] sm:$0xff] %v5225_v16  ;;  %v5423_v6 = vsub.s32 %v681_v63, %v683_v0 }
  0x92   :  { %187 = vrot.lane.b32.xlu1 %v5213_v13, %s5049_s0  ;;  %v745_v57 = vunpack.c.0.s8 %v744_v9 }
  0x93   :  { %201 = vrot.lane.b32.xlu0 %v5122_v22, %s5050_s6 }
  0x96   :  { %203 = vrot.lane.b32.xlu1 %v5137_v33, %s5050_s6 }
  0x97   :  { %205 = vrot.lane.b32.xlu0 %v5131_v27, %s5050_s6 }
  0x9a   :  { %207 = vrot.lane.b32.xlu1 %v5149_v37, %s5050_s6 }
  0x9b   :  { %209 = vrot.lane.b32.xlu0 %v5163_v49, %s5050_s6 }
  0x9e   :  { %211 = vrot.lane.b32.xlu1 %v5168_v54, %s5050_s6 }
  0x9f   :  { %213 = vrot.lane.b32.xlu0 %v5176_v58, %s5050_s6 }
  0xa2   :  { %215 = vrot.lane.b32.xlu1 %v5182_v60, %s5050_s6 }
  0xa3   :  { %217 = vrot.lane.b32.xlu0 %v5193_v5, %s5050_s6 }
  0xa6   :  { %219 = vrot.lane.b32.xlu1 %v5199_v7, %s5050_s6 }
  0xa7   :  { %221 = vrot.lane.b32.xlu0 %v5206_v12, %s5050_s6 }
  0xaa   :  { %223 = vrot.lane.b32.xlu1 %v5213_v13, %s5050_s6 }
  0xab   :  { %237 = vrot.lane.b32.xlu0 %v5122_v22, %s5051_s7 }
  0xae   :  { %239 = vrot.lane.b32.xlu1 %v5137_v33, %s5051_s7 }
  0xaf   :  { %241 = vrot.lane.b32.xlu0 %v5131_v27, %s5051_s7 }
  0xb2   :  { %243 = vrot.lane.b32.xlu1 %v5149_v37, %s5051_s7 }
  0xb3   :  { %245 = vrot.lane.b32.xlu0 %v5163_v49, %s5051_s7 }
  0xb6   :  { %247 = vrot.lane.b32.xlu1 %v5168_v54, %s5051_s7 }
  0xb7   :  { %249 = vrot.lane.b32.xlu0 %v5176_v58, %s5051_s7 }
  0xba   :  { %251 = vrot.lane.b32.xlu1 %v5182_v60, %s5051_s7 }
  0xbb   :  { %253 = vrot.lane.b32.xlu0 %v5193_v5, %s5051_s7 }
  0xbe   :  { %255 = vrot.lane.b32.xlu1 %v5199_v7, %s5051_s7 }
  0xbf   :  { %257 = vrot.lane.b32.xlu0 %v5206_v12, %s5051_s7 }
  0xc2   :  { %259 = vrot.lane.b32.xlu1 %v5213_v13, %s5051_s7 }
  0xc3   :  { %273 = vrot.lane.b32.xlu0 %v5122_v22, %s5052_s8 }
  0xc6   :  { %275 = vrot.lane.b32.xlu1 %v5137_v33, %s5052_s8 }
  0xc7   :  { %277 = vrot.lane.b32.xlu0 %v5131_v27, %s5052_s8 }
  0xca   :  { %279 = vrot.lane.b32.xlu1 %v5149_v37, %s5052_s8 }
  0xcb   :  { %281 = vrot.lane.b32.xlu0 %v5163_v49, %s5052_s8 }
  0xce   :  { %283 = vrot.lane.b32.xlu1 %v5168_v54, %s5052_s8 }
  0xcf   :  { %285 = vrot.lane.b32.xlu0 %v5176_v58, %s5052_s8 }
  0xd2   :  { %287 = vrot.lane.b32.xlu1 %v5182_v60, %s5052_s8 }
  0xd3   :  { %289 = vrot.lane.b32.xlu0 %v5193_v5, %s5052_s8 }
  0xd6   :  { %291 = vrot.lane.b32.xlu1 %v5199_v7, %s5052_s8 }
  0xd7   :  { %293 = vrot.lane.b32.xlu0 %v5206_v12, %s5052_s8 }
  0xda   :  { %295 = vrot.lane.b32.xlu1 %v5213_v13, %s5052_s8 }
  0xdb   :  { %340 = vrot.lane.b32.xlu0 %v5304_v20, %s5049_s0 }
  0xde   :  { %342 = vrot.lane.b32.xlu1 %v5292_v17, %s5049_s0 }
  0xdf   :  { %344 = vrot.lane.b32.xlu0 %v5316_v24, %s5049_s0 }
  0xe2   :  { %346 = vrot.lane.b32.xlu1 %v5300_v19, %s5049_s0 }
  0xe3   :  { %348 = vrot.lane.b32.xlu0 %v5328_v28, %s5049_s0 }
  0xe6   :  { %350 = vrot.lane.b32.xlu1 %v5312_v23, %s5049_s0 }
  0xe7   :  { %352 = vrot.lane.b32.xlu0 %v5340_v31, %s5049_s0 }
  0xea   :  { %354 = vrot.lane.b32.xlu1 %v5324_v26, %s5049_s0 }
  0xeb   :  { %356 = vrot.lane.b32.xlu0 %v5352_v38, %s5049_s0 }
  0xec   :  { %v5357_v40 = vpop.permute.xlu0 %165 }
  0xed   :  { %v693_v10 = vcombine.low %v5131_v27, %v5357_v40 }
  0xee   :  { %358 = vrot.lane.b32.xlu1 %v5336_v30, %s5049_s0 }
  0xef   :  { %360 = vrot.lane.b32.xlu0 %v5363_v41, %s5049_s0  ;;  %v5458_v8 = vrot.slane %v693_v10, %v5423_v6  ;;  %v5477_v10 = vrot.slane %v2239_v39, %v5423_v6 }
  0xf0   :  { %v5367_v42 = vpop.permute.xlu1 %167  ;;  %v5369_v43 = vpop.permute.xlu0 %169 }
  0xf1   :  { %8559 = vst [vmem:[#allocation16_spill] sm:$0xff] %v5369_v43  ;;  %v2255_v14 = vcombine.low %v5149_v37, %v5367_v42  ;;  %8571 = vst [vmem:[#allocation28_spill] sm:$0xff] %v5458_v8 }
  0xf2   :  { %362 = vrot.lane.b32.xlu1 %v5348_v36, %s5049_s0  ;;  %8577 = vst [vmem:[#allocation34_spill] sm:$0xff] %v5477_v10 }
  0xf3   :  { %376 = vrot.lane.b32.xlu0 %v5304_v20, %s5050_s6  ;;  %v5461_v15 = vrot.slane %v2255_v14, %v5423_v6 }
  0xf4   :  { %v5375_v44 = vpop.permute.xlu1 %171 }
  0xf5   :  { %8560 = vst [vmem:[#allocation17_spill] sm:$0xff] %v5375_v44  ;;  %v5377_v45 = vpop.permute.xlu0 %173  ;;  %8572 = vst [vmem:[#allocation29_spill] sm:$0xff] %v5461_v15  ;;  %v2303_v39 = vcombine.low %v5477_v10, %v5461_v15 }
  0xf6   :  { %378 = vrot.lane.b32.xlu1 %v5292_v17, %s5050_s6 }
  0xf7   :  { %380 = vrot.lane.b32.xlu0 %v5316_v24, %s5050_s6 }
  0xf8   :  { %v5383_v46 = vpop.permute.xlu1 %175 }
  0xf9   :  { %v5385_v47 = vpop.permute.xlu0 %177 }
  0xfa   :  { %8561 = vst [vmem:[#allocation18_spill] sm:$0xff] %v5385_v47  ;;  %382 = vrot.lane.b32.xlu1 %v5300_v19, %s5050_s6 }
  0xfb   :  { %384 = vrot.lane.b32.xlu0 %v5328_v28, %s5050_s6 }
  0xfc   :  { %v5391_v50 = vpop.permute.xlu1 %179 }
  0xfd   :  { %8562 = vst [vmem:[#allocation19_spill] sm:$0xff] %v5391_v50  ;;  %v5393_v51 = vpop.permute.xlu0 %181 }
  0xfe   :  { %8563 = vst [vmem:[#allocation20_spill] sm:$0xff] %v5393_v51  ;;  %386 = vrot.lane.b32.xlu1 %v5312_v23, %s5050_s6 }
  0xff   :  { %388 = vrot.lane.b32.xlu0 %v5340_v31, %s5050_s6 }
 0x100   :  { %v5399_v52 = vpop.permute.xlu1 %183 }
 0x101   :  { %8564 = vst [vmem:[#allocation21_spill] sm:$0xff] %v5399_v52  ;;  %v5401_v53 = vpop.permute.xlu0 %185 }
 0x102   :  { %8565 = vst [vmem:[#allocation22_spill] sm:$0xff] %v5401_v53  ;;  %390 = vrot.lane.b32.xlu1 %v5324_v26, %s5050_s6 }
 0x103   :  { %392 = vrot.lane.b32.xlu0 %v5352_v38, %s5050_s6 }
 0x104   :  { %v5407_v61 = vpop.permute.xlu1 %187 }
 0x105   :  { %8566 = vst [vmem:[#allocation23_spill] sm:$0xff] %v5407_v61  ;;  %v5409_v62 = vpop.permute.xlu0 %201 }
 0x106   :  { %394 = vrot.lane.b32.xlu1 %v5336_v30, %s5050_s6  ;;  %v709_v18 = vcombine.low %v5369_v43, %v5409_v62 }
 0x107   :  { %396 = vrot.lane.b32.xlu0 %v5363_v41, %s5050_s6 }
 0x108   :  { %v5415_v1 = vpop.permute.xlu1 %203  ;;  %v5464_v16 = vrot.slane %v709_v18, %v5423_v6 }
 0x109   :  { %8567 = vst [vmem:[#allocation24_spill] sm:$0xff] %v5415_v1  ;;  %v5417_v3 = vpop.permute.xlu0 %205  ;;  %v2271_v21 = vcombine.low %v5375_v44, %v5415_v1  ;;  %v5487_v44 = vsub.s32 %v745_v57, %v683_v0 }
 0x10a   :  { %398 = vrot.lane.b32.xlu1 %v5348_v36, %s5050_s6  ;;  %v725_v4 = vcombine.low %v5377_v45, %v5417_v3  ;;  %8573 = vst [vmem:[#allocation30_spill] sm:$0xff] %v5464_v16 }
 0x10b   :  { %412 = vrot.lane.b32.xlu0 %v5304_v20, %s5051_s7 }
 0x10c   :  { %v5429_v11 = vpop.permute.xlu1 %207  ;;  %v5448_v56 = vrot.slane %v725_v4, %v5423_v6  ;;  %v5467_v4 = vrot.slane %v2271_v21, %v5423_v6 }
 0x10d   :  { %v2287_v25 = vcombine.low %v5383_v46, %v5429_v11  ;;  %v5439_v29 = vpop.permute.xlu0 %209 }
 0x10e   :  { %414 = vrot.lane.b32.xlu1 %v5292_v17, %s5051_s7  ;;  %8568 = vst [vmem:[#allocation25_spill] sm:$0xff] %v5448_v56  ;;  %8574 = vst [vmem:[#allocation31_spill] sm:$0xff] %v5467_v4  ;;  %v773_v14 = vcombine.low %v5464_v16, %v5448_v56  ;;  %v5511_v16 = vrot.slane %v2303_v39, %v5487_v44 }
 0x10f   :  { %v5451_v59 = vrot.slane %v2287_v25, %v5423_v6  ;;  %416 = vrot.lane.b32.xlu0 %v5316_v24, %s5051_s7  ;;  %v5474_v25 = vrot.slane %v677_v35, %v5423_v6 }
 0x110   :  { %v5455_v63 = vpop.permute.xlu1 %211  ;;  %8584 = vst [vmem:[#allocation41_spill] sm:$0xff] %v5511_v16 }
 0x111   :  { %8569 = vst [vmem:[#allocation26_spill] sm:$0xff] %v5451_v59  ;;  %8570 = vst [vmem:[#allocation27_spill] sm:$0xff] %v5455_v63  ;;  %v5469_v9 = vpop.permute.xlu0 %213  ;;  %v2327_v18 = vcombine.low %v5467_v4, %v5451_v59  ;;  %v741_v35 = vcombine.low %v5474_v25, %v5458_v8  ;;  %v5498_v4 = vrot.slane %v773_v14, %v5487_v44 }
 0x112   :  { %8575 = vst [vmem:[#allocation32_spill] sm:$0xff] %v5469_v9  ;;  %418 = vrot.lane.b32.xlu1 %v5300_v19, %s5051_s7  ;;  %8576 = vst [vmem:[#allocation33_spill] sm:$0xff] %v5474_v25  ;;  %v1493_v8 = vcombine.low %v5385_v47, %v5401_v53 }
 0x113   :  { %420 = vrot.lane.b32.xlu0 %v5328_v28, %s5051_s7  ;;  %8580 = vst [vmem:[#allocation37_spill] sm:$0xff] %v5498_v4  ;;  %v5501_v59 = vrot.slane %v2327_v18, %v5487_v44  ;;  %v5508_v57 = vrot.slane %v741_v35, %v5487_v44 }
 0x114   :  { %v5485_v21 = vpop.permute.xlu1 %215 }
 0x115   :  { %8578 = vst [vmem:[#allocation35_spill] sm:$0xff] %v5485_v21  ;;  %v5493_v1 = vpop.permute.xlu0 %217  ;;  %8581 = vst [vmem:[#allocation38_spill] sm:$0xff] %v5501_v59  ;;  %v2963_v25 = vcombine.low %v5399_v52, %v5485_v21  ;;  %v497_v21 = vrot.slane %v5149_v37, 4 }
 0x116   :  { %8579 = vst [vmem:[#allocation36_spill] sm:$0xff] %v5493_v1  ;;  %422 = vrot.lane.b32.xlu1 %v5312_v23, %s5051_s7  ;;  %8583 = vst [vmem:[#allocation40_spill] sm:$0xff] %v5508_v57  ;;  %v1509_v57 = vcombine.low %v5393_v51, %v5469_v9  ;;  %v8617_v9 = vrot.slane %v5137_v33, 4 }
 0x117   :  { %424 = vrot.lane.b32.xlu0 %v5340_v31, %s5051_s7 }
 0x118   :  { %v5505_v0 = vpop.permute.xlu1 %219 }
 0x119   :  { %8582 = vst [vmem:[#allocation39_spill] sm:$0xff] %v5505_v0  ;;  %v5513_v56 = vpop.permute.xlu0 %221 }
 0x11a   :  { %8585 = vst [vmem:[#allocation42_spill] sm:$0xff] %v5513_v56  ;;  %426 = vrot.lane.b32.xlu1 %v5324_v26, %s5051_s7 }
 0x11b   :  { %428 = vrot.lane.b32.xlu0 %v5352_v38, %s5051_s7 }
 0x11c   :  { %v5523_v10 = vpop.permute.xlu1 %223 }
 0x11d   :  { %8586 = vst [vmem:[#allocation43_spill] sm:$0xff] %v5523_v10  ;;  %v5525_v35 = vpop.permute.xlu0 %237 }
 0x11e   :  { %430 = vrot.lane.b32.xlu1 %v5336_v30, %s5051_s7 }
 0x11f   :  { %432 = vrot.lane.b32.xlu0 %v5363_v41, %s5051_s7 }
 0x120   :  { %v5531_v39 = vpop.permute.xlu1 %239 }
 0x121   :  { %8587 = vst [vmem:[#allocation44_spill] sm:$0xff] %v5531_v39  ;;  %v5533_v15 = vpop.permute.xlu0 %241 }
 0x122   :  { %434 = vrot.lane.b32.xlu1 %v5348_v36, %s5051_s7 }
 0x123   :  { %448 = vrot.lane.b32.xlu0 %v5304_v20, %s5052_s8 }
 0x124   :  { %v5539_v18 = vpop.permute.xlu1 %243 }
 0x125   :  { %8588 = vst [vmem:[#allocation45_spill] sm:$0xff] %v5539_v18  ;;  %v5541_v14 = vpop.permute.xlu0 %245 }
 0x126   :  { %450 = vrot.lane.b32.xlu1 %v5292_v17, %s5052_s8 }
 0x127   :  { %452 = vrot.lane.b32.xlu0 %v5316_v24, %s5052_s8 }
 0x128   :  { %v5547_v16 = vpop.permute.xlu1 %247 }
 0x129   :  { %8589 = vst [vmem:[#allocation46_spill] sm:$0xff] %v5547_v16  ;;  %v5549_v59 = vpop.permute.xlu0 %249 }
 0x12a   :  { %8590 = vst [vmem:[#allocation47_spill] sm:$0xff] %v5549_v59  ;;  %454 = vrot.lane.b32.xlu1 %v5300_v19, %s5052_s8  ;;  %v1525_v24 = vcombine.low %v5493_v1, %v5549_v59  ;;  %v5577_v1 = vrot.slane %v1509_v57, %v5423_v6  ;;  %v496_v19 = vrot.slane %v5131_v27, 4 }
 0x12b   :  { %456 = vrot.lane.b32.xlu0 %v5328_v28, %s5052_s8  ;;  %v2947_v28 = vcombine.low %v5391_v50, %v5407_v61  ;;  %v5587_v50 = vrot.slane %v2963_v25, %v5423_v6  ;;  %v8599_v25 = vrot.slane %v5137_v33, 4 }
 0x12c   :  { %v5557_v4 = vpop.permute.xlu1 %251  ;;  %8593 = vst [vmem:[#allocation50_spill] sm:$0xff] %v5577_v1  ;;  %v5633_v53 = vsel %vm490_vm3, %v496_v19, %v497_v21 }
 0x12d   :  { %8591 = vst [vmem:[#allocation48_spill] sm:$0xff] %v5557_v4  ;;  %v5565_v43 = vpop.permute.xlu0 %253  ;;  %v2979_v51 = vcombine.low %v5505_v0, %v5557_v4  ;;  %8595 = vst [vmem:[#allocation52_spill] sm:$0xff] %v5587_v50  ;;  %v5590_v0 = vrot.slane %v1525_v24, %v5423_v6  ;;  %v501_v24 = vrot.slane %v5163_v49, 4  ;;  %v5612_v47 = vrot.slane %v2947_v28, %v5423_v6 }
 0x12e   :  { %8592 = vst [vmem:[#allocation49_spill] sm:$0xff] %v5565_v43  ;;  %458 = vrot.lane.b32.xlu1 %v5312_v23, %s5052_s8  ;;  %v1541_v52 = vcombine.low %v5513_v56, %v5565_v43  ;;  %v491_v23 = vrot.slane %v5122_v22, 4  ;;  %v5598_v56 = vrot.slane %v1493_v8, %v5423_v6  ;;  %8604 = vst [vmem:[#allocation60_spill] sm:$0xff] %v5633_v53 }
 0x12f   :  { %460 = vrot.lane.b32.xlu0 %v5340_v31, %s5052_s8  ;;  %8596 = vst [vmem:[#allocation53_spill] sm:$0xff] %v5590_v0  ;;  %8601 = vst [vmem:[#allocation57_spill] sm:$0xff] %v5612_v47  ;;  %v5615_v8 = vrot.slane %v2979_v51, %v5423_v6  ;;  %v3011_v28 = vcombine.low %v5612_v47, %v5587_v50 }
 0x130   :  { %v5581_v59 = vpop.permute.xlu1 %255  ;;  %v5593_v57 = vrot.slane %v1541_v52, %v5423_v6  ;;  %8598 = vst [vmem:[#allocation55_spill] sm:$0xff] %v5598_v56  ;;  %v5607_v61 = vsel %vm490_vm3, %v491_v23, %v8599_v25  ;;  %v502_v52 = vrot.slane %v5168_v54, 4  ;;  %v1557_v23 = vcombine.low %v5598_v56, %v5577_v1 }
 0x131   :  { %8594 = vst [vmem:[#allocation51_spill] sm:$0xff] %v5581_v59  ;;  %v2995_v4 = vcombine.low %v5523_v10, %v5581_v59  ;;  %v5600_v43 = vpop.permute.xlu0 %257  ;;  %8600 = vst [vmem:[#allocation56_spill] sm:$0xff] %v5607_v61  ;;  %v504_v1 = vrot.slane %v5160_v48, 4 }
 0x132   :  { %8597 = vst [vmem:[#allocation54_spill] sm:$0xff] %v5593_v57  ;;  %462 = vrot.lane.b32.xlu1 %v5324_v26, %s5052_s8  ;;  %8602 = vst [vmem:[#allocation58_spill] sm:$0xff] %v5615_v8  ;;  %v1589_v10 = vcombine.low %v5590_v0, %v5593_v57  ;;  %v5646_v56 = vsel %vm490_vm3, %v501_v24, %v502_v52  ;;  %v5649_v47 = vrot.slane %v1557_v23, %v5487_v44 }
 0x133   :  { %v5620_v59 = vrot.slane %v2995_v4, %v5423_v6  ;;  %533 = vrot.lane.b32.xlu0 %v5607_v61, %s5049_s0  ;;  %8608 = vst [vmem:[#allocation64_spill] sm:$0xff] %v5646_v56 }
 0x134   :  { %v5626_v25 = vpop.permute.xlu1 %259  ;;  %v5636_v4 = vrot.slane %v1589_v10, %v5487_v44  ;;  %8609 = vst [vmem:[#allocation65_spill] sm:$0xff] %v5649_v47  ;;  %v5656_v10 = vrot.slane %v3011_v28, %v5487_v44  ;;  %v499_v47 = vrot.slane %v5134_v32, 4 }
 0x135   :  { %8603 = vst [vmem:[#allocation59_spill] sm:$0xff] %v5620_v59  ;;  %v3035_v51 = vcombine.low %v5615_v8, %v5620_v59  ;;  %v5638_v0 = vpop.permute.xlu0 %273 }
 0x136   :  { %8605 = vst [vmem:[#allocation61_spill] sm:$0xff] %v5636_v4  ;;  %8606 = vst [vmem:[#allocation62_spill] sm:$0xff] %v5638_v0  ;;  %537 = vrot.lane.b32.xlu1 %v5633_v53, %s5049_s0  ;;  %v5713_v32 = vsel %vm490_vm3, %v497_v21, %v499_v47  ;;  %v813_v47 = vcombine.low %v5439_v29, %v5533_v15  ;;  %v2373_v21 = vcombine.low %v5531_v39, %v5547_v16 }
 0x137   :  { %v5643_v57 = vrot.slane %v3035_v51, %v5487_v44  ;;  %541 = vrot.lane.b32.xlu0 %v5646_v56, %s5049_s0  ;;  %8611 = vst [vmem:[#allocation67_spill] sm:$0xff] %v5656_v10  ;;  %v494_v10 = vrot.slane %v5140_v34, 4  ;;  %8620 = vst [vmem:[#allocation75_spill] sm:$0xff] %v5713_v32 }
 0x138   :  { %v5653_v19 = vpop.permute.xlu1 %275  ;;  %v5762_v39 = vrot.slane %v813_v47, %v5423_v6 }
 0x139   :  { %8607 = vst [vmem:[#allocation63_spill] sm:$0xff] %v5643_v57  ;;  %8610 = vst [vmem:[#allocation66_spill] sm:$0xff] %v5653_v19  ;;  %v5658_v8 = vpop.permute.xlu0 %277 }
 0x13a   :  { %8612 = vst [vmem:[#allocation68_spill] sm:$0xff] %v5658_v8  ;;  %569 = vrot.lane.b32.xlu1 %v5607_v61, %s5050_s6  ;;  %v861_v48 = vcombine.low %v5658_v8, %v5304_v20  ;;  %8627 = vst [vmem:[#allocation82_spill] sm:$0xff] %v5762_v39 }
 0x13b   :  { %573 = vrot.lane.b32.xlu0 %v5633_v53, %s5050_s6 }
 0x13c   :  { %v5668_v51 = vpop.permute.xlu1 %279 }
 0x13d   :  { %8613 = vst [vmem:[#allocation69_spill] sm:$0xff] %v5668_v51  ;;  %v5670_v59 = vpop.permute.xlu0 %281  ;;  %v2405_v8 = vcombine.low %v5668_v51, %v5292_v17  ;;  %v678_v17 = vcombine.high %v5122_v22, %v5163_v49  ;;  %v3097_v22 = vcombine.low %v5324_v26, %v5348_v36  ;;  %v506_v49 = vrot.slane %v5176_v58, 4 }
 0x13e   :  { %8614 = vst [vmem:[#allocation70_spill] sm:$0xff] %v5670_v59  ;;  %577 = vrot.lane.b32.xlu1 %v5646_v56, %s5050_s6  ;;  %v845_v34 = vcombine.low %v5638_v0, %v5670_v59  ;;  %v5726_v0 = vsel %vm490_vm3, %v502_v52, %v504_v1  ;;  %v2357_v1 = vcombine.low %v5455_v63, %v5539_v18  ;;  %v511_v63 = vrot.slane %v5193_v5, 4 }
 0x13f   :  { %605 = vrot.lane.b32.xlu0 %v5607_v61, %s5051_s7  ;;  %8621 = vst [vmem:[#allocation76_spill] sm:$0xff] %v5726_v0 }
 0x140   :  { %v5676_v28 = vpop.permute.xlu1 %283  ;;  %v5735_v20 = vrot.slane %v845_v34, %v5423_v6  ;;  %v509_v34 = vrot.slane %v5171_v55, 4 }
 0x141   :  { %8615 = vst [vmem:[#allocation71_spill] sm:$0xff] %v5676_v28  ;;  %v5678_v50 = vpop.permute.xlu0 %285 }
 0x142   :  { %609 = vrot.lane.b32.xlu1 %v5633_v53, %s5051_s7  ;;  %8622 = vst [vmem:[#allocation77_spill] sm:$0xff] %v5735_v20 }
 0x143   :  { %613 = vrot.lane.b32.xlu0 %v5646_v56, %s5051_s7 }
 0x144   :  { %v5684_v23 = vpop.permute.xlu1 %287 }
 0x145   :  { %8616 = vst [vmem:[#allocation72_spill] sm:$0xff] %v5684_v23  ;;  %v5686_v24 = vpop.permute.xlu0 %289 }
 0x146   :  { %641 = vrot.lane.b32.xlu1 %v5607_v61, %s5052_s8  ;;  %v5704_v61 = vsel %vm490_vm3, %v8617_v9, %v494_v10  ;;  %v2389_v9 = vcombine.low %v5653_v19, %v5676_v28  ;;  %v5747_v28 = vrot.slane %v861_v48, %v5423_v6  ;;  %v5765_v48 = vrot.slane %v2373_v21, %v5423_v6 }
 0x147   :  { %645 = vrot.lane.b32.xlu0 %v5633_v53, %s5052_s8  ;;  %8618 = vst [vmem:[#allocation73_spill] sm:$0xff] %v5704_v61 }
 0x148   :  { %v5693_v57 = vpop.permute.xlu1 %291  ;;  %8625 = vst [vmem:[#allocation80_spill] sm:$0xff] %v5747_v28  ;;  %v5750_v59 = vrot.slane %v2389_v9, %v5423_v6  ;;  %v5768_v9 = vrot.slane %v2405_v8, %v5423_v6  ;;  %v909_v16 = vcombine.low %v5735_v20, %v5747_v28  ;;  %v5783_v8 = vrot.slane %v2357_v1, %v5423_v6 }
 0x149   :  { %v5696_v4 = vpop.permute.xlu0 %293  ;;  %v514_v28 = vrot.slane %v5188_v2, 4  ;;  %v1662_v1 = vcombine.high %v5340_v31, %v5363_v41 }
 0x14a   :  { %649 = vrot.lane.b32.xlu1 %v5646_v56, %s5052_s8  ;;  %v829_v56 = vcombine.low %v5525_v35, %v5541_v14  ;;  %8626 = vst [vmem:[#allocation81_spill] sm:$0xff] %v5750_v59  ;;  %8628 = vst [vmem:[#allocation83_spill] sm:$0xff] %v5768_v9  ;;  %v2445_v21 = vcombine.low %v5750_v59, %v5768_v9  ;;  %v2421_v9 = vcombine.low %v5783_v8, %v5765_v48 }
 0x14b   :  { %535 = vrot.lane.b32.xlu0 %v5704_v61, %s5049_s0  ;;  %8629 = vst [vmem:[#allocation84_spill] sm:$0xff] %v5783_v8  ;;  %v5809_v18 = vrot.slane %v909_v16, %v5487_v44  ;;  %v1645_v8 = vcombine.low %v5678_v50, %v5696_v4 }
 0x14c   :  { %v5710_v53 = vpop.permute.xlu1 %295  ;;  %v5744_v52 = vrot.slane %v829_v56, %v5423_v6  ;;  %v2240_v56 = vcombine.high %v5137_v33, %v5168_v54  ;;  %v3098_v33 = vcombine.high %v5324_v26, %v5348_v36  ;;  %v507_v54 = vrot.slane %v5182_v60, 4 }
 0x14d   :  { %8619 = vst [vmem:[#allocation74_spill] sm:$0xff] %v5710_v53  ;;  %v5721_v10 = vpop.permute.xlu0 %340  ;;  %v1661_v26 = vcombine.low %v5340_v31, %v5363_v41  ;;  %8631 = vst [vmem:[#allocation86_spill] sm:$0xff] %v5809_v18  ;;  %v5816_v31 = vrot.slane %v3097_v22, %v5423_v6  ;;  %v5831_v5 = vrot.slane %v2445_v21, %v5487_v44 }
 0x14e   :  { %539 = vrot.lane.b32.xlu1 %v5713_v32, %s5049_s0  ;;  %8624 = vst [vmem:[#allocation79_spill] sm:$0xff] %v5744_v52  ;;  %v877_v47 = vcombine.low %v5762_v39, %v5744_v52  ;;  %v512_v39 = vrot.slane %v5199_v7, 4  ;;  %v5801_v52 = vrot.slane %v678_v17, %v5423_v6  ;;  %v5804_v59 = vrot.slane %v2240_v56, %v5423_v6 }
 0x14f   :  { %543 = vrot.lane.b32.xlu0 %v5726_v0, %s5049_s0  ;;  %8633 = vst [vmem:[#allocation88_spill] sm:$0xff] %v5816_v31  ;;  %v5819_v17 = vrot.slane %v3098_v33, %v5423_v6  ;;  %v5822_v56 = vsel %vm490_vm3, %v506_v49, %v507_v54  ;;  %v5825_v7 = vsel %vm490_vm3, %v507_v54, %v509_v34  ;;  %8638 = vst [vmem:[#allocation93_spill] sm:$0xff] %v5831_v5 }
 0x150   :  { %v5739_v19 = vpop.permute.xlu1 %342  ;;  %8635 = vst [vmem:[#allocation90_spill] sm:$0xff] %v5822_v56  ;;  %8636 = vst [vmem:[#allocation91_spill] sm:$0xff] %v5825_v7  ;;  %v5828_v16 = vrot.slane %v877_v47, %v5487_v44  ;;  %v5836_v22 = vrot.slane %v1661_v26, %v5423_v6  ;;  %v5843_v34 = vrot.slane %v1662_v1, %v5423_v6 }
 0x151   :  { %8623 = vst [vmem:[#allocation78_spill] sm:$0xff] %v5739_v19  ;;  %v5752_v51 = vpop.permute.xlu0 %344  ;;  %8634 = vst [vmem:[#allocation89_spill] sm:$0xff] %v5819_v17  ;;  %v5848_v54 = vsel %vm490_vm3, %v511_v63, %v512_v39  ;;  %v5851_v47 = vsel %vm490_vm3, %v512_v39, %v514_v28  ;;  %v5854_v21 = vrot.slane %v2421_v9, %v5487_v44 }
 0x152   :  { %571 = vrot.lane.b32.xlu1 %v5704_v61, %s5050_s6  ;;  %8637 = vst [vmem:[#allocation92_spill] sm:$0xff] %v5828_v16  ;;  %8639 = vst [vmem:[#allocation94_spill] sm:$0xff] %v5836_v22  ;;  %v1629_v26 = vcombine.low %v5600_v43, %v5686_v24  ;;  %v3081_v17 = vcombine.low %v5684_v23, %v5710_v53  ;;  %v694_v39 = vcombine.high %v5131_v27, %v5357_v40 }
 0x153   :  { %575 = vrot.lane.b32.xlu0 %v5713_v32, %s5050_s6  ;;  %8641 = vst [vmem:[#allocation96_spill] sm:$0xff] %v5843_v34  ;;  %8642 = vst [vmem:[#allocation97_spill] sm:$0xff] %v5848_v54  ;;  %v516_v34 = vrot.slane %v5206_v12, 4  ;;  %v5877_v23 = vrot.slane %v1645_v8, %v5423_v6  ;;  %v1405_v27 = vcombine.low %v5176_v58, %v5206_v12 }
 0x154   :  { %v5774_v55 = vpop.permute.xlu1 %346  ;;  %8643 = vst [vmem:[#allocation98_spill] sm:$0xff] %v5851_v47  ;;  %8644 = vst [vmem:[#allocation99_spill] sm:$0xff] %v5854_v21  ;;  %v1406_v63 = vcombine.high %v5176_v58, %v5206_v12  ;;  %v2877_v8 = vcombine.low %v5182_v60, %v5213_v13  ;;  %v708_v12 = vrot.slane %v694_v39, %v5423_v6 }
 0x155   :  { %v5789_v20 = vpop.permute.xlu0 %348  ;;  %8647 = vst [vmem:[#allocation102_spill] sm:$0xff] %v5877_v23 }
 0x156   :  { %8630 = vst [vmem:[#allocation85_spill] sm:$0xff] %v5789_v20  ;;  %579 = vrot.lane.b32.xlu1 %v5726_v0, %s5050_s6 }
 0x157   :  { %607 = vrot.lane.b32.xlu0 %v5704_v61, %s5051_s7 }
 0x158   :  { %v5813_v2 = vpop.permute.xlu1 %350 }
 0x159   :  { %8632 = vst [vmem:[#allocation87_spill] sm:$0xff] %v5813_v2  ;;  %v5838_v33 = vpop.permute.xlu0 %352 }
 0x15a   :  { %8640 = vst [vmem:[#allocation95_spill] sm:$0xff] %v5838_v33  ;;  %611 = vrot.lane.b32.xlu1 %v5713_v32, %s5051_s7  ;;  %v1677_v49 = vcombine.low %v5352_v38, %v5838_v33  ;;  %v3065_v33 = vcombine.low %v5626_v25, %v5693_v57 }
 0x15b   :  { %615 = vrot.lane.b32.xlu0 %v5726_v0, %s5051_s7 }
 0x15c   :  { %v5862_v1 = vpop.permute.xlu1 %354  ;;  %v5869_v28 = vrot.slane %v1677_v49, %v5423_v6  ;;  %v726_v49 = vcombine.high %v5377_v45, %v5417_v3  ;;  %v2288_v3 = vcombine.high %v5383_v46, %v5429_v11  ;;  %v8659_v46 = vld [vmem:[#allocation17_spill] sm:$0xff] }
 0x15d   :  { %8645 = vst [vmem:[#allocation100_spill] sm:$0xff] %v5862_v1  ;;  %v3113_v9 = vcombine.low %v5336_v30, %v5862_v1  ;;  %v5879_v53 = vpop.permute.xlu0 %356  ;;  %v5899_v1 = vrot.slane %v3081_v17, %v5423_v6  ;;  %v8653_v17 = vrot.slane %v5213_v13, 4 }
 0x15e   :  { %8646 = vst [vmem:[#allocation101_spill] sm:$0xff] %v5869_v28  ;;  %8648 = vst [vmem:[#allocation103_spill] sm:$0xff] %v5879_v53  ;;  %643 = vrot.lane.b32.xlu1 %v5704_v61, %s5052_s8  ;;  %v2878_v53 = vcombine.high %v5182_v60, %v5213_v13  ;;  %v5896_v61 = vrot.slane %v1629_v26, %v5423_v6  ;;  %v1725_v40 = vcombine.low %v5836_v22, %v5869_v28  ;;  %v8658_v13 = vld [vmem:[#allocation24_spill] sm:$0xff] }
 0x15f   :  { %8650 = vst [vmem:[#allocation105_spill] sm:$0xff] %v5899_v1  ;;  %v5904_v45 = vrot.slane %v3113_v9, %v5423_v6  ;;  %647 = vrot.lane.b32.xlu0 %v5713_v32, %s5052_s8  ;;  %v2256_v60 = vcombine.high %v5149_v37, %v5367_v42  ;;  %v5918_v26 = vsel %vm490_vm3, %v516_v34, %v8653_v17  ;;  %v8655_v9 = vld [vmem:[#allocation16_spill] sm:$0xff] }
 0x160   :  { %8649 = vst [vmem:[#allocation104_spill] sm:$0xff] %v5896_v61  ;;  %v5908_v58 = vpop.permute.xlu1 %358  ;;  %8654 = vst [vmem:[#allocation108_spill] sm:$0xff] %v5918_v26  ;;  %v710_v22 = vcombine.high %v8655_v9, %v5409_v62  ;;  %v5923_v32 = vrot.slane %v3065_v33, %v5423_v6  ;;  %v1693_v39 = vcombine.low %v5896_v61, %v5877_v23  ;;  %v8663_v17 = vld [vmem:[#allocation28_spill] sm:$0xff]  ;;  %v8664_v9 = vld [vmem:[#allocation33_spill] sm:$0xff] }
 0x161   :  { %8651 = vst [vmem:[#allocation106_spill] sm:$0xff] %v5904_v45  ;;  %8652 = vst [vmem:[#allocation107_spill] sm:$0xff] %v5908_v58  ;;  %v3153_v37 = vcombine.low %v5816_v31, %v5904_v45  ;;  %v5929_v42 = vpop.permute.xlu0 %360  ;;  %v2272_v11 = vcombine.high %v8659_v46, %v8658_v13  ;;  %v5936_v34 = vrot.slane %v1405_v27, %v5423_v6  ;;  %v8686_v61 = vld [vmem:[#allocation21_spill] sm:$0xff] }
 0x162   :  { %8656 = vst [vmem:[#allocation16_spill] sm:$0xff] %v5923_v32  ;;  %8657 = vst [vmem:[#allocation109_spill] sm:$0xff] %v5929_v42  ;;  %651 = vrot.lane.b32.xlu1 %v5726_v0, %s5052_s8  ;;  %v5939_v62 = vrot.slane %v1406_v63, %v5423_v6  ;;  %v5942_v33 = vrot.slane %v2877_v8, %v5423_v6  ;;  %v742_v31 = vcombine.high %v8664_v9, %v8663_v17  ;;  %v8667_v17 = vld [vmem:[#allocation32_spill] sm:$0xff] }
 0x163   :  { %8660 = vst [vmem:[#allocation24_spill] sm:$0xff] %v5936_v34  ;;  %v740_v45 = vrot.slane %v726_v49, %v5423_v6  ;;  %v3129_v0 = vcombine.low %v5923_v32, %v5899_v1  ;;  %v5950_v58 = vrot.slane %v1725_v40, %v5487_v44  ;;  %464 = vrot.lane.b32.xlu0 %v5352_v38, %s5052_s8  ;;  %v8668_v9 = vld [vmem:[#allocation20_spill] sm:$0xff]  ;;  %v8678_v38 = vld [vmem:[#allocation26_spill] sm:$0xff] }
 0x164   :  { %8661 = vst [vmem:[#allocation17_spill] sm:$0xff] %v5939_v62  ;;  %8662 = vst [vmem:[#allocation110_spill] sm:$0xff] %v5942_v33  ;;  %v5954_v27 = vpop.permute.xlu1 %362  ;;  %v757_v63 = vcombine.low %v5801_v52, %v708_v12  ;;  %v758_v8 = vcombine.high %v5801_v52, %v708_v12  ;;  %v2270_v13 = vrot.slane %v2256_v60, %v5423_v6  ;;  %v8672_v52 = vld [vmem:[#allocation29_spill] sm:$0xff]  ;;  %v8673_v12 = vld [vmem:[#allocation34_spill] sm:$0xff] }
 0x165   :  { %8665 = vst [vmem:[#allocation28_spill] sm:$0xff] %v5950_v58  ;;  %8666 = vst [vmem:[#allocation33_spill] sm:$0xff] %v5954_v27  ;;  %v2302_v46 = vrot.slane %v2288_v3, %v5423_v6  ;;  %v724_v49 = vrot.slane %v710_v22, %v5423_v6  ;;  %v1510_v33 = vcombine.high %v8668_v9, %v8667_v17  ;;  %v5969_v34 = vpop.permute.xlu0 %376  ;;  %v8674_v3 = vld [vmem:[#allocation22_spill] sm:$0xff]  ;;  %v8676_v17 = vld [vmem:[#allocation25_spill] sm:$0xff] }
 0x166   :  { %v5964_v40 = vrot.slane %v1693_v39, %v5487_v44  ;;  %v5967_v62 = vrot.slane %v3153_v37, %v5487_v44  ;;  %8671 = vst [vmem:[#allocation111_spill] sm:$0xff] %v5969_v34  ;;  %468 = vrot.lane.b32.xlu1 %v5363_v41, %s5052_s8  ;;  %v2304_v60 = vcombine.high %v8673_v12, %v8672_v52  ;;  %v8675_v27 = vld [vmem:[#allocation18_spill] sm:$0xff]  ;;  %v8679_v37 = vld [vmem:[#allocation31_spill] sm:$0xff]  ;;  %v8709_v58 = vld [vmem:[#allocation13_spill] sm:$0xff] }
 0x167   :  { %v1494_v22 = vcombine.high %v8675_v27, %v8674_v3  ;;  %v2286_v42 = vrot.slane %v2272_v11, %v5423_v6  ;;  %v8677_v9 = vld [vmem:[#allocation30_spill] sm:$0xff]  ;;  %v789_v28 = vcombine.low %v724_v49, %v740_v45  ;;  %v2328_v32 = vcombine.high %v8679_v37, %v8678_v38  ;;  %545 = vrot.lane.b32.xlu0 %v5822_v56, %s5049_s0  ;;  %v8682_v52 = vld [vmem:[#allocation23_spill] sm:$0xff] }
 0x168   :  { %8669 = vst [vmem:[#allocation32_spill] sm:$0xff] %v5964_v40  ;;  %8670 = vst [vmem:[#allocation20_spill] sm:$0xff] %v5967_v62  ;;  %v774_v39 = vcombine.high %v8677_v9, %v8676_v17  ;;  %v5983_v1 = vrot.slane %v3129_v0, %v5487_v44  ;;  %v5987_v41 = vpop.permute.xlu1 %378  ;;  %v2319_v11 = vcombine.low %v5804_v59, %v2270_v13  ;;  %v8683_v12 = vld [vmem:[#allocation19_spill] sm:$0xff]  ;;  %v8706_v62 = vld [vmem:[#allocation52_spill] sm:$0xff] }
 0x169   :  { %8681 = vst [vmem:[#allocation34_spill] sm:$0xff] %v5987_v41  ;;  %v2948_v3 = vcombine.high %v8683_v12, %v8682_v52  ;;  %v2343_v17 = vcombine.low %v2286_v42, %v2302_v46  ;;  %v5995_v9 = vrot.slane %v2878_v53, %v5423_v6  ;;  %v790_v38 = vcombine.high %v724_v49, %v740_v45  ;;  %v8685_v37 = vld [vmem:[#allocation35_spill] sm:$0xff]  ;;  %v6000_v21 = vpop.permute.xlu0 %380 }
 0x16a   :  { %8680 = vst [vmem:[#allocation29_spill] sm:$0xff] %v5983_v1  ;;  %v1524_v0 = vrot.slane %v1510_v33, %v5423_v6  ;;  %v2964_v23 = vcombine.high %v8686_v61, %v8685_v37  ;;  %8687 = vst [vmem:[#allocation18_spill] sm:$0xff] %v6000_v21  ;;  %549 = vrot.lane.b32.xlu1 %v5848_v54, %s5049_s0  ;;  %v6007_v13 = vrot.slane %v742_v31, %v5487_v44 }
 0x16b   :  { %8684 = vst [vmem:[#allocation22_spill] sm:$0xff] %v5995_v9  ;;  %v6010_v53 = vrot.slane %v757_v63, %v5487_v44  ;;  %v6013_v45 = vrot.slane %v758_v8, %v5487_v44  ;;  %v6016_v42 = vrot.slane %v774_v39, %v5487_v44  ;;  %v6019_v61 = vrot.slane %v2304_v60, %v5487_v44 }
 0x16c   :  { %v1508_v33 = vrot.slane %v1494_v22, %v5423_v6  ;;  %v6023_v46 = vrot.slane %v789_v28, %v5487_v44  ;;  %v6026_v31 = vrot.slane %v2328_v32, %v5487_v44  ;;  %466 = vrot.lane.b32.xlu0 %v5336_v30, %s5052_s8  ;;  %v6030_v63 = vpop.permute.xlu1 %382  ;;  %v6033_v8 = vrot.slane %v2319_v11, %v5487_v44  ;;  %v8694_v22 = vld [vmem:[#allocation50_spill] sm:$0xff]  ;;  %v8695_v28 = vld [vmem:[#allocation55_spill] sm:$0xff]  ;;  %v8698_v11 = vld [vmem:[#allocation37_spill] sm:$0xff] }
 0x16d   :  { %8688 = vst [vmem:[#allocation25_spill] sm:$0xff] %v6010_v53  ;;  %8689 = vst [vmem:[#allocation30_spill] sm:$0xff] %v6013_v45  ;;  %v6036_v49 = vrot.slane %v2948_v3, %v5423_v6  ;;  %v6039_v60 = vrot.slane %v2343_v17, %v5487_v44  ;;  %v1558_v39 = vcombine.high %v8695_v28, %v8694_v22  ;;  %v6049_v59 = vpop.permute.xlu0 %384  ;;  %v8699_v3 = vld [vmem:[#allocation40_spill] sm:$0xff]  ;;  %v8700_v22 = vld [vmem:[#allocation38_spill] sm:$0xff] }
 0x16e   :  { %8690 = vst [vmem:[#allocation26_spill] sm:$0xff] %v6023_v46  ;;  %8691 = vst [vmem:[#allocation31_spill] sm:$0xff] %v6030_v63  ;;  %v6044_v32 = vrot.slane %v790_v38, %v5487_v44  ;;  %v1573_v52 = vcombine.low %v1508_v33, %v1524_v0  ;;  %v1574_v12 = vcombine.high %v1508_v33, %v1524_v0  ;;  %470 = vrot.lane.b32.xlu1 %v5348_v36, %s5052_s8  ;;  %v8701_v28 = vld [vmem:[#allocation41_spill] sm:$0xff]  ;;  %v8712_v30 = vld [vmem:[#allocation12_spill] sm:$0xff] }
 0x16f   :  { %8692 = vst [vmem:[#allocation23_spill] sm:$0xff] %v6033_v8  ;;  %8693 = vst [vmem:[#allocation19_spill] sm:$0xff] %v6039_v60  ;;  %v6047_v37 = vrot.slane %v2964_v23, %v5423_v6  ;;  %v6074_v17 = vrot.slane %v1558_v39, %v5487_v44  ;;  %v997_v0 = vcombine.low %v5969_v34, %v6049_v59  ;;  %v8707_v38 = vld [vmem:[#allocation57_spill] sm:$0xff]  ;;  %v8738_v53 = vld [vmem:[#allocation39_spill] sm:$0xff] }
 0x170   :  { %8696 = vst [vmem:[#allocation35_spill] sm:$0xff] %v6044_v32  ;;  %8697 = vst [vmem:[#allocation21_spill] sm:$0xff] %v6049_v59  ;;  %547 = vrot.lane.b32.xlu0 %v5825_v7, %s5049_s0  ;;  %v6063_v23 = vpop.permute.xlu1 %386  ;;  %v6083_v33 = vrot.slane %v1573_v52, %v5487_v44  ;;  %v6086_v27 = vrot.slane %v1574_v12, %v5487_v44  ;;  %v3012_v9 = vcombine.high %v8707_v38, %v8706_v62  ;;  %v8710_v52 = vld [vmem:[#allocation11_spill] sm:$0xff]  ;;  %v8719_v45 = vld [vmem:[#allocation49_spill] sm:$0xff] }
 0x171   :  { %8702 = vst [vmem:[#allocation50_spill] sm:$0xff] %v6063_v23  ;;  %8703 = vst [vmem:[#allocation55_spill] sm:$0xff] %v6074_v17  ;;  %v2523_v1 = vcombine.low %v5987_v41, %v6063_v23  ;;  %v3027_v39 = vcombine.low %v6036_v49, %v6047_v37  ;;  %v6092_v40 = vpop.permute.xlu0 %388  ;;  %v965_v36 = vcombine.low %v8709_v58, %v5752_v51  ;;  %v8718_v23 = vld [vmem:[#allocation27_spill] sm:$0xff] }
 0x172   :  { %8704 = vst [vmem:[#allocation112_spill] sm:$0xff] %v6083_v33  ;;  %8705 = vst [vmem:[#allocation113_spill] sm:$0xff] %v6086_v27  ;;  %551 = vrot.lane.b32.xlu1 %v5851_v47, %s5049_s0  ;;  %v2491_v41 = vcombine.low %v8710_v52, %v5774_v55  ;;  %v981_v12 = vcombine.low %v5789_v20, %v6000_v21  ;;  %v2507_v62 = vcombine.low %v5813_v2, %v6030_v63  ;;  %v8713_v63 = vld [vmem:[#allocation9_spill] sm:$0xff]  ;;  %v8720_v21 = vld [vmem:[#allocation42_spill] sm:$0xff] }
 0x173   :  { %8708 = vst [vmem:[#allocation52_spill] sm:$0xff] %v6092_v40  ;;  %v830_v49 = vcombine.high %v5525_v35, %v5541_v14  ;;  %v949_v2 = vcombine.low %v8712_v30, %v5721_v10  ;;  %v2475_v14 = vcombine.low %v8713_v63, %v5739_v19  ;;  %v6121_v35 = vrot.slane %v997_v0, %v5423_v6  ;;  %v8717_v20 = vld [vmem:[#allocation45_spill] sm:$0xff]  ;;  %v8730_v59 = vld [vmem:[#allocation51_spill] sm:$0xff]  ;;  %v8756_v19 = vld [vmem:[#allocation66_spill] sm:$0xff] }
 0x174   :  { %553 = vrot.lane.b32.xlu0 %v5918_v26, %s5049_s0  ;;  %v6108_v37 = vpop.permute.xlu1 %390  ;;  %v6127_v38 = vrot.slane %v3012_v9, %v5487_v44  ;;  %v814_v40 = vcombine.high %v5439_v29, %v5533_v15  ;;  %v2358_v32 = vcombine.high %v8718_v23, %v8717_v20  ;;  %v1542_v60 = vcombine.high %v8720_v21, %v8719_v45  ;;  %v8726_v29 = vld [vmem:[#allocation46_spill] sm:$0xff]  ;;  %v8727_v21 = vld [vmem:[#allocation44_spill] sm:$0xff]  ;;  %v8728_v23 = vld [vmem:[#allocation47_spill] sm:$0xff] }
 0x175   :  { %8711 = vst [vmem:[#allocation57_spill] sm:$0xff] %v6108_v37  ;;  %8714 = vst [vmem:[#allocation13_spill] sm:$0xff] %v6121_v35  ;;  %v6124_v37 = vrot.slane %v2523_v1, %v5423_v6  ;;  %v6135_v8 = vpop.permute.xlu0 %392  ;;  %v6140_v1 = vrot.slane %v965_v36, %v5423_v6  ;;  %v6143_v9 = vrot.slane %v2491_v41, %v5423_v6  ;;  %v8731_v36 = vld [vmem:[#allocation43_spill] sm:$0xff] }
 0x176   :  { %8716 = vst [vmem:[#allocation12_spill] sm:$0xff] %v6127_v38  ;;  %8721 = vst [vmem:[#allocation45_spill] sm:$0xff] %v6135_v8  ;;  %581 = vrot.lane.b32.xlu1 %v5822_v56, %s5050_s6  ;;  %v6146_v0 = vrot.slane %v981_v12, %v5423_v6  ;;  %v6149_v15 = vrot.slane %v2507_v62, %v5423_v6  ;;  %v844_v20 = vrot.slane %v830_v49, %v5423_v6  ;;  %v8729_v8 = vld [vmem:[#allocation36_spill] sm:$0xff]  ;;  %v8825_v27 = vld [vmem:[#allocation87_spill] sm:$0xff] }
 0x177   :  { %8715 = vst [vmem:[#allocation11_spill] sm:$0xff] %v6124_v37  ;;  %8722 = vst [vmem:[#allocation27_spill] sm:$0xff] %v6140_v1  ;;  %v2374_v45 = vcombine.high %v8727_v21, %v8726_v29  ;;  %v1526_v34 = vcombine.high %v8729_v8, %v8728_v23  ;;  %v2996_v46 = vcombine.high %v8731_v36, %v8730_v59  ;;  %v8735_v59 = vld [vmem:[#allocation79_spill] sm:$0xff]  ;;  %v8736_v21 = vld [vmem:[#allocation82_spill] sm:$0xff] }
 0x178   :  { %8723 = vst [vmem:[#allocation49_spill] sm:$0xff] %v6143_v9  ;;  %8724 = vst [vmem:[#allocation42_spill] sm:$0xff] %v6146_v0  ;;  %585 = vrot.lane.b32.xlu0 %v5848_v54, %s5050_s6  ;;  %v6160_v41 = vpop.permute.xlu1 %394  ;;  %v6163_v12 = vrot.slane %v949_v2, %v5423_v6  ;;  %v6166_v62 = vrot.slane %v2475_v14, %v5423_v6  ;;  %v1045_v49 = vcombine.low %v6146_v0, %v6121_v35  ;;  %v8737_v36 = vld [vmem:[#allocation48_spill] sm:$0xff] }
 0x179   :  { %8725 = vst [vmem:[#allocation114_spill] sm:$0xff] %v6149_v15  ;;  %8732 = vst [vmem:[#allocation46_spill] sm:$0xff] %v6160_v41  ;;  %v2563_v8 = vcombine.low %v6149_v15, %v6124_v37  ;;  %v828_v29 = vrot.slane %v814_v40, %v5423_v6  ;;  %v878_v23 = vcombine.high %v8736_v21, %v8735_v59  ;;  %v6178_v63 = vpop.permute.xlu0 %396 }
 0x17a   :  { %8733 = vst [vmem:[#allocation44_spill] sm:$0xff] %v6163_v12  ;;  %8734 = vst [vmem:[#allocation47_spill] sm:$0xff] %v6166_v62  ;;  %v2980_v41 = vcombine.high %v8738_v53, %v8737_v36  ;;  %v1556_v2 = vrot.slane %v1542_v60, %v5423_v6  ;;  %589 = vrot.lane.b32.xlu1 %v5918_v26, %s5050_s6  ;;  %v6183_v14 = vrot.slane %v3027_v39, %v5487_v44  ;;  %v8741_v36 = vld [vmem:[#allocation54_spill] sm:$0xff] }
 0x17b   :  { %8739 = vst [vmem:[#allocation36_spill] sm:$0xff] %v6178_v63  ;;  %v2372_v15 = vrot.slane %v2358_v32, %v5423_v6  ;;  %v1013_v40 = vcombine.low %v6163_v12, %v6140_v1  ;;  %v2539_v59 = vcombine.low %v6166_v62, %v6143_v9  ;;  %v893_v21 = vcombine.low %v828_v29, %v844_v20  ;;  %v8742_v63 = vld [vmem:[#allocation53_spill] sm:$0xff]  ;;  %v8755_v1 = vld [vmem:[#allocation71_spill] sm:$0xff] }
 0x17c   :  { %8740 = vst [vmem:[#allocation51_spill] sm:$0xff] %v6183_v14  ;;  %v2388_v53 = vrot.slane %v2374_v45, %v5423_v6  ;;  %v1540_v60 = vrot.slane %v1526_v34, %v5423_v6  ;;  %v1590_v37 = vcombine.high %v8742_v63, %v8741_v36  ;;  %617 = vrot.lane.b32.xlu0 %v5822_v56, %s5051_s7  ;;  %v6196_v39 = vpop.permute.xlu1 %398  ;;  %v8746_v34 = vld [vmem:[#allocation84_spill] sm:$0xff]  ;;  %v8813_v14 = vld [vmem:[#allocation23_spill] sm:$0xff] }
 0x17d   :  { %8743 = vst [vmem:[#allocation43_spill] sm:$0xff] %v6196_v39  ;;  %v894_v32 = vcombine.high %v828_v29, %v844_v20  ;;  %v3010_v0 = vrot.slane %v2996_v46, %v5423_v6  ;;  %v6200_v35 = vrot.slane %v1045_v49, %v5487_v44  ;;  %v6203_v62 = vrot.slane %v2563_v8, %v5487_v44  ;;  %v6211_v12 = vpop.permute.xlu0 %412  ;;  %v8748_v20 = vld [vmem:[#allocation70_spill] sm:$0xff] }
 0x17e   :  { %v6206_v45 = vrot.slane %v878_v23, %v5487_v44  ;;  %v2422_v63 = vcombine.high %v8746_v34, %v5765_v48  ;;  %v2994_v36 = vrot.slane %v2980_v41, %v5423_v6  ;;  %v1605_v9 = vcombine.low %v1540_v60, %v1556_v2  ;;  %8747 = vst [vmem:[#allocation48_spill] sm:$0xff] %v6211_v12  ;;  %v8749_v49 = vld [vmem:[#allocation62_spill] sm:$0xff]  ;;  %v8753_v41 = vld [vmem:[#allocation59_spill] sm:$0xff] }
 0x17f   :  { %8744 = vst [vmem:[#allocation79_spill] sm:$0xff] %v6200_v35  ;;  %8745 = vst [vmem:[#allocation82_spill] sm:$0xff] %v6203_v62  ;;  %621 = vrot.lane.b32.xlu1 %v5848_v54, %s5051_s7  ;;  %v1606_v46 = vcombine.high %v1540_v60, %v1556_v2  ;;  %v846_v29 = vcombine.high %v8749_v49, %v8748_v20  ;;  %v6218_v8 = vrot.slane %v1013_v40, %v5487_v44  ;;  %v8754_v34 = vld [vmem:[#allocation58_spill] sm:$0xff]  ;;  %v8759_v20 = vld [vmem:[#allocation68_spill] sm:$0xff] }
 0x180   :  { %v6221_v23 = vrot.slane %v2539_v59, %v5487_v44  ;;  %v2437_v39 = vcombine.low %v2372_v15, %v2388_v53  ;;  %v6224_v48 = vrot.slane %v1590_v37, %v5487_v44  ;;  %v3036_v12 = vcombine.high %v8754_v34, %v8753_v41  ;;  %625 = vrot.lane.b32.xlu0 %v5918_v26, %s5051_s7  ;;  %v6232_v2 = vpop.permute.xlu1 %414  ;;  %v8758_v60 = vld [vmem:[#allocation10_spill] sm:$0xff]  ;;  %v8762_v49 = vld [vmem:[#allocation69_spill] sm:$0xff]  ;;  %v8763_v34 = vld [vmem:[#allocation80_spill] sm:$0xff] }
 0x181   :  { %8750 = vst [vmem:[#allocation39_spill] sm:$0xff] %v6218_v8  ;;  %v2390_v54 = vcombine.high %v8756_v19, %v8755_v1  ;;  %8757 = vst [vmem:[#allocation84_spill] sm:$0xff] %v6232_v2  ;;  %v3051_v40 = vcombine.low %v2994_v36, %v3010_v0  ;;  %v862_v59 = vcombine.high %v8759_v20, %v8758_v60  ;;  %v8761_v1 = vld [vmem:[#allocation8_spill] sm:$0xff]  ;;  %v8764_v0 = vld [vmem:[#allocation77_spill] sm:$0xff]  ;;  %v6250_v2 = vpop.permute.xlu0 %416 }
 0x182   :  { %8751 = vst [vmem:[#allocation54_spill] sm:$0xff] %v6221_v23  ;;  %8752 = vst [vmem:[#allocation53_spill] sm:$0xff] %v6224_v48  ;;  %v6241_v53 = vrot.slane %v893_v21, %v5487_v44  ;;  %v6244_v19 = vrot.slane %v1605_v9, %v5487_v44  ;;  %v2406_v41 = vcombine.high %v8762_v49, %v8761_v1 }
 0x183   :  { %v910_v36 = vcombine.high %v8764_v0, %v8763_v34  ;;  %653 = vrot.lane.b32.xlu1 %v5822_v56, %s5052_s8  ;;  %v6255_v60 = vrot.slane %v894_v32, %v5487_v44  ;;  %v6258_v21 = vrot.slane %v2422_v63, %v5487_v44  ;;  %v6261_v9 = vrot.slane %v1606_v46, %v5487_v44  ;;  %v8767_v0 = vld [vmem:[#allocation7_spill] sm:$0xff]  ;;  %v8772_v56 = vld [vmem:[#allocation81_spill] sm:$0xff] }
 0x184   :  { %8760 = vst [vmem:[#allocation70_spill] sm:$0xff] %v6244_v19  ;;  %v860_v20 = vrot.slane %v846_v29, %v5423_v6  ;;  %v6265_v1 = vrot.slane %v2437_v39, %v5487_v44  ;;  %v6268_v49 = vrot.slane %v3036_v12, %v5487_v44  ;;  %v2404_v34 = vrot.slane %v2390_v54, %v5423_v6  ;;  %v6273_v32 = vpop.permute.xlu1 %418  ;;  %v8771_v39 = vld [vmem:[#allocation83_spill] sm:$0xff] }
 0x185   :  { %8765 = vst [vmem:[#allocation62_spill] sm:$0xff] %v6261_v9  ;;  %555 = vrot.lane.b32.xlu0 %v8767_v0, %s5049_s0  ;;  %v6278_v46 = vrot.slane %v3051_v40, %v5487_v44  ;;  %v876_v29 = vrot.slane %v862_v59, %v5423_v6  ;;  %v2446_v23 = vcombine.high %v8772_v56, %v8771_v39  ;;  %v6287_v8 = vpop.permute.xlu0 %420  ;;  %v8814_v39 = vld [vmem:[#allocation19_spill] sm:$0xff]  ;;  %v8822_v9 = vld [vmem:[#allocation100_spill] sm:$0xff] }
 0x186   :  { %8766 = vst [vmem:[#allocation59_spill] sm:$0xff] %v6268_v49  ;;  %v2420_v54 = vrot.slane %v2406_v41, %v5423_v6  ;;  %v924_v62 = vrot.slane %v910_v36, %v5487_v44  ;;  %v1630_v37 = vcombine.high %v5600_v43, %v5686_v24  ;;  %v1646_v35 = vcombine.high %v5678_v50, %v5696_v4  ;;  %v8775_v50 = vld [vmem:[#allocation74_spill] sm:$0xff]  ;;  %v8776_v4 = vld [vmem:[#allocation72_spill] sm:$0xff] }
 0x187   :  { %8770 = vst [vmem:[#allocation58_spill] sm:$0xff] %v6278_v46  ;;  %583 = vrot.lane.b32.xlu1 %v5825_v7, %s5050_s6  ;;  %v925_v15 = vcombine.low %v860_v20, %v876_v29  ;;  %v926_v56 = vcombine.high %v860_v20, %v876_v29  ;;  %v2460_v29 = vrot.slane %v2446_v23, %v5487_v44  ;;  %v8836_v19 = vld [vmem:[#allocation48_spill] sm:$0xff] }
 0x188   :  { %v2461_v36 = vcombine.low %v2404_v34, %v2420_v54  ;;  %v6305_v40 = vpop.permute.xlu1 %422  ;;  %v3082_v24 = vcombine.high %v8776_v4, %v8775_v50  ;;  %v942_v23 = vcombine.high %v5828_v16, %v5809_v18  ;;  %v943_v20 = vcombine.low %v6206_v45, %v924_v62 }
 0x189   :  { %587 = vrot.lane.b32.xlu0 %v5851_v47, %s5050_s6  ;;  %v6318_v54 = vpop.permute.xlu0 %424  ;;  %v6328_v34 = vrot.slane %v925_v15, %v5487_v44  ;;  %v6331_v43 = vrot.slane %v926_v56, %v5487_v44  ;;  %v944_v50 = vcombine.high %v6206_v45, %v924_v62  ;;  %v1644_v59 = vrot.slane %v1630_v37, %v5423_v6  ;;  %v8778_v45 = vld [vmem:[#allocation99_spill] sm:$0xff] }
 0x18a   :  { %v6337_v41 = vrot.slane %v2461_v36, %v5487_v44  ;;  %v3066_v18 = vcombine.high %v5626_v25, %v5693_v57  ;;  %v1660_v12 = vrot.slane %v1646_v35, %v5423_v6  ;;  %v966_v62 = vcombine.high %v8709_v58, %v5752_v51 }
 0x18b   :  { %591 = vrot.lane.b32.xlu1 %v8767_v0, %s5050_s6  ;;  %v2470_v56 = vcombine.high %v8778_v45, %v5831_v5  ;;  %v2471_v36 = vcombine.low %v6258_v21, %v2460_v29  ;;  %v3096_v37 = vrot.slane %v3082_v24, %v5423_v6  ;;  %v8780_v57 = vcombine.high %v8699_v3, %v8698_v11  ;;  %v8784_v11 = vld [vmem:[#allocation104_spill] sm:$0xff] }
 0x18c   :  { %v6345_v15 = vpop.permute.xlu1 %426  ;;  %v8781_v51 = vcombine.low %v6007_v13, %v6016_v42  ;;  %v8437_v35 = vmov 0.0   ;;  %v950_v24 = vcombine.high %v8712_v30, %v5721_v10  ;;  %v8782_v5 = vcombine.high %v6007_v13, %v6016_v42 }
 0x18d   :  { %619 = vrot.lane.b32.xlu0 %v5825_v7, %s5051_s7  ;;  %8777 = vst [vmem:[#allocation71_spill] sm:$0xff] %v6345_v15  ;;  %v6353_v4 = vpop.permute.xlu0 %428  ;;  %v6360_v25 = vpack.i.bf16 %v942_v23, %v8780_v57  ;;  %4443 = vmatprep.mubr.f32.mxu0 %v8437_v35  ;;  %v945_v23 = vcombine.low %v6241_v53, %v6328_v34 }
 0x18e   :  { %8779 = vst [vmem:[#allocation66_spill] sm:$0xff] %v6353_v4  ;;  %v6365_v58 = vpack.i.bf16 %v943_v20, %v8781_v51  ;;  %v6373_v45 = vpack.i.bf16 %v944_v50, %v8782_v5  ;;  %v2472_v57 = vcombine.high %v6258_v21, %v2460_v29  ;;  %4491 = vmatprep.mubr.f32.mxu1 %v8437_v35  ;;  %v8783_v51 = vld [vmem:[#allocation102_spill] sm:$0xff]  ;;  %v8788_v29 = vld [vmem:[#allocation105_spill] sm:$0xff] }
 0x18f   :  { %623 = vrot.lane.b32.xlu1 %v5851_v47, %s5051_s7  ;;  %v3080_v20 = vrot.slane %v3066_v18, %v5423_v6  ;;  %v1694_v3 = vcombine.high %v8784_v11, %v8783_v51  ;;  %v1709_v16 = vcombine.low %v1644_v59, %v1660_v12  ;;  %v2492_v30 = vcombine.high %v8710_v52, %v5774_v55  ;;  %v8789_v55 = vld [vmem:[#allocation16_spill] sm:$0xff]  ;;  %v8790_v51 = vld [vmem:[#allocation78_spill] sm:$0xff]  ;;  %v8791_v35 = vld [vmem:[#allocation9_spill] sm:$0xff] }
 0x190   :  { %v6386_v5 = vpop.permute.xlu1 %430  ;;  %v1710_v10 = vcombine.high %v1644_v59, %v1660_v12  ;;  %v980_v13 = vrot.slane %v966_v62, %v5423_v6  ;;  %v8786_v42 = vcombine.high %v8701_v28, %v8700_v22  ;;  %v8787_v18 = vcombine.low %v6019_v61, %v6026_v31  ;;  %v8792_v12 = vld [vmem:[#allocation95_spill] sm:$0xff] }
 0x191   :  { %627 = vrot.lane.b32.xlu0 %v8767_v0, %s5051_s7  ;;  %8785 = vst [vmem:[#allocation10_spill] sm:$0xff] %v6386_v5  ;;  %v3130_v52 = vcombine.high %v8789_v55, %v8788_v29  ;;  %v3145_v50 = vcombine.low %v3080_v20, %v3096_v37  ;;  %v2476_v49 = vcombine.high %v8791_v35, %v8790_v51  ;;  %v8793_v59 = vld [vmem:[#allocation15_spill] sm:$0xff]  ;;  %v6405_v38 = vpop.permute.xlu0 %432  ;;  %v8800_v51 = vld [vmem:[#allocation97_spill] sm:$0xff] }
 0x192   :  { %v6392_v21 = vpack.i.bf16 %v2470_v56, %v8786_v42  ;;  %v6397_v11 = vpack.i.bf16 %v2471_v36, %v8787_v18  ;;  %v1678_v62 = vcombine.high %v8793_v59, %v8792_v12  ;;  %v964_v56 = vrot.slane %v950_v24, %v5423_v6  ;;  %v8794_v42 = vld [vmem:[#allocation25_spill] sm:$0xff]  ;;  %v8795_v36 = vld [vmem:[#allocation26_spill] sm:$0xff] }
 0x193   :  { %655 = vrot.lane.b32.xlu1 %v5825_v7, %s5052_s8  ;;  %v8796_v18 = vcombine.low %v8794_v42, %v8795_v36  ;;  %v8797_v37 = vcombine.high %v6019_v61, %v6026_v31  ;;  %v946_v35 = vcombine.high %v6241_v53, %v6328_v34  ;;  %v6423_v29 = vrot.slane %v1694_v3, %v5487_v44  ;;  %v8803_v53 = vld [vmem:[#allocation27_spill] sm:$0xff]  ;;  %v8804_v34 = vld [vmem:[#allocation44_spill] sm:$0xff] }
 0x194   :  { %v6426_v55 = vrot.slane %v1709_v16, %v5487_v44  ;;  %v2506_v24 = vrot.slane %v2492_v30, %v5423_v6  ;;  %v2473_v61 = vcombine.low %v6265_v1, %v6337_v41  ;;  %v6436_v31 = vrot.slane %v1710_v10, %v5487_v44  ;;  %v8808_v10 = vld [vmem:[#allocation49_spill] sm:$0xff]  ;;  %v8847_v7 = vld [vmem:[#allocation11_spill] sm:$0xff] }
 0x195   :  { %v6413_v22 = vpack.i.bf16 %v945_v23, %v8796_v18  ;;  %v6418_v20 = vpack.i.bf16 %v2472_v57, %v8797_v37  ;;  %8798 = vst [vmem:[#allocation68_spill] sm:$0xff] %v6423_v29  ;;  %657 = vrot.lane.b32.xlu0 %v8800_v51, %s5052_s8  ;;  %v6431_v23 = vpop.permute.xlu1 %434  ;;  %v1014_v3 = vcombine.high %v8804_v34, %v8803_v53  ;;  %v6450_v37 = vpop.permute.xlu0 %448  ;;  %v8809_v53 = vld [vmem:[#allocation47_spill] sm:$0xff]  ;;  %v8849_v29 = vld [vmem:[#allocation46_spill] sm:$0xff] }
 0x196   :  { %8799 = vst [vmem:[#allocation8_spill] sm:$0xff] %v6426_v55  ;;  %8801 = vst [vmem:[#allocation69_spill] sm:$0xff] %v6431_v23  ;;  %v1029_v57 = vcombine.low %v964_v56, %v980_v13  ;;  %v1030_v12 = vcombine.high %v964_v56, %v980_v13  ;;  %v6441_v16 = vrot.slane %v3130_v52, %v5487_v44  ;;  %v8810_v13 = vld [vmem:[#allocation21_spill] sm:$0xff]  ;;  %v8811_v56 = vld [vmem:[#allocation111_spill] sm:$0xff] }
 0x197   :  { %8802 = vst [vmem:[#allocation80_spill] sm:$0xff] %v6436_v31  ;;  %v6444_v30 = vrot.slane %v3145_v50, %v5487_v44  ;;  %v2490_v59 = vrot.slane %v2476_v49, %v5423_v6  ;;  %v6448_v18 = vrot.slane %v1678_v62, %v5423_v6  ;;  %661 = vrot.lane.b32.xlu1 %v5918_v26, %s5052_s8  ;;  %v8835_v31 = vld [vmem:[#allocation42_spill] sm:$0xff] }
 0x198   :  { %8805 = vst [vmem:[#allocation77_spill] sm:$0xff] %v6441_v16  ;;  %v2540_v34 = vcombine.high %v8809_v53, %v8808_v10  ;;  %v998_v52 = vcombine.high %v8811_v56, %v8810_v13  ;;  %v8812_v50 = vcombine.high %v8794_v42, %v8795_v36  ;;  %v947_v49 = vcombine.low %v6255_v60, %v6331_v43  ;;  %v8818_v56 = vld [vmem:[#allocation85_spill] sm:$0xff]  ;;  %v8848_v26 = vld [vmem:[#allocation114_spill] sm:$0xff] }
 0x199   :  { %8806 = vst [vmem:[#allocation83_spill] sm:$0xff] %v6444_v30  ;;  %8807 = vst [vmem:[#allocation81_spill] sm:$0xff] %v6448_v18  ;;  %v2555_v62 = vcombine.low %v2490_v59, %v2506_v24  ;;  %659 = vrot.lane.b32.xlu0 %v5851_v47, %s5052_s8  ;;  %v6467_v46 = vpop.permute.xlu1 %450  ;;  %v8815_v10 = vcombine.low %v8813_v14, %v8814_v39  ;;  %v2474_v13 = vcombine.high %v6265_v1, %v6337_v41  ;;  %v8817_v59 = vld [vmem:[#allocation18_spill] sm:$0xff]  ;;  %v8821_v1 = vld [vmem:[#allocation96_spill] sm:$0xff] }
 0x19a   :  { %v6461_v28 = vpack.i.bf16 %v946_v35, %v8812_v50  ;;  %v948_v42 = vcombine.high %v6255_v60, %v6331_v43  ;;  %v6479_v36 = vrot.slane %v1014_v3, %v5487_v44  ;;  %v6482_v35 = vrot.slane %v1029_v57, %v5487_v44  ;;  %v8823_v60 = vld [vmem:[#allocation14_spill] sm:$0xff]  ;;  %v8824_v3 = vld [vmem:[#allocation31_spill] sm:$0xff]  ;;  %v6497_v57 = vpop.permute.xlu0 %452 }
 0x19b   :  { %v6472_v53 = vpack.i.bf16 %v2473_v61, %v8815_v10  ;;  %v6485_v24 = vrot.slane %v1030_v12, %v5487_v44  ;;  %v982_v50 = vcombine.high %v8818_v56, %v8817_v59  ;;  %v8819_v61 = vld [vmem:[#allocation101_spill] sm:$0xff]  ;;  %v8820_v10 = vld [vmem:[#allocation94_spill] sm:$0xff]  ;;  %v1741_v41 = vcombine.low %v8821_v1, %v6448_v18  ;;  %663 = vrot.lane.b32.xlu1 %v8767_v0, %s5052_s8 }
 0x19c   :  { %v1726_v63 = vcombine.high %v8820_v10, %v8819_v61  ;;  %v3114_v43 = vcombine.high %v8823_v60, %v8822_v9  ;;  %v2508_v16 = vcombine.high %v8825_v27, %v8824_v3  ;;  %v6502_v12 = vrot.slane %v2540_v34, %v5487_v44  ;;  %v8826_v61 = vld [vmem:[#allocation30_spill] sm:$0xff]  ;;  %v8827_v10 = vld [vmem:[#allocation35_spill] sm:$0xff]  ;;  %v8845_v0 = vld [vmem:[#allocation109_spill] sm:$0xff] }
 0x19d   :  { %8816 = vst [vmem:[#allocation74_spill] sm:$0xff] %v6485_v24  ;;  %v6505_v59 = vrot.slane %v998_v52, %v5423_v6  ;;  %v1101_v56 = vcombine.low %v6250_v2, %v6450_v37  ;;  %v8828_v9 = vcombine.low %v8826_v61, %v8827_v10  ;;  %v6515_v27 = vrot.slane %v2555_v62, %v5487_v44  ;;  %v8829_v3 = vld [vmem:[#allocation50_spill] sm:$0xff]  ;;  %v6521_v34 = vpop.permute.xlu1 %454  ;;  %v8843_v62 = vld [vmem:[#allocation73_spill] sm:$0xff] }
 0x19e   :  { %v8830_v30 = vld [vmem:[#allocation34_spill] sm:$0xff]  ;;  %4665 = vrot.lane.b32.xlu0 %v6360_v25, %s5056_s9  ;;  %v8831_v52 = vcombine.high %v8813_v14, %v8814_v39  ;;  %v1085_v33 = vcombine.low %v8836_v19, %v6287_v8  ;;  %v6541_v14 = vrot.slane %v1726_v63, %v5487_v44  ;;  %v6544_v39 = vrot.slane %v1741_v41, %v5487_v44 }
 0x19f   :  { %v6512_v60 = vpack.i.bf16 %v947_v49, %v8828_v9  ;;  %v2524_v48 = vcombine.high %v8830_v30, %v8829_v3  ;;  %v8832_v49 = vcombine.high %v8826_v61, %v8827_v10  ;;  %v996_v30 = vrot.slane %v982_v50, %v5423_v6  ;;  %v8834_v3 = vld [vmem:[#allocation13_spill] sm:$0xff]  ;;  %v6550_v61 = vpop.permute.xlu0 %456  ;;  %4670 = vrot.lane.b32.xlu1 %v6365_v58, %s5057_s10  ;;  %v8840_v10 = vld [vmem:[#allocation56_spill] sm:$0xff] }
 0x1a0   :  { %v6526_v17 = vpack.i.bf16 %v2474_v13, %v8831_v52  ;;  %v1046_v25 = vcombine.high %v8835_v31, %v8834_v3  ;;  %8837 = vst [vmem:[#allocation102_spill] sm:$0xff] %v6541_v14  ;;  %8838 = vst [vmem:[#allocation104_spill] sm:$0xff] %v6544_v39  ;;  %v6547_v13 = vrot.slane %v3114_v43, %v5423_v6  ;;  %v8841_v52 = vld [vmem:[#allocation52_spill] sm:$0xff]  ;;  %v8850_v14 = vld [vmem:[#allocation33_spill] sm:$0xff] }
 0x1a1   :  { %v6531_v9 = vpack.i.bf16 %v948_v42, %v8832_v49  ;;  %v2522_v42 = vrot.slane %v2508_v16, %v5423_v6  ;;  %v1061_v31 = vcombine.low %v996_v30, %v6505_v59  ;;  %v1062_v50 = vcombine.high %v996_v30, %v6505_v59  ;;  %v8842_v49 = vld [vmem:[#allocation103_spill] sm:$0xff]  ;;  %v6568_v59 = vpop.permute.xlu1 %458  ;;  %v8844_v30 = vld [vmem:[#allocation45_spill] sm:$0xff] }
 0x1a2   :  { %8839 = vst [vmem:[#allocation105_spill] sm:$0xff] %v6547_v13  ;;  %v1109_v63 = vrot.slane %v1101_v56, %v5423_v6  ;;  %v1117_v41 = vcombine.low %v6497_v57, %v8840_v10  ;;  %v2538_v43 = vrot.slane %v2524_v48, %v5423_v6  ;;  %v1765_v16 = vcombine.low %v8842_v49, %v8841_v52  ;;  %v8846_v49 = vld [vmem:[#allocation60_spill] sm:$0xff]  ;;  %v8852_v13 = vld [vmem:[#allocation75_spill] sm:$0xff] }
 0x1a3   :  { %8833 = vst [vmem:[#allocation72_spill] sm:$0xff] %v6531_v9  ;;  %v2609_v3 = vcombine.low %v6273_v32, %v6467_v46  ;;  %v2625_v58 = vcombine.low %v6521_v34, %v8843_v62  ;;  %4675 = vrot.lane.b32.xlu0 %v6392_v21, %s5056_s9  ;;  %v6571_v56 = vrot.slane %v1046_v25, %v5487_v44  ;;  %v8851_v21 = vld [vmem:[#allocation84_spill] sm:$0xff]  ;;  %v6586_v24 = vpop.permute.xlu0 %460 }
 0x1a4   :  { %v1781_v48 = vcombine.low %v8845_v0, %v8844_v30  ;;  %v1093_v47 = vrot.slane %v1085_v33, %v5423_v6  ;;  %v1133_v52 = vcombine.low %v6550_v61, %v8846_v49  ;;  %v2564_v51 = vcombine.high %v8848_v26, %v8847_v7  ;;  %8853 = vst [vmem:[#allocation16_spill] sm:$0xff] %v6586_v24  ;;  %v8854_v33 = vld [vmem:[#allocation57_spill] sm:$0xff]  ;;  %v8855_v0 = vld [vmem:[#allocation107_spill] sm:$0xff] }
 0x1a5   :  { %v3199_v55 = vcombine.low %v8850_v14, %v8849_v29  ;;  %v2593_v39 = vcombine.low %v8851_v21, %v6305_v40  ;;  %v2641_v25 = vcombine.low %v6568_v59, %v8852_v13  ;;  %4680 = vrot.lane.b32.xlu1 %v6373_v45, %s5058_s11  ;;  %v3183_v30 = vcombine.low %v8855_v0, %v8854_v33  ;;  %v6605_v45 = vpop.permute.xlu1 %462 }
 0x1a6   :  { %v1149_v18 = vcombine.low %v1093_v47, %v1109_v63  ;;  %v1125_v7 = vrot.slane %v1117_v41, %v5423_v6  ;;  %v1141_v26 = vrot.slane %v1133_v52, %v5423_v6  ;;  %v1150_v14 = vcombine.high %v1093_v47, %v1109_v63  ;;  %8856 = vst [vmem:[#allocation78_spill] sm:$0xff] %v6605_v45  ;;  %v8867_v45 = vld [vmem:[#allocation82_spill] sm:$0xff] }
 0x1a7   :  { %v6595_v29 = vrot.slane %v2609_v3, %v5423_v6  ;;  %v6598_v1 = vrot.slane %v2625_v58, %v5423_v6  ;;  %v6601_v24 = vrot.slane %v2641_v25, %v5423_v6  ;;  %4685 = vrot.lane.b32.xlu0 %v6397_v11, %s5057_s10  ;;  %v2579_v0 = vcombine.low %v2522_v42, %v2538_v43  ;;  %v6621_v25 = vpop.permute.xlu0 %533 }
 0x1a8   :  { %v6608_v41 = vrot.slane %v1781_v48, %v5423_v6  ;;  %v1181_v52 = vcombine.low %v1125_v7, %v1141_v26  ;;  %v1182_v47 = vcombine.high %v1125_v7, %v1141_v26  ;;  %v6611_v63 = vrot.slane %v1061_v31, %v5487_v44 }
 0x1a9   :  { %v6614_v3 = vrot.slane %v3199_v55, %v5423_v6  ;;  %v6617_v58 = vrot.slane %v2593_v39, %v5423_v6  ;;  %v2681_v11 = vcombine.low %v6598_v1, %v6601_v24  ;;  %4690 = vrot.lane.b32.xlu1 %v6413_v22, %s5059_s12  ;;  %v6626_v42 = vrot.slane %v1765_v16, %v5423_v6 }
 0x1aa   :  { %8857 = vst [vmem:[#allocation9_spill] sm:$0xff] %v6608_v41  ;;  %v6629_v31 = vrot.slane %v1149_v18, %v5487_v44  ;;  %v6632_v55 = vrot.slane %v1181_v52, %v5487_v44  ;;  %v6635_v39 = vrot.slane %v1182_v47, %v5487_v44  ;;  %v6638_v43 = vrot.slane %v1062_v50, %v5487_v44  ;;  %v6650_v18 = vpop.permute.xlu1 %537  ;;  %v8865_v47 = vld [vmem:[#allocation79_spill] sm:$0xff] }
 0x1ab   :  { %8858 = vst [vmem:[#allocation95_spill] sm:$0xff] %v6614_v3  ;;  %8859 = vst [vmem:[#allocation15_spill] sm:$0xff] %v6626_v42  ;;  %v6641_v48 = vrot.slane %v3183_v30, %v5423_v6  ;;  %v6644_v22 = vrot.slane %v1150_v14, %v5487_v44  ;;  %v2657_v16 = vcombine.low %v6617_v58, %v6595_v29  ;;  %4695 = vrot.lane.b32.xlu0 %v6418_v20, %s5058_s11  ;;  %v6667_v20 = vpop.permute.xlu0 %541 }
 0x1ac   :  { %8860 = vst [vmem:[#allocation25_spill] sm:$0xff] %v6629_v31  ;;  %8861 = vst [vmem:[#allocation26_spill] sm:$0xff] %v6632_v55  ;;  %v6653_v7 = vrot.slane %v2564_v51, %v5487_v44  ;;  %v6656_v50 = vrot.slane %v2579_v0, %v5487_v44  ;;  %v1829_v30 = vcombine.low %v6626_v42, %v6608_v41  ;;  %v8866_v51 = vld [vmem:[#allocation39_spill] sm:$0xff] }
 0x1ad   :  { %8862 = vst [vmem:[#allocation27_spill] sm:$0xff] %v6638_v43  ;;  %8863 = vst [vmem:[#allocation44_spill] sm:$0xff] %v6641_v48  ;;  %v1214_v14 = vcombine.high %v6629_v31, %v6632_v55  ;;  %v3247_v26 = vcombine.low %v6641_v48, %v6614_v3  ;;  %v6665_v52 = vrot.slane %v2681_v11, %v5487_v44  ;;  %v8868_v43 = vld [vmem:[#allocation54_spill] sm:$0xff] }
 0x1ae   :  { %v1078_v33 = vcombine.high %v8866_v51, %v8865_v47  ;;  %v1215_v0 = vcombine.low %v6644_v22, %v6635_v39  ;;  %v1134_v42 = vcombine.high %v6550_v61, %v8846_v49  ;;  %v1079_v41 = vcombine.low %v6479_v36, %v6571_v56  ;;  %v8869_v47 = vld [vmem:[#allocation36_spill] sm:$0xff]  ;;  %v6690_v49 = vpop.permute.xlu1 %569 }
 0x1af   :  { %8864 = vst [vmem:[#allocation49_spill] sm:$0xff] %v6665_v52  ;;  %v2588_v48 = vcombine.high %v8868_v43, %v8867_v45  ;;  %v1080_v11 = vcombine.high %v6479_v36, %v6571_v56  ;;  %v1086_v3 = vcombine.high %v8836_v19, %v6287_v8  ;;  %v1797_v51 = vcombine.low %v8869_v47, %v6353_v4 }
 0x1b0   :  { %v6686_v9 = vrot.slane %v2657_v16, %v5487_v44  ;;  %4705 = vrot.lane.b32.xlu0 %v6461_v28, %s5060_s13  ;;  %v4699_v61 = vpack.i.bf16 %v1214_v14, %v1078_v33  ;;  %v6693_v45 = vrot.slane %v1829_v30, %v5487_v44  ;;  %v1102_v36 = vcombine.high %v6250_v2, %v6450_v37  ;;  %v6705_v28 = vpop.permute.xlu0 %573 }
 0x1b1   :  { %v1118_v8 = vcombine.high %v6497_v57, %v8840_v10  ;;  %v2682_v19 = vcombine.high %v6598_v1, %v6601_v24  ;;  %v6702_v56 = vrot.slane %v3247_v26, %v5487_v44  ;;  %v4714_v33 = vpack.i.bf16 %v1215_v0, %v1079_v41  ;;  %v8874_v26 = vld [vmem:[#allocation64_spill] sm:$0xff] }
 0x1b2   :  { %8870 = vst [vmem:[#allocation47_spill] sm:$0xff] %v6686_v9  ;;  %8871 = vst [vmem:[#allocation21_spill] sm:$0xff] %v6693_v45  ;;  %4700 = vrot.lane.b32.xlu1 %v4699_v61, %s5056_s9  ;;  %v2706_v16 = vcombine.high %v6686_v9, %v6665_v52  ;;  %v2589_v2 = vcombine.low %v6502_v12, %v6653_v7  ;;  %v2658_v37 = vcombine.high %v6617_v58, %v6595_v29  ;;  %v6729_v29 = vpop.permute.xlu1 %577  ;;  %v8881_v52 = vld [vmem:[#allocation5_spill] sm:$0xff] }
 0x1b3   :  { %8872 = vst [vmem:[#allocation111_spill] sm:$0xff] %v6702_v56  ;;  %v6714_v57 = vrot.slane %v1134_v42, %v5423_v6  ;;  %v6721_v10 = vrot.slane %v1086_v3, %v5423_v6  ;;  %v6724_v41 = vrot.slane %v1797_v51, %v5423_v6  ;;  %v1813_v30 = vcombine.low %v6318_v54, %v6405_v38 }
 0x1b4   :  { %4715 = vrot.lane.b32.xlu0 %v4714_v33, %s5057_s10  ;;  %v6734_v42 = vrot.slane %v1102_v36, %v5423_v6  ;;  %v6737_v14 = vrot.slane %v1118_v8, %v5423_v6  ;;  %v6740_v3 = vrot.slane %v2682_v19, %v5487_v44  ;;  %v1221_v51 = vcombine.low %v8874_v26, %v6650_v18  ;;  %v6750_v36 = vpop.permute.xlu0 %605  ;;  %v8875_v19 = vld [vmem:[#allocation43_spill] sm:$0xff] }
 0x1b5   :  { %8873 = vst [vmem:[#allocation23_spill] sm:$0xff] %v6724_v41  ;;  %v1237_v0 = vcombine.low %v6621_v25, %v6667_v20  ;;  %v1253_v61 = vcombine.low %v6690_v49, %v6729_v29  ;;  %v4724_v33 = vpack.i.bf16 %v2706_v16, %v2588_v48  ;;  %v1216_v8 = vcombine.high %v6644_v22, %v6635_v39 }
 0x1b6   :  { %4710 = vrot.lane.b32.xlu1 %v6472_v53, %s5059_s12  ;;  %v3215_v58 = vcombine.low %v8875_v19, %v6386_v5  ;;  %v2672_v1 = vrot.slane %v2658_v37, %v5487_v44  ;;  %v1197_v24 = vcombine.low %v6737_v14, %v6714_v57  ;;  %v1269_v53 = vcombine.low %v6705_v28, %v6750_v36  ;;  %v6772_v16 = vpop.permute.xlu1 %609 }
 0x1b7   :  { %v6762_v43 = vrot.slane %v1813_v30, %v5423_v6  ;;  %v3231_v48 = vcombine.low %v6345_v15, %v6431_v23  ;;  %v2610_v39 = vcombine.high %v6273_v32, %v6467_v46  ;;  %v6769_v22 = vrot.slane %v1253_v61, %v5423_v6 }
 0x1b8   :  { %4725 = vrot.lane.b32.xlu0 %v4724_v33, %s5056_s9  ;;  %v1165_v37 = vcombine.low %v6721_v10, %v6734_v42  ;;  %v2642_v30 = vcombine.high %v6568_v59, %v8852_v13  ;;  %v6779_v19 = vrot.slane %v1269_v53, %v5423_v6  ;;  %v2707_v5 = vcombine.low %v2672_v1, %v6740_v3  ;;  %v6790_v61 = vpop.permute.xlu0 %613 }
 0x1b9   :  { %8876 = vst [vmem:[#allocation19_spill] sm:$0xff] %v6762_v43  ;;  %v6783_v32 = vrot.slane %v1221_v51, %v5423_v6  ;;  %v6786_v46 = vrot.slane %v1237_v0, %v5423_v6  ;;  %v4734_v33 = vpack.i.bf16 %v1216_v8, %v1080_v11  ;;  %v2594_v59 = vcombine.high %v8851_v21, %v6305_v40 }
 0x1ba   :  { %4720 = vrot.lane.b32.xlu1 %v6512_v60, %s5061_s14  ;;  %v2626_v51 = vcombine.high %v6521_v34, %v8843_v62  ;;  %v1205_v53 = vrot.slane %v1197_v24, %v5487_v44  ;;  %v6802_v15 = vrot.slane %v3215_v58, %v5423_v6  ;;  %v1861_v60 = vcombine.low %v6724_v41, %v6762_v43  ;;  %v6812_v34 = vpop.permute.xlu1 %641 }
 0x1bb   :  { %v6807_v11 = vrot.slane %v3231_v48, %v5423_v6  ;;  %v1317_v40 = vcombine.low %v6769_v22, %v6779_v19  ;;  %v1173_v62 = vrot.slane %v1165_v37, %v5487_v44  ;;  %v2624_v21 = vrot.slane %v2610_v39, %v5423_v6 }
 0x1bc   :  { %8877 = vst [vmem:[#allocation18_spill] sm:$0xff] %v6802_v15  ;;  %4735 = vrot.lane.b32.xlu0 %v4734_v33, %s5058_s11  ;;  %v2656_v24 = vrot.slane %v2642_v30, %v5423_v6  ;;  %v4744_v58 = vpack.i.bf16 %v2707_v5, %v2589_v2  ;;  %v1285_v8 = vcombine.low %v6783_v32, %v6786_v46  ;;  %v6823_v13 = vpop.permute.xlu0 %645 }
 0x1bd   :  { %8878 = vst [vmem:[#allocation85_spill] sm:$0xff] %v6807_v11  ;;  %v1357_v48 = vcombine.low %v6772_v16, %v6812_v34  ;;  %v2708_v33 = vcombine.high %v2672_v1, %v6740_v3  ;;  %v2608_v39 = vrot.slane %v2594_v59, %v5423_v6  ;;  %v2640_v5 = vrot.slane %v2626_v51, %v5423_v6 }
 0x1be   :  { %4730 = vrot.lane.b32.xlu1 %v6526_v17, %s5060_s13  ;;  %v1373_v2 = vcombine.low %v6790_v61, %v6823_v13  ;;  %v1217_v30 = vcombine.low %v1173_v62, %v1205_v53  ;;  %v6833_v17 = vrot.slane %v1861_v60, %v5487_v44  ;;  %v3271_v0 = vcombine.low %v6802_v15, %v6807_v11  ;;  %v6842_v3 = vpop.permute.xlu1 %649  ;;  %v8906_v11 = vld [vmem:[#allocation17_spill] sm:$0xff] }
 0x1bf   :  { %v6838_v55 = vrot.slane %v1317_v40, %v5487_v44  ;;  %v1365_v1 = vrot.slane %v1357_v48, %v5423_v6  ;;  %v2673_v59 = vcombine.low %v2608_v39, %v2624_v21  ;;  %v2697_v51 = vcombine.low %v2640_v5, %v2656_v24  ;;  %v8883_v48 = vld [vmem:[#allocation72_spill] sm:$0xff] }
 0x1c0   :  { %8879 = vst [vmem:[#allocation101_spill] sm:$0xff] %v6833_v17  ;;  %4745 = vrot.lane.b32.xlu0 %v4744_v58, %s5057_s10  ;;  %v1381_v37 = vrot.slane %v1373_v2, %v5423_v6  ;;  %v1389_v60 = vcombine.low %v6842_v3, %v8881_v52  ;;  %v6848_v9 = vrot.slane %v1285_v8, %v5487_v44  ;;  %v6854_v58 = vpop.permute.xlu0 %535 }
 0x1c1   :  { %8880 = vst [vmem:[#allocation94_spill] sm:$0xff] %v6838_v55  ;;  %v1318_v40 = vcombine.high %v6769_v22, %v6779_v19  ;;  %v8884_v21 = vcombine.high %v6502_v12, %v6653_v7  ;;  %v1218_v39 = vcombine.high %v1173_v62, %v1205_v53  ;;  %v1198_v5 = vcombine.high %v6737_v14, %v6714_v57  ;;  %v8887_v62 = vld [vmem:[#allocation24_spill] sm:$0xff]  ;;  %v8900_v12 = vld [vmem:[#allocation105_spill] sm:$0xff] }
 0x1c2   :  { %8882 = vst [vmem:[#allocation100_spill] sm:$0xff] %v6848_v9  ;;  %4740 = vrot.lane.b32.xlu1 %v8883_v48, %s5062_s15  ;;  %v1286_v8 = vcombine.high %v6783_v32, %v6786_v46  ;;  %v1421_v2 = vcombine.low %v1365_v1, %v1381_v37  ;;  %v8885_v19 = vcombine.low %v6482_v35, %v6611_v63  ;;  %v6868_v15 = vpop.permute.xlu1 %539 }
 0x1c3   :  { %v4754_v24 = vpack.i.bf16 %v2708_v33, %v8884_v21  ;;  %v1422_v31 = vcombine.high %v1365_v1, %v1381_v37  ;;  %v1397_v48 = vrot.slane %v1389_v60, %v5423_v6  ;;  %v6875_v57 = vrot.slane %v3271_v0, %v5487_v44 }
 0x1c4   :  { %v4749_v22 = vpack.i.bf16 %v1217_v30, %v8885_v19  ;;  %v1166_v14 = vcombine.high %v6721_v10, %v6734_v42  ;;  %v6880_v32 = vrot.slane %v2673_v59, %v5487_v44  ;;  %v6883_v46 = vrot.slane %v2697_v51, %v5487_v44  ;;  %v6891_v0 = vpop.permute.xlu0 %543 }
 0x1c5   :  { %4755 = vrot.lane.b32.xlu0 %v4754_v24, %s5058_s11  ;;  %8886 = vst [vmem:[#allocation14_spill] sm:$0xff] %v6875_v57  ;;  %v6886_v53 = vrot.slane %v1318_v40, %v5487_v44  ;;  %v1453_v33 = vcombine.low %v1397_v48, %v8887_v62  ;;  %v1454_v37 = vcombine.high %v1397_v48, %v8887_v62 }
 0x1c6   :  { %4750 = vrot.lane.b32.xlu1 %v4749_v22, %s5059_s12  ;;  %v8888_v10 = vcombine.high %v6482_v35, %v6611_v63  ;;  %v6897_v30 = vrot.slane %v1198_v5, %v5487_v44  ;;  %v1222_v1 = vcombine.high %v8874_v26, %v6650_v18  ;;  %v1238_v59 = vcombine.high %v6621_v25, %v6667_v20  ;;  %v6919_v18 = vpop.permute.xlu1 %571  ;;  %v8891_v5 = vld [vmem:[#allocation76_spill] sm:$0xff] }
 0x1c7   :  { %v6904_v51 = vrot.slane %v1286_v8, %v5487_v44  ;;  %v6907_v60 = vrot.slane %v1421_v2, %v5487_v44  ;;  %v6910_v40 = vrot.slane %v1422_v31, %v5487_v44  ;;  %v6913_v35 = vrot.slane %v1453_v33, %v5487_v44 }
 0x1c8   :  { %v4764_v42 = vpack.i.bf16 %v1218_v39, %v8888_v10  ;;  %v6916_v63 = vrot.slane %v1454_v37, %v5487_v44  ;;  %v1254_v25 = vcombine.high %v6690_v49, %v6729_v29  ;;  %v1270_v20 = vcombine.high %v6705_v28, %v6750_v36  ;;  %v6929_v21 = vpop.permute.xlu0 %575 }
 0x1c9   :  { %8889 = vst [vmem:[#allocation31_spill] sm:$0xff] %v6907_v60  ;;  %8890 = vst [vmem:[#allocation87_spill] sm:$0xff] %v6913_v35  ;;  %v1358_v31 = vcombine.high %v6772_v16, %v6812_v34  ;;  %v2709_v26 = vcombine.low %v6880_v32, %v6883_v46  ;;  %v1351_v24 = vcombine.low %v6904_v51, %v6886_v53 }
 0x1ca   :  { %4765 = vrot.lane.b32.xlu0 %v4764_v42, %s5060_s13  ;;  %v1487_v39 = vcombine.low %v6910_v40, %v6916_v63  ;;  %v1350_v49 = vcombine.high %v6848_v9, %v6838_v55  ;;  %v1486_v28 = vcombine.high %v6907_v60, %v6913_v35  ;;  %v1180_v29 = vrot.slane %v1166_v14, %v5487_v44  ;;  %v6951_v19 = vpop.permute.xlu1 %579  ;;  %v8904_v35 = vld [vmem:[#allocation104_spill] sm:$0xff] }
 0x1cb   :  { %v6941_v36 = vrot.slane %v1222_v1, %v5423_v6  ;;  %v1374_v16 = vcombine.high %v6790_v61, %v6823_v13  ;;  %v1390_v34 = vcombine.high %v6842_v3, %v8881_v52  ;;  %v2711_v8 = vcombine.low %v8891_v5, %v6868_v15 }
 0x1cc   :  { %v2727_v2 = vcombine.low %v6854_v58, %v6891_v0  ;;  %v4774_v22 = vpack.i.bf16 %v1487_v39, %v1351_v24  ;;  %v4759_v48 = vpack.i.bf16 %v1486_v28, %v1350_v49  ;;  %v6954_v14 = vrot.slane %v1238_v59, %v5423_v6  ;;  %v6971_v10 = vpop.permute.xlu0 %607  ;;  %v8893_v49 = vld [vmem:[#allocation96_spill] sm:$0xff]  ;;  %v8894_v28 = vld [vmem:[#allocation81_spill] sm:$0xff] }
 0x1cd   :  { %v2743_v62 = vcombine.low %v6919_v18, %v6951_v19  ;;  %v8892_v61 = vcombine.low %v6515_v27, %v6656_v50  ;;  %v1219_v13 = vcombine.low %v1180_v29, %v6897_v30  ;;  %v6963_v3 = vrot.slane %v1254_v25, %v5423_v6  ;;  %v8901_v24 = vld [vmem:[#allocation89_spill] sm:$0xff] }
 0x1ce   :  { %v6966_v33 = vrot.slane %v1270_v20, %v5423_v6  ;;  %v6969_v37 = vrot.slane %v1358_v31, %v5423_v6  ;;  %4775 = vrot.lane.b32.xlu0 %v4774_v22, %s5057_s10  ;;  %4760 = vrot.lane.b32.xlu1 %v4759_v48, %s5056_s9  ;;  %v6976_v42 = vrot.slane %v1374_v16, %v5423_v6  ;;  %v8896_v22 = vld [vmem:[#allocation106_spill] sm:$0xff] }
 0x1cf   :  { %v4769_v52 = vpack.i.bf16 %v2709_v26, %v8892_v61  ;;  %v6979_v1 = vrot.slane %v1390_v34, %v5423_v6  ;;  %v6982_v59 = vrot.slane %v2743_v62, %v5423_v6  ;;  %v2759_v25 = vcombine.low %v6929_v21, %v6971_v10  ;;  %v6992_v26 = vpop.permute.xlu1 %611  ;;  %v8898_v62 = vld [vmem:[#allocation27_spill] sm:$0xff]  ;;  %v8899_v61 = vld [vmem:[#allocation74_spill] sm:$0xff] }
 0x1d0   :  { %v6987_v20 = vrot.slane %v2711_v8, %v5423_v6  ;;  %v6990_v31 = vrot.slane %v2727_v2, %v5423_v6  ;;  %v8895_v16 = vcombine.high %v8893_v49, %v8894_v28  ;;  %v8897_v8 = vld [vmem:[#allocation88_spill] sm:$0xff]  ;;  %v1083_v7 = vcombine.low %v8899_v61, %v8898_v62  ;;  %v616_v9 = vpop.permute.xlu0 %615 }
 0x1d1   :  { %v3154_v48 = vcombine.high %v8897_v8, %v8896_v22  ;;  %v7007_v2 = vrot.slane %v2759_v25, %v5423_v6  ;;  %v1301_v39 = vcombine.low %v6941_v36, %v6954_v14  ;;  %v8902_v49 = vld [vmem:[#allocation28_spill] sm:$0xff]  ;;  %v2710_v56 = vcombine.high %v6880_v32, %v6883_v46  ;;  %v8907_v46 = vld [vmem:[#allocation102_spill] sm:$0xff] }
 0x1d2   :  { %v7002_v34 = vrot.slane %v8895_v16, %v5487_v44  ;;  %4770 = vrot.lane.b32.xlu1 %v4769_v52, %s5059_s12  ;;  %v8903_v28 = vld [vmem:[#allocation32_spill] sm:$0xff]  ;;  %v4779_v60 = vpack.i.bf16 %v1219_v13, %v1083_v7  ;;  %v1220_v55 = vcombine.high %v1180_v29, %v6897_v30  ;;  %v1333_v57 = vcombine.low %v6963_v3, %v6966_v33 }
 0x1d3   :  { %v8905_v22 = vld [vmem:[#allocation8_spill] sm:$0xff]  ;;  %v2799_v25 = vcombine.low %v6982_v59, %v7007_v2  ;;  %v1437_v52 = vcombine.low %v6969_v37, %v6976_v42  ;;  %v1469_v16 = vcombine.low %v6979_v1, %v8906_v11  ;;  %v2775_v8 = vcombine.low %v6987_v20, %v6990_v31  ;;  %v644_v41 = vpop.permute.xlu1 %643 }
 0x1d4   :  { %v2592_v7 = vcombine.high %v6515_v27, %v6656_v50  ;;  %v1084_v32 = vcombine.high %v8899_v61, %v8898_v62  ;;  %v8908_v30 = vld [vmem:[#allocation68_spill] sm:$0xff]  ;;  %v7042_v43 = vrot.slane %v3154_v48, %v5487_v44  ;;  %v1302_v45 = vcombine.high %v6941_v36, %v6954_v14  ;;  %v648_v50 = vpop.permute.xlu0 %647 }
 0x1d5   :  { %v7047_v17 = vrot.slane %v1301_v39, %v5487_v44  ;;  %v7050_v27 = vrot.slane %v2799_v25, %v5487_v44  ;;  %v2829_v62 = vcombine.low %v6992_v26, %v644_v41  ;;  %v2845_v61 = vcombine.low %v616_v9, %v648_v50 }
 0x1d6   :  { %4780 = vrot.lane.b32.xlu1 %v4779_v60, %s5061_s14  ;;  %v4789_v29 = vpack.i.bf16 %v2710_v56, %v2592_v7  ;;  %v4799_v13 = vpack.i.bf16 %v1220_v55, %v1084_v32  ;;  %v7055_v48 = vrot.slane %v1333_v57, %v5487_v44  ;;  %v7058_v23 = vrot.slane %v1437_v52, %v5487_v44  ;;  %v8912_v55 = vld [vmem:[#allocation6_spill] sm:$0xff] }
 0x1d7   :  { %8909 = vst [vmem:[#allocation30_spill] sm:$0xff] %v7047_v17  ;;  %8910 = vst [vmem:[#allocation35_spill] sm:$0xff] %v7050_v27  ;;  %v7061_v36 = vrot.slane %v1469_v16, %v5487_v44  ;;  %v7064_v14 = vrot.slane %v2775_v8, %v5487_v44  ;;  %v652_v39 = vpop.permute.xlu1 %651  ;;  %v2744_v60 = vcombine.high %v6919_v18, %v6951_v19 }
 0x1d8   :  { %v2760_v56 = vcombine.high %v6929_v21, %v6971_v10  ;;  %v2861_v25 = vcombine.low %v652_v39, %v8912_v55  ;;  %v2862_v57 = vcombine.high %v652_v39, %v8912_v55  ;;  %v2712_v52 = vcombine.high %v8891_v5, %v6868_v15  ;;  %v7075_v32 = vpop.permute.xlu0 %464  ;;  %v8915_v39 = vld [vmem:[#allocation90_spill] sm:$0xff] }
 0x1d9   :  { %8911 = vst [vmem:[#allocation50_spill] sm:$0xff] %v7064_v14  ;;  %v2830_v16 = vcombine.high %v6992_v26, %v644_v41  ;;  %v2846_v7 = vcombine.high %v616_v9, %v648_v50  ;;  %8913 = vst [vmem:[#allocation34_spill] sm:$0xff] %v7075_v32  ;;  %v2728_v21 = vcombine.high %v6854_v58, %v6891_v0 }
 0x1da   :  { %4790 = vrot.lane.b32.xlu1 %v4789_v29, %s5060_s13  ;;  %v7083_v19 = vrot.slane %v2829_v62, %v5423_v6  ;;  %v7086_v10 = vrot.slane %v2845_v61, %v5423_v6  ;;  %v7089_v15 = vrot.slane %v2861_v25, %v5423_v6  ;;  %v1334_v9 = vcombine.high %v6963_v3, %v6966_v33  ;;  %v8914_v62 = vld [vmem:[#allocation110_spill] sm:$0xff] }
 0x1db   :  { %v2876_v41 = vrot.slane %v2862_v57, %v5423_v6  ;;  %v7094_v5 = vpop.permute.xlu1 %468  ;;  %v1353_v26 = vcombine.low %v7047_v17, %v7055_v48  ;;  %v1489_v58 = vcombine.low %v7058_v23, %v7061_v36  ;;  %v1438_v0 = vcombine.high %v6969_v37, %v6976_v42 }
 0x1dc   :  { %v1470_v8 = vcombine.high %v6979_v1, %v8906_v11  ;;  %v2758_v29 = vrot.slane %v2744_v60, %v5423_v6  ;;  %v2774_v3 = vrot.slane %v2760_v56, %v5423_v6  ;;  %v2844_v33 = vrot.slane %v2830_v16, %v5423_v6  ;;  %v7112_v25 = vpop.permute.xlu0 %545  ;;  %v8916_v1 = vld [vmem:[#allocation16_spill] sm:$0xff]  ;;  %v8917_v56 = vld [vmem:[#allocation22_spill] sm:$0xff]  ;;  %v8918_v16 = vld [vmem:[#allocation97_spill] sm:$0xff] }
 0x1dd   :  { %v2860_v50 = vrot.slane %v2846_v7, %v5423_v6  ;;  %v2917_v61 = vcombine.low %v7089_v15, %v8914_v62  ;;  %v1917_v55 = vcombine.low %v7075_v32, %v8915_v39  ;;  %v2726_v11 = vrot.slane %v2712_v52, %v5423_v6  ;;  %v8919_v39 = vld [vmem:[#allocation65_spill] sm:$0xff] }
 0x1de   :  { %4800 = vrot.lane.b32.xlu1 %v4799_v13, %s5062_s15  ;;  %v2742_v37 = vrot.slane %v2728_v21, %v5423_v6  ;;  %v2893_v42 = vcombine.low %v7083_v19, %v7086_v10  ;;  %v1901_v60 = vcombine.low %v8916_v1, %v7094_v5  ;;  %v2933_v57 = vcombine.low %v2876_v41, %v8917_v56  ;;  %v8920_v13 = vld [vmem:[#allocation61_spill] sm:$0xff]  ;;  %v8924_v41 = vld [vmem:[#allocation108_spill] sm:$0xff] }
 0x1df   :  { %v1933_v7 = vcombine.low %v8918_v16, %v7112_v25  ;;  %v7124_v18 = vpop.permute.xlu1 %549  ;;  %v4809_v32 = vpack.i.bf16 %v1489_v58, %v1353_v26  ;;  %v8921_v47 = vcombine.high %v8919_v39, %v8920_v13  ;;  %v8922_v52 = vcombine.high %v8903_v28, %v8902_v49  ;;  %v8940_v28 = vld [vmem:[#allocation7_spill] sm:$0xff] }
 0x1e0   :  { %v7133_v4 = vrot.slane %v1302_v45, %v5487_v44  ;;  %v2815_v17 = vcombine.low %v2758_v29, %v2774_v3  ;;  %v7136_v1 = vrot.slane %v1901_v60, %v5423_v6  ;;  %v1949_v56 = vcombine.low %v8924_v41, %v7124_v18 }
 0x1e1   :  { %v4819_v21 = vpack.i.bf16 %v8922_v52, %v8921_v47  ;;  %v7141_v16 = vrot.slane %v1334_v9, %v5487_v44  ;;  %v2909_v26 = vcombine.low %v2844_v33, %v2860_v50  ;;  %v7144_v58 = vrot.slane %v2917_v61, %v5487_v44  ;;  %v7149_v47 = vpop.permute.xlu0 %466 }
 0x1e2   :  { %8923 = vst [vmem:[#allocation13_spill] sm:$0xff] %v7136_v1  ;;  %v7147_v13 = vrot.slane %v1917_v55, %v5423_v6  ;;  %8927 = vst [vmem:[#allocation56_spill] sm:$0xff] %v7149_v47  ;;  %4810 = vrot.lane.b32.xlu1 %v4809_v32, %s5059_s12  ;;  %v7153_v45 = vrot.slane %v1438_v0, %v5487_v44  ;;  %v7156_v29 = vrot.slane %v1470_v8, %v5487_v44 }
 0x1e3   :  { %8925 = vst [vmem:[#allocation42_spill] sm:$0xff] %v7144_v58  ;;  %v2791_v3 = vcombine.low %v2726_v11, %v2742_v37  ;;  %v7159_v9 = vrot.slane %v2893_v42, %v5487_v44  ;;  %v7162_v33 = vrot.slane %v2933_v57, %v5487_v44  ;;  %v7167_v61 = vrot.slane %v1933_v7, %v5423_v6  ;;  %v7172_v0 = vpop.permute.xlu1 %470  ;;  %v8932_v57 = vld [vmem:[#allocation91_spill] sm:$0xff] }
 0x1e4   :  { %8926 = vst [vmem:[#allocation48_spill] sm:$0xff] %v7147_v13  ;;  %v1965_v50 = vcombine.low %v7136_v1, %v7147_v13  ;;  %v7170_v32 = vrot.slane %v1949_v56, %v5423_v6  ;;  %8931 = vst [vmem:[#allocation114_spill] sm:$0xff] %v7172_v0  ;;  %v2776_v8 = vcombine.high %v6987_v20, %v6990_v31  ;;  %v8934_v31 = vld [vmem:[#allocation78_spill] sm:$0xff] }
 0x1e5   :  { %8928 = vst [vmem:[#allocation73_spill] sm:$0xff] %v7159_v9  ;;  %8929 = vst [vmem:[#allocation60_spill] sm:$0xff] %v7167_v61  ;;  %v7177_v55 = vrot.slane %v2815_v17, %v5487_v44  ;;  %v2918_v11 = vcombine.high %v7089_v15, %v8914_v62  ;;  %v1488_v37 = vcombine.high %v6910_v40, %v6916_v63  ;;  %v7190_v52 = vpop.permute.xlu0 %547 }
 0x1e6   :  { %8930 = vst [vmem:[#allocation11_spill] sm:$0xff] %v7170_v32  ;;  %v7184_v42 = vrot.slane %v2909_v26, %v5487_v44  ;;  %v1997_v60 = vcombine.low %v7167_v61, %v7170_v32  ;;  %v3317_v7 = vcombine.low %v7149_v47, %v8932_v57  ;;  %8933 = vst [vmem:[#allocation84_spill] sm:$0xff] %v7190_v52  ;;  %4820 = vrot.lane.b32.xlu1 %v4819_v21, %s5056_s9  ;;  %v8950_v61 = vld [vmem:[#allocation53_spill] sm:$0xff] }
 0x1e7   :  { %v2942_v17 = vcombine.high %v7159_v9, %v7144_v58  ;;  %v7196_v20 = vrot.slane %v2791_v3, %v5487_v44  ;;  %v2800_v40 = vcombine.high %v6982_v59, %v7007_v2  ;;  %v2894_v63 = vcombine.high %v7083_v19, %v7086_v10  ;;  %v7212_v26 = vpop.permute.xlu1 %551  ;;  %v8938_v10 = vld [vmem:[#allocation98_spill] sm:$0xff] }
 0x1e8   :  { %v3301_v15 = vcombine.low %v8934_v31, %v7172_v0  ;;  %v7205_v62 = vrot.slane %v1965_v50, %v5487_v44  ;;  %v7208_v21 = vrot.slane %v1997_v60, %v5487_v44  ;;  %v2824_v56 = vcombine.high %v7064_v14, %v7050_v27  ;;  %v8954_v31 = vld [vmem:[#allocation29_spill] sm:$0xff] }
 0x1e9   :  { %v2945_v59 = vcombine.low %v7184_v42, %v7162_v33  ;;  %v7217_v2 = vrot.slane %v2918_v11, %v5487_v44  ;;  %v3333_v3 = vcombine.low %v8938_v10, %v7190_v52  ;;  %v2827_v50 = vcombine.low %v7196_v20, %v7177_v55  ;;  %v7233_v27 = vpop.permute.xlu0 %553  ;;  %v8949_v52 = vld [vmem:[#allocation55_spill] sm:$0xff] }
 0x1ea   :  { %8935 = vst [vmem:[#allocation75_spill] sm:$0xff] %v7205_v62  ;;  %8936 = vst [vmem:[#allocation64_spill] sm:$0xff] %v7208_v21  ;;  %v7220_v19 = vrot.slane %v3301_v15, %v5423_v6  ;;  %v7229_v39 = vrot.slane %v3317_v7, %v5423_v6  ;;  %v4784_v49 = vpack.i.bf16 %v2942_v17, %v2824_v56 }
 0x1eb   :  { %v3349_v11 = vcombine.low %v8940_v28, %v7212_v26  ;;  %v2814_v15 = vrot.slane %v2800_v40, %v5487_v44  ;;  %v2908_v14 = vrot.slane %v2894_v63, %v5487_v44  ;;  %v1352_v1 = vcombine.high %v6904_v51, %v6886_v53  ;;  %v7250_v60 = vpop.permute.xlu1 %581 }
 0x1ec   :  { %8937 = vst [vmem:[#allocation5_spill] sm:$0xff] %v7220_v19  ;;  %8939 = vst [vmem:[#allocation72_spill] sm:$0xff] %v7229_v39  ;;  %v1491_v13 = vcombine.low %v7153_v45, %v7156_v29  ;;  %v3365_v7 = vcombine.low %v7220_v19, %v7229_v39  ;;  %v7244_v17 = vrot.slane %v3333_v3, %v5423_v6  ;;  %4785 = vrot.lane.b32.xlu0 %v4784_v49, %s5056_s9  ;;  %v8944_v19 = vld [vmem:[#allocation112_spill] sm:$0xff]  ;;  %v8945_v39 = vld [vmem:[#allocation70_spill] sm:$0xff] }
 0x1ed   :  { %v7248_v56 = vrot.slane %v3349_v11, %v5423_v6  ;;  %v4829_v40 = vpack.i.bf16 %v2945_v59, %v2827_v50  ;;  %v8943_v53 = vcombine.low %v8901_v24, %v8900_v12  ;;  %v1355_v63 = vcombine.low %v7133_v4, %v7141_v16  ;;  %v8948_v59 = vld [vmem:[#allocation80_spill] sm:$0xff] }
 0x1ee   :  { %8941 = vst [vmem:[#allocation24_spill] sm:$0xff] %v7244_v17  ;;  %v8946_v3 = vcombine.low %v8944_v19, %v8945_v39  ;;  %v8947_v49 = vcombine.low %v8905_v22, %v8904_v35  ;;  %v1763_v50 = vcombine.low %v8948_v59, %v7002_v34  ;;  %v2790_v11 = vrot.slane %v2776_v8, %v5487_v44  ;;  %v8953_v8 = vld [vmem:[#allocation20_spill] sm:$0xff] }
 0x1ef   :  { %8942 = vst [vmem:[#allocation76_spill] sm:$0xff] %v7248_v56  ;;  %v3176_v51 = vrot.slane %v8943_v53, %v5487_v44  ;;  %v3389_v12 = vcombine.low %v7244_v17, %v7248_v56  ;;  %4830 = vrot.lane.b32.xlu1 %v4829_v40, %s5059_s12  ;;  %v4794_v24 = vpack.i.bf16 %v1488_v37, %v1352_v1  ;;  %v7272_v53 = vpop.permute.xlu0 %585 }
 0x1f0   :  { %v7264_v47 = vpack.i.bf16 %v8947_v49, %v8946_v3  ;;  %v2943_v57 = vcombine.low %v2908_v14, %v7217_v2  ;;  %v4839_v10 = vpack.i.bf16 %v1491_v13, %v1355_v63  ;;  %v8951_v3 = vcombine.low %v8949_v52, %v8950_v61 }
 0x1f1   :  { %v8952_v49 = vcombine.low %v8908_v30, %v8907_v46  ;;  %v3178_v0 = vcombine.high %v8954_v31, %v8953_v8  ;;  %v8955_v40 = vcombine.high %v8949_v52, %v8950_v61  ;;  %v8956_v1 = vcombine.high %v8908_v30, %v8907_v46  ;;  %4795 = vrot.lane.b32.xlu0 %v4794_v24, %s5058_s11  ;;  %v8957_v61 = vld [vmem:[#allocation83_spill] sm:$0xff]  ;;  %v8958_v46 = vld [vmem:[#allocation77_spill] sm:$0xff] }
 0x1f2   :  { %v7294_v13 = vrot.slane %v3365_v7, %v5487_v44  ;;  %v7297_v63 = vrot.slane %v3389_v12, %v5487_v44  ;;  %v2946_v8 = vcombine.high %v7184_v42, %v7162_v33  ;;  %v3181_v52 = vcombine.low %v8957_v61, %v3176_v51 }
 0x1f3   :  { %v7281_v32 = vpack.i.bf16 %v8952_v49, %v8951_v3  ;;  %v7291_v37 = vpack.i.bf16 %v8956_v1, %v8955_v40  ;;  %v2825_v3 = vcombine.low %v2790_v11, %v2814_v15  ;;  %v7300_v49 = vpop.permute.xlu1 %589  ;;  %v3179_v30 = vcombine.low %v8958_v46, %v7042_v43  ;;  %v8959_v40 = vld [vmem:[#allocation113_spill] sm:$0xff]  ;;  %v8960_v1 = vld [vmem:[#allocation62_spill] sm:$0xff]  ;;  %4840 = vrot.lane.b32.xlu1 %v4839_v10, %s5061_s14  ;;  %v7317_v33 = vpop.permute.xlu0 %617 }
 0x1f4   :  { %v8961_v7 = vcombine.low %v8959_v40, %v8960_v1  ;;  %v3180_v12 = vcombine.high %v8958_v46, %v7042_v43  ;;  %v2828_v42 = vcombine.high %v7196_v20, %v7177_v55  ;;  %v2944_v56 = vcombine.high %v2908_v14, %v7217_v2  ;;  %v8962_v55 = vld [vmem:[#allocation67_spill] sm:$0xff] }
 0x1f5   :  { %v4804_v17 = vpack.i.bf16 %v2943_v57, %v2825_v3  ;;  %v1762_v43 = vcombine.high %v8905_v22, %v8904_v35  ;;  %v1764_v46 = vcombine.high %v8948_v59, %v7002_v34  ;;  %v2826_v10 = vcombine.high %v2790_v11, %v2814_v15  ;;  %v8963_v20 = vld [vmem:[#allocation63_spill] sm:$0xff] }
 0x1f6   :  { %v7310_v31 = vpack.i.bf16 %v1763_v50, %v8961_v7  ;;  %v2053_v50 = vcombine.low %v7250_v60, %v7300_v49  ;;  %v3182_v7 = vcombine.high %v8957_v61, %v3176_v51  ;;  %v4849_v57 = vpack.i.bf16 %v2946_v8, %v2828_v42  ;;  %v8965_v22 = vld [vmem:[#allocation51_spill] sm:$0xff]  ;;  %v8966_v51 = vld [vmem:[#allocation58_spill] sm:$0xff]  ;;  %v8973_v61 = vld [vmem:[#allocation109_spill] sm:$0xff] }
 0x1f7   :  { %4805 = vrot.lane.b32.xlu0 %v4804_v17, %s5057_s10  ;;  %v7330_v3 = vpop.permute.xlu1 %621  ;;  %v1492_v14 = vcombine.high %v7153_v45, %v7156_v29  ;;  %v8964_v2 = vcombine.high %v8962_v55, %v8963_v20  ;;  %v2037_v35 = vcombine.low %v7233_v27, %v7272_v53  ;;  %v8967_v34 = vcombine.low %v8965_v22, %v8966_v51  ;;  %v8968_v17 = vld [vmem:[#allocation12_spill] sm:$0xff]  ;;  %v8969_v15 = vld [vmem:[#allocation59_spill] sm:$0xff]  ;;  %v7359_v20 = vpop.permute.xlu0 %625 }
 0x1f8   :  { %v8970_v11 = vcombine.low %v8968_v17, %v8969_v15  ;;  %v8971_v45 = vcombine.high %v8968_v17, %v8969_v15  ;;  %4850 = vrot.lane.b32.xlu1 %v4849_v57, %s5060_s13  ;;  %v8976_v17 = vcombine.high %v8965_v22, %v8966_v51  ;;  %v8980_v22 = vld [vmem:[#allocation107_spill] sm:$0xff] }
 0x1f9   :  { %v7337_v24 = vpack.i.bf16 %v3178_v0, %v8964_v2  ;;  %v7344_v59 = vpack.i.bf16 %v3181_v52, %v8967_v34  ;;  %v8972_v0 = vld [vmem:[#allocation45_spill] sm:$0xff]  ;;  %v4814_v2 = vpack.i.bf16 %v2944_v56, %v2826_v10  ;;  %v1356_v52 = vcombine.high %v7133_v4, %v7141_v16  ;;  %v8974_v34 = vld [vmem:[#allocation52_spill] sm:$0xff]  ;;  %v8978_v16 = vld [vmem:[#allocation30_spill] sm:$0xff] }
 0x1fa   :  { %v7349_v8 = vpack.i.bf16 %v3179_v30, %v8970_v11  ;;  %v7354_v29 = vpack.i.bf16 %v3180_v12, %v8971_v45  ;;  %v1782_v42 = vcombine.high %v8973_v61, %v8972_v0  ;;  %v1490_v30 = vcombine.high %v7058_v23, %v7061_v36  ;;  %v8975_v11 = vld [vmem:[#allocation103_spill] sm:$0xff]  ;;  %v8984_v0 = vld [vmem:[#allocation66_spill] sm:$0xff]  ;;  %v8985_v61 = vld [vmem:[#allocation36_spill] sm:$0xff] }
 0x1fb   :  { %v1766_v55 = vcombine.high %v8975_v11, %v8974_v34  ;;  %v7368_v12 = vrot.slane %v2053_v50, %v5423_v6  ;;  %v7373_v15 = vpack.i.bf16 %v3182_v7, %v8976_v17  ;;  %v8977_v56 = vcombine.high %v8944_v19, %v8945_v39  ;;  %4815 = vrot.lane.b32.xlu0 %v4814_v2, %s5058_s11  ;;  %v7387_v10 = vpop.permute.xlu1 %653  ;;  %v8979_v7 = vld [vmem:[#allocation57_spill] sm:$0xff]  ;;  %v8988_v11 = vld [vmem:[#allocation71_spill] sm:$0xff] }
 0x1fc   :  { %v1814_v4 = vcombine.high %v6318_v54, %v6405_v38  ;;  %v2069_v23 = vcombine.low %v7317_v33, %v7359_v20  ;;  %v4859_v36 = vpack.i.bf16 %v1492_v14, %v1356_v52  ;;  %v1354_v50 = vcombine.high %v8978_v16, %v7055_v48  ;;  %v8982_v14 = vld [vmem:[#allocation46_spill] sm:$0xff]  ;;  %v8983_v48 = vld [vmem:[#allocation33_spill] sm:$0xff]  ;;  %v7407_v52 = vpop.permute.xlu0 %555 }
 0x1fd   :  { %v7378_v57 = vpack.i.bf16 %v1762_v43, %v8977_v56  ;;  %v3184_v51 = vcombine.high %v8980_v22, %v8979_v7  ;;  %v7392_v39 = vrot.slane %v2037_v35, %v5423_v6  ;;  %v2085_v38 = vcombine.low %v7330_v3, %v7387_v10  ;;  %8986 = vst [vmem:[#allocation96_spill] sm:$0xff] %v7407_v52  ;;  %v8987_v34 = vld [vmem:[#allocation69_spill] sm:$0xff]  ;;  %v8990_v7 = vld [vmem:[#allocation15_spill] sm:$0xff] }
 0x1fe   :  { %v8981_v54 = vcombine.high %v8959_v40, %v8960_v1  ;;  %v1796_v43 = vrot.slane %v1782_v42, %v5423_v6  ;;  %v3200_v45 = vcombine.high %v8983_v48, %v8982_v14  ;;  %v1798_v2 = vcombine.high %v8985_v61, %v8984_v0  ;;  %4860 = vrot.lane.b32.xlu1 %v4859_v36, %s5062_s15 }
 0x1ff   :  { %v4824_v35 = vpack.i.bf16 %v1490_v30, %v1354_v50  ;;  %v3232_v17 = vcombine.high %v8988_v11, %v8987_v34  ;;  %v2101_v40 = vcombine.low %v7392_v39, %v7368_v12  ;;  %v7414_v1 = vrot.slane %v2069_v23, %v5423_v6  ;;  %v7422_v30 = vpop.permute.xlu1 %583  ;;  %v8989_v50 = vld [vmem:[#allocation9_spill] sm:$0xff] }
 0x200   :  { %v7399_v19 = vpack.i.bf16 %v1764_v46, %v8981_v54  ;;  %v7417_v46 = vrot.slane %v2085_v38, %v5423_v6  ;;  %v1780_v42 = vrot.slane %v1766_v55, %v5423_v6  ;;  %v1828_v56 = vrot.slane %v1814_v4, %v5423_v6  ;;  %v8991_v38 = vld [vmem:[#allocation10_spill] sm:$0xff]  ;;  %v8992_v54 = vld [vmem:[#allocation43_spill] sm:$0xff]  ;;  %v7439_v61 = vpop.permute.xlu0 %587 }
 0x201   :  { %4825 = vrot.lane.b32.xlu0 %v4824_v35, %s5060_s13  ;;  %v2030_v36 = vcombine.high %v7205_v62, %v7208_v21  ;;  %v3198_v23 = vrot.slane %v3184_v51, %v5423_v6  ;;  %v1830_v22 = vcombine.high %v8990_v7, %v8989_v50  ;;  %v3216_v55 = vcombine.high %v8992_v54, %v8991_v38  ;;  %v8994_v51 = vld [vmem:[#allocation101_spill] sm:$0xff]  ;;  %v8998_v54 = vld [vmem:[#allocation23_spill] sm:$0xff] }
 0x202   :  { %v2133_v4 = vcombine.low %v7414_v1, %v7417_v46  ;;  %v1845_v14 = vcombine.low %v1780_v42, %v1796_v43  ;;  %v3214_v48 = vrot.slane %v3200_v45, %v5423_v6  ;;  %v1812_v0 = vrot.slane %v1798_v2, %v5423_v6  ;;  %4870 = vrot.lane.b32.xlu1 %v7264_v47, %s5059_s12  ;;  %v8995_v35 = vld [vmem:[#allocation21_spill] sm:$0xff]  ;;  %v8997_v45 = vld [vmem:[#allocation19_spill] sm:$0xff] }
 0x203   :  { %8993 = vst [vmem:[#allocation81_spill] sm:$0xff] %v7439_v61  ;;  %v1894_v34 = vcombine.high %v8995_v35, %v8994_v51  ;;  %v1846_v11 = vcombine.high %v1780_v42, %v1796_v43  ;;  %v3246_v50 = vrot.slane %v3232_v17, %v5423_v6  ;;  %v7445_v7 = vrot.slane %v2101_v40, %v5487_v44  ;;  %v7456_v43 = vpop.permute.xlu1 %591  ;;  %v8999_v17 = vld [vmem:[#allocation95_spill] sm:$0xff]  ;;  %v9000_v42 = vld [vmem:[#allocation44_spill] sm:$0xff] }
 0x204   :  { %v7448_v38 = vrot.slane %v2133_v4, %v5487_v44  ;;  %v1862_v2 = vcombine.high %v8998_v54, %v8997_v45  ;;  %v1877_v16 = vcombine.low %v1812_v0, %v1828_v56  ;;  %v1950_v47 = vcombine.high %v8924_v41, %v7124_v18  ;;  %v9001_v4 = vld [vmem:[#allocation16_spill] sm:$0xff]  ;;  %v9002_v18 = vld [vmem:[#allocation85_spill] sm:$0xff]  ;;  %v9003_v41 = vld [vmem:[#allocation18_spill] sm:$0xff] }
 0x205   :  { %4835 = vrot.lane.b32.xlu0 %v7281_v32, %s5057_s10  ;;  %v4879_v21 = vpack.i.bf16 %v2030_v36, %v1894_v34  ;;  %v3248_v40 = vcombine.high %v9000_v42, %v8999_v17  ;;  %v3230_v62 = vrot.slane %v3216_v55, %v5423_v6  ;;  %v1902_v51 = vcombine.high %v9001_v4, %v7094_v5  ;;  %v9004_v32 = vld [vmem:[#allocation97_spill] sm:$0xff]  ;;  %v7470_v34 = vpop.permute.xlu0 %619  ;;  %v9006_v5 = vld [vmem:[#allocation90_spill] sm:$0xff]  ;;  %v9016_v45 = vld [vmem:[#allocation84_spill] sm:$0xff] }
 0x206   :  { %8996 = vst [vmem:[#allocation106_spill] sm:$0xff] %v7448_v38  ;;  %v3263_v54 = vcombine.low %v3198_v23, %v3214_v48  ;;  %v1878_v35 = vcombine.high %v1812_v0, %v1828_v56  ;;  %v3272_v58 = vcombine.high %v9003_v41, %v9002_v18  ;;  %v1934_v36 = vcombine.high %v9004_v32, %v7112_v25  ;;  %v9007_v42 = vld [vmem:[#allocation34_spill] sm:$0xff] }
 0x207   :  { %4880 = vrot.lane.b32.xlu1 %v4879_v21, %s5056_s9  ;;  %9005 = vst [vmem:[#allocation88_spill] sm:$0xff] %v7470_v34  ;;  %v7473_v55 = vrot.slane %v1830_v22, %v5487_v44  ;;  %v3287_v17 = vcombine.low %v3230_v62, %v3246_v50  ;;  %v1918_v4 = vcombine.high %v9007_v42, %v9006_v5  ;;  %v7493_v62 = vpop.permute.xlu1 %623  ;;  %v9012_v5 = vld [vmem:[#allocation78_spill] sm:$0xff] }
 0x208   :  { %v3435_v56 = vcombine.low %v7422_v30, %v7456_v43  ;;  %v7480_v23 = vrot.slane %v1845_v14, %v5487_v44  ;;  %v7483_v48 = vrot.slane %v1862_v2, %v5487_v44  ;;  %v7486_v25 = vrot.slane %v1877_v16, %v5487_v44  ;;  %9008 = vst [vmem:[#allocation27_spill] sm:$0xff] %v7493_v62  ;;  %v9017_v41 = vld [vmem:[#allocation98_spill] sm:$0xff] }
 0x209   :  { %v7489_v21 = vrot.slane %v1950_v47, %v5423_v6  ;;  %4845 = vrot.lane.b32.xlu0 %v7337_v24, %s5056_s9  ;;  %v7496_v22 = vrot.slane %v1846_v11, %v5487_v44  ;;  %v7499_v14 = vrot.slane %v3248_v40, %v5487_v44  ;;  %v7502_v0 = vrot.slane %v1902_v51, %v5423_v6  ;;  %v7520_v51 = vpop.permute.xlu0 %627 }
 0x20a   :  { %v3419_v16 = vcombine.low %v7407_v52, %v7439_v61  ;;  %v7507_v50 = vrot.slane %v3263_v54, %v5487_v44  ;;  %v7510_v2 = vrot.slane %v1878_v35, %v5487_v44  ;;  %v7513_v24 = vrot.slane %v3272_v58, %v5487_v44  ;;  %9009 = vst [vmem:[#allocation74_spill] sm:$0xff] %v7520_v51  ;;  %v9019_v52 = vld [vmem:[#allocation111_spill] sm:$0xff]  ;;  %v9021_v61 = vld [vmem:[#allocation56_spill] sm:$0xff] }
 0x20b   :  { %v7516_v11 = vrot.slane %v1934_v36, %v5423_v6  ;;  %4890 = vrot.lane.b32.xlu1 %v7344_v59, %s5059_s12  ;;  %v7523_v47 = vrot.slane %v3287_v17, %v5487_v44  ;;  %v7526_v40 = vrot.slane %v1918_v4, %v5423_v6  ;;  %v7529_v35 = vrot.slane %v3435_v56, %v5423_v6  ;;  %v7539_v18 = vpop.permute.xlu1 %655  ;;  %v9011_v17 = vld [vmem:[#allocation114_spill] sm:$0xff] }
 0x20c   :  { %v3451_v58 = vcombine.low %v7470_v34, %v7520_v51  ;;  %v3350_v59 = vcombine.high %v8940_v28, %v7212_v26  ;;  %9010 = vst [vmem:[#allocation105_spill] sm:$0xff] %v7539_v18  ;;  %v1897_v32 = vcombine.low %v7480_v23, %v7486_v25  ;;  %v3302_v42 = vcombine.high %v9012_v5, %v9011_v17  ;;  %v9014_v26 = vld [vmem:[#allocation11_spill] sm:$0xff]  ;;  %v9018_v51 = vld [vmem:[#allocation14_spill] sm:$0xff] }
 0x20d   :  { %v2013_v54 = vcombine.low %v7516_v11, %v7489_v21  ;;  %4855 = vrot.lane.b32.xlu0 %v7291_v37, %s5058_s11  ;;  %v1981_v36 = vcombine.low %v7502_v0, %v7526_v40  ;;  %v7550_v4 = vrot.slane %v3419_v16, %v5423_v6  ;;  %v3467_v28 = vcombine.low %v7493_v62, %v7539_v18  ;;  %v9015_v37 = vld [vmem:[#allocation60_spill] sm:$0xff]  ;;  %v7560_v34 = vpop.permute.xlu0 %657  ;;  %v9020_v5 = vld [vmem:[#allocation91_spill] sm:$0xff] }
 0x20e   :  { %v1998_v56 = vcombine.high %v9015_v37, %v9014_v26  ;;  %v3334_v9 = vcombine.high %v9017_v41, %v9016_v45  ;;  %v3318_v62 = vcombine.high %v9021_v61, %v9020_v5  ;;  %v7571_v37 = vrot.slane %v3451_v58, %v5423_v6  ;;  %v9025_v41 = vld [vmem:[#allocation13_spill] sm:$0xff]  ;;  %v9029_v58 = vld [vmem:[#allocation24_spill] sm:$0xff] }
 0x20f   :  { %9013 = vst [vmem:[#allocation89_spill] sm:$0xff] %v7550_v4  ;;  %4900 = vrot.lane.b32.xlu1 %v7310_v31, %s5061_s14  ;;  %v3483_v26 = vcombine.low %v7550_v4, %v7529_v35  ;;  %v7574_v45 = vrot.slane %v3467_v28, %v5423_v6  ;;  %v9024_v31 = vld [vmem:[#allocation48_spill] sm:$0xff]  ;;  %v7579_v17 = vrot.slane %v2013_v54, %v5487_v44  ;;  %v7584_v61 = vpop.permute.xlu1 %661 }
 0x210   :  { %9022 = vst [vmem:[#allocation104_spill] sm:$0xff] %v7571_v37  ;;  %v1966_v18 = vcombine.high %v9025_v41, %v9024_v31  ;;  %v3364_v16 = vrot.slane %v3350_v59, %v5423_v6  ;;  %v7589_v5 = vrot.slane %v1981_v36, %v5487_v44  ;;  %v3316_v28 = vrot.slane %v3302_v42, %v5423_v6 }
 0x211   :  { %9023 = vst [vmem:[#allocation8_spill] sm:$0xff] %v7574_v45  ;;  %4865 = vrot.lane.b32.xlu0 %v7349_v8, %s5057_s10  ;;  %v3507_v31 = vcombine.low %v7571_v37, %v7574_v45  ;;  %v7597_v59 = vrot.slane %v1998_v56, %v5487_v44  ;;  %v3348_v8 = vrot.slane %v3334_v9, %v5423_v6  ;;  %v7610_v42 = vpop.permute.xlu0 %659 }
 0x212   :  { %v7602_v41 = vrot.slane %v7560_v34, %v5423_v6  ;;  %v7608_v36 = vrot.slane %v7584_v61, %v5423_v6  ;;  %v3332_v54 = vrot.slane %v3318_v62, %v5423_v6  ;;  %v7614_v56 = vrot.slane %v3483_v26, %v5487_v44 }
 0x213   :  { %4910 = vrot.lane.b32.xlu1 %v7373_v15, %s5060_s13  ;;  %v7617_v9 = vrot.slane %v3507_v31, %v5487_v44  ;;  %v1980_v37 = vrot.slane %v1966_v18, %v5487_v44  ;;  %v3405_v15 = vcombine.low %v3348_v8, %v3364_v16  ;;  %v7626_v4 = vpop.permute.xlu1 %663  ;;  %v2033_v62 = vcombine.low %v7589_v5, %v7579_v17 }
 0x214   :  { %9026 = vst [vmem:[#allocation17_spill] sm:$0xff] %v7614_v56  ;;  %v2203_v45 = vcombine.low %v7602_v41, %v7608_v36  ;;  %v3381_v26 = vcombine.low %v3316_v28, %v3332_v54  ;;  %v2054_v31 = vcombine.high %v7250_v60, %v7300_v49  ;;  %v2014_v49 = vcombine.high %v7516_v11, %v7489_v21  ;;  %v9028_v54 = vld [vmem:[#allocation76_spill] sm:$0xff] }
 0x215   :  { %9027 = vst [vmem:[#allocation102_spill] sm:$0xff] %v7617_v9  ;;  %4875 = vrot.lane.b32.xlu0 %v7354_v29, %s5058_s11  ;;  %v7641_v16 = vpop.permute.xlu0 %4665  ;;  %v2031_v8 = vcombine.low %v1980_v37, %v7597_v59  ;;  %v2038_v18 = vcombine.high %v7233_v27, %v7272_v53  ;;  %v1982_v56 = vcombine.high %v7502_v0, %v7526_v40  ;;  %v9030_v9 = vmov 0.0   ;;  %v9032_v27 = vld [vmem:[#allocation5_spill] sm:$0xff] }
 0x216   :  { %v7637_v29 = vrot.slane %v2203_v45, %v5487_v44  ;;  %v3390_v45 = vcombine.high %v9029_v58, %v9028_v54  ;;  %v7659_v28 = vrot.slane %v3405_v15, %v5487_v44  ;;  %v4929_v21 = vpack.i.bf16 %v2033_v62, %v1897_v32  ;;  %v9031_v58 = vld [vmem:[#allocation72_spill] sm:$0xff] }
 0x217   :  { %4920 = vrot.lane.b32.xlu1 %v7399_v19, %s5062_s15  ;;  %v2086_v19 = vcombine.high %v7330_v3, %v7387_v10  ;;  %v7665_v11 = vpop.permute.xlu1 %4670  ;;  %v3366_v53 = vcombine.high %v9032_v27, %v9031_v58  ;;  %v3388_v3 = vrot.slane %v3381_v26, %v5487_v44  ;;  %v2068_v10 = vrot.slane %v2054_v31, %v5423_v6 }
 0x218   :  { %v2235_v60 = vcombine.high %v7637_v29, %v9030_v9  ;;  %v2070_v0 = vcombine.high %v7317_v33, %v7359_v20  ;;  %v9033_v40 = vcombine.low %v7473_v55, %v7483_v48  ;;  %v3414_v32 = vcombine.high %v7294_v13, %v7297_v63 }
 0x219   :  { %4885 = vrot.lane.b32.xlu0 %v7378_v57, %s5060_s13  ;;  %v7677_v57 = vpop.permute.xlu0 %4675  ;;  %v2166_v62 = vcombine.high %v7445_v7, %v7448_v38  ;;  %v2032_v26 = vcombine.high %v1980_v37, %v7597_v59  ;;  %v2028_v31 = vrot.slane %v2014_v49, %v5487_v44  ;;  %v3404_v33 = vrot.slane %v3390_v45, %v5487_v44 }
 0x21a   :  { %v4894_v15 = vpack.i.bf16 %v2031_v8, %v9033_v40  ;;  %v2052_v20 = vrot.slane %v2038_v18, %v5423_v6  ;;  %v2100_v8 = vrot.slane %v2086_v19, %v5423_v6  ;;  %v2102_v54 = vcombine.high %v7392_v39, %v7368_v12 }
 0x21b   :  { %4930 = vrot.lane.b32.xlu1 %v4929_v21, %s5059_s12  ;;  %v4939_v21 = vpack.i.bf16 %v2235_v60, %v2166_v62  ;;  %v7691_v58 = vpop.permute.xlu1 %4680  ;;  %v3417_v27 = vcombine.low %v3388_v3, %v7659_v28  ;;  %v1900_v37 = vcombine.high %v7496_v22, %v7510_v2  ;;  %v1996_v59 = vrot.slane %v1982_v56, %v5487_v44 }
 0x21c   :  { %v3380_v49 = vrot.slane %v3366_v53, %v5487_v44  ;;  %v2117_v18 = vcombine.low %v2052_v20, %v2068_v10  ;;  %v2084_v45 = vrot.slane %v2070_v0, %v5423_v6  ;;  %v2118_v19 = vcombine.high %v2052_v20, %v2068_v10 }
 0x21d   :  { %4895 = vrot.lane.b32.xlu0 %v4894_v15, %s5057_s10  ;;  %v2134_v12 = vcombine.high %v7414_v1, %v7417_v46  ;;  %v9034_v39 = vcombine.high %v9019_v52, %v9018_v51  ;;  %v7705_v40 = vpop.permute.xlu0 %4685  ;;  %v9035_v56 = vcombine.high %v7473_v55, %v7483_v48  ;;  %v2188_v0 = vcombine.high %v7584_v61, %v9030_v9 }
 0x21e   :  { %v2149_v53 = vcombine.low %v2084_v45, %v2100_v8  ;;  %v3415_v10 = vcombine.low %v3380_v49, %v3404_v33  ;;  %v2035_v62 = vcombine.low %v1996_v59, %v2028_v31  ;;  %v7713_v1 = vrot.slane %v2102_v54, %v5487_v44 }
 0x21f   :  { %v4904_v60 = vpack.i.bf16 %v3414_v32, %v9034_v39  ;;  %4940 = vrot.lane.b32.xlu1 %v4939_v21, %s5056_s9  ;;  %v4914_v15 = vpack.i.bf16 %v2032_v26, %v9035_v56  ;;  %v9036_v46 = vcombine.low %v7507_v50, %v7523_v47  ;;  %v3416_v20 = vcombine.high %v3380_v49, %v3404_v33 }
 0x220   :  { %v3418_v21 = vcombine.high %v3388_v3, %v7659_v28  ;;  %v7721_v55 = vrot.slane %v2117_v18, %v5487_v44  ;;  %v2173_v48 = vcombine.high %v7560_v34, %v9030_v9  ;;  %v2034_v61 = vcombine.high %v7589_v5, %v7579_v17  ;;  %v7736_v3 = vpop.permute.xlu1 %4690 }
 0x221   :  { %4905 = vrot.lane.b32.xlu0 %v4904_v60, %s5056_s9  ;;  %v4949_v32 = vpack.i.bf16 %v3417_v27, %v9036_v46  ;;  %v2036_v26 = vcombine.high %v1996_v59, %v2028_v31  ;;  %v7728_v54 = vrot.slane %v2118_v19, %v5487_v44  ;;  %v7731_v39 = vrot.slane %v2134_v12, %v5487_v44  ;;  %v7753_v18 = vpop.permute.xlu0 %4695  ;;  %v9048_v46 = vld [vmem:[#allocation27_spill] sm:$0xff] }
 0x222   :  { %v2150_v27 = vcombine.high %v2084_v45, %v2100_v8  ;;  %v3551_v28 = vrot.slane %v7626_v4, %v5423_v6  ;;  %v7739_v34 = vrot.slane %v2149_v53, %v5487_v44  ;;  %v2202_v17 = vrot.slane %v2188_v0, %v5423_v6  ;;  %v9042_v53 = vld [vmem:[#allocation81_spill] sm:$0xff] }
 0x223   :  { %4950 = vrot.lane.b32.xlu1 %v4949_v32, %s5059_s12  ;;  %v9037_v5 = vcombine.low %v7499_v14, %v7513_v24  ;;  %v9038_v33 = vcombine.low %v7496_v22, %v7510_v2  ;;  %v2204_v59 = vcombine.high %v7602_v41, %v7608_v36  ;;  %v3543_v49 = vrot.slane %v7610_v42, %v5423_v6 }
 0x224   :  { %v9039_v45 = vcombine.high %v7499_v14, %v7513_v24  ;;  %v9040_v12 = vcombine.high %v7507_v50, %v7523_v47  ;;  %v3436_v2 = vcombine.high %v7422_v30, %v7456_v43  ;;  %v2187_v41 = vrot.slane %v2173_v48, %v5423_v6  ;;  %v9043_v14 = vld [vmem:[#allocation96_spill] sm:$0xff]  ;;  %v9044_v30 = vld [vmem:[#allocation89_spill] sm:$0xff]  ;;  %v9045_v47 = vld [vmem:[#allocation74_spill] sm:$0xff] }
 0x225   :  { %v4924_v31 = vpack.i.bf16 %v3415_v10, %v9037_v5  ;;  %v4959_v8 = vpack.i.bf16 %v2035_v62, %v9038_v33  ;;  %4915 = vrot.lane.b32.xlu0 %v4914_v15, %s5058_s11  ;;  %v9041_v36 = vcombine.high %v7480_v23, %v7486_v25  ;;  %v4979_v56 = vpack.i.bf16 %v2036_v26, %v1900_v37  ;;  %v9046_v10 = vld [vmem:[#allocation88_spill] sm:$0xff]  ;;  %v9047_v62 = vld [vmem:[#allocation105_spill] sm:$0xff]  ;;  %v9062_v24 = vld [vmem:[#allocation38_spill] sm:$0xff] }
 0x226   :  { %v4934_v19 = vpack.i.bf16 %v3416_v20, %v9039_v45  ;;  %v4969_v22 = vpack.i.bf16 %v3418_v21, %v9040_v12  ;;  %v7768_v15 = vrot.slane %v2150_v27, %v5487_v44  ;;  %v3553_v0 = vcombine.low %v3543_v49, %v3551_v28  ;;  %v9049_v20 = vld [vmem:[#allocation8_spill] sm:$0xff] }
 0x227   :  { %v4944_v60 = vpack.i.bf16 %v2034_v61, %v9041_v36  ;;  %4960 = vrot.lane.b32.xlu1 %v4959_v8, %s5061_s14  ;;  %v2167_v50 = vcombine.low %v7713_v1, %v7731_v39  ;;  %v3484_v43 = vcombine.high %v9044_v30, %v7529_v35  ;;  %v3452_v23 = vcombine.high %v9046_v10, %v9045_v47  ;;  %v9050_v21 = vld [vmem:[#allocation104_spill] sm:$0xff]  ;;  %v7787_v35 = vpop.permute.xlu1 %4700 }
 0x228   :  { %v2219_v25 = vcombine.low %v2187_v41, %v2202_v17  ;;  %v2169_v37 = vcombine.low %v7721_v55, %v7739_v34  ;;  %v3468_v32 = vcombine.high %v9048_v46, %v9047_v62  ;;  %v3508_v48 = vcombine.high %v9050_v21, %v9049_v20 }
 0x229   :  { %v2218_v61 = vrot.slane %v2204_v59, %v5487_v44  ;;  %v2220_v26 = vcombine.high %v2187_v41, %v2202_v17  ;;  %4925 = vrot.lane.b32.xlu0 %v4924_v31, %s5057_s10  ;;  %v7790_v27 = vrot.slane %v3436_v2, %v5423_v6  ;;  %v3554_v5 = vcombine.high %v3543_v49, %v3551_v28  ;;  %v7801_v31 = vpop.permute.xlu0 %4705  ;;  %v9064_v28 = vld [vmem:[#allocation102_spill] sm:$0xff] }
 0x22a   :  { %v2170_v33 = vcombine.high %v7721_v55, %v7739_v34  ;;  %v7797_v45 = vrot.slane %v3553_v0, %v5487_v44  ;;  %v4668_v59 = vunpack.i.h.bf16 %v7641_v16  ;;  %v4667_v17 = vunpack.i.l.bf16 %v7641_v16 }
 0x22b   :  { %4970 = vrot.lane.b32.xlu1 %v4969_v22, %s5060_s13  ;;  %v7807_v49 = vrot.slane %v3484_v43, %v5487_v44  ;;  %v7810_v55 = vrot.slane %v3452_v23, %v5423_v6  ;;  %v2227_v34 = vrot.slane %v2219_v25, %v5487_v44  ;;  %v4673_v12 = vunpack.i.h.bf16 %v7665_v11  ;;  %v4711_v36 = vpop.permute.xlu1 %4710  ;;  %v9052_v23 = vld [vmem:[#allocation92_spill] sm:$0xff]  ;;  %v9053_v25 = vld [vmem:[#allocation86_spill] sm:$0xff] }
 0x22c   :  { %9051 = vst [vmem:[#allocation68_spill] sm:$0xff] %v7797_v45  ;;  %v7815_v2 = vrot.slane %v3468_v32, %v5423_v6  ;;  %v7818_v16 = vrot.slane %v3508_v48, %v5487_v44  ;;  %v7821_v22 = vrot.slane %v2220_v26, %v5487_v44  ;;  %v7824_v41 = vcombine.high %v2218_v61, %v9030_v9  ;;  %v9056_v32 = vld [vmem:[#allocation37_spill] sm:$0xff] }
 0x22d   :  { %4935 = vrot.lane.b32.xlu0 %v4934_v19, %s5058_s11  ;;  %v7828_v0 = vrot.slane %v3554_v5, %v5487_v44  ;;  %v4672_v30 = vunpack.i.l.bf16 %v7665_v11  ;;  %v4678_v43 = vunpack.i.h.bf16 %v7677_v57  ;;  %v4677_v47 = vunpack.i.l.bf16 %v7677_v57  ;;  %v9055_v19 = vld [vmem:[#allocation40_spill] sm:$0xff] }
 0x22e   :  { %v3577_v10 = vcombine.high %v7797_v45, %v9030_v9  ;;  %v9054_v62 = vcombine.low %v9052_v23, %v9053_v25  ;;  %v9057_v20 = vcombine.low %v9055_v19, %v9056_v32  ;;  %v4683_v11 = vunpack.i.h.bf16 %v7691_v58  ;;  %v7851_v25 = vpop.permute.xlu0 %4715  ;;  %v9059_v19 = vld [vmem:[#allocation93_spill] sm:$0xff] }
 0x22f   :  { %4980 = vrot.lane.b32.xlu1 %v4979_v56, %s5062_s15  ;;  %v4688_v48 = vunpack.i.h.bf16 %v7705_v40  ;;  %v4687_v26 = vunpack.i.l.bf16 %v7705_v40  ;;  %v2237_v5 = vcombine.high %v2227_v34, %v9030_v9  ;;  %v4697_v23 = vunpack.i.l.bf16 %v7753_v18  ;;  %v9065_v45 = vld [vmem:[#allocation17_spill] sm:$0xff] }
 0x230   :  { %v4158_v46 = vsel %vm4156_vm5, %v9054_v62, %v4668_v59  ;;  %v4157_v21 = vsel %vm4156_vm5, %v9057_v20, %v4667_v17  ;;  %v4698_v59 = vunpack.i.h.bf16 %v7753_v18  ;;  %v4721_v17 = vpop.permute.xlu1 %4720  ;;  %v4954_v62 = vpack.i.bf16 %v2218_v61, %v2167_v50  ;;  %v9061_v20 = vld [vmem:[#allocation41_spill] sm:$0xff] }
 0x231   :  { %v4171_v57 = vsel %vm4169_vm6, %v4158_v46, %v4673_v12  ;;  %4945 = vrot.lane.b32.xlu0 %v4944_v60, %s5060_s13  ;;  %v4989_v56 = vpack.i.bf16 %v2227_v34, %v2169_v37  ;;  %v4170_v12 = vsel %vm4169_vm6, %v4157_v21, %v4672_v30  ;;  %v9058_v46 = vld [vmem:[#allocation99_spill] sm:$0xff]  ;;  %v9063_v8 = vcombine.low %v9061_v20, %v9062_v24 }
 0x232   :  { %v9060_v40 = vcombine.low %v9058_v46, %v9059_v19  ;;  %v3532_v38 = vcombine.high %v9065_v45, %v9064_v28  ;;  %v4682_v60 = vunpack.i.l.bf16 %v7691_v58  ;;  %v4184_v50 = vsel %vm4182_vm7, %v4171_v57, %v4683_v11 }
 0x233   :  { %v4247_v18 = vsel %vm4156_vm5, %v9063_v8, %v4677_v47  ;;  %v4713_v37 = vunpack.i.h.bf16 %v4711_v36  ;;  %v4712_v61 = vunpack.i.l.bf16 %v4711_v36  ;;  %4990 = vrot.lane.b32.xlu1 %v4989_v56, %s5059_s12  ;;  %v4999_v21 = vpack.i.bf16 %v2237_v5, %v2170_v33  ;;  %v7877_v33 = vpop.permute.xlu0 %4725 }
 0x234   :  { %v4248_v32 = vsel %vm4156_vm5, %v9060_v40, %v4678_v43  ;;  %v4259_v34 = vsel %vm4169_vm6, %v4247_v18, %v4687_v26  ;;  %v4964_v43 = vpack.i.bf16 %v3577_v10, %v3532_v38  ;;  %v4693_v24 = vunpack.i.h.bf16 %v7736_v3  ;;  %v4731_v11 = vpop.permute.xlu1 %4730 }
 0x235   :  { %v4260_v30 = vsel %vm4169_vm6, %v4248_v32, %v4688_v48  ;;  %v4692_v8 = vunpack.i.l.bf16 %v7736_v3  ;;  %v4271_v47 = vsel %vm4182_vm7, %v4259_v34, %v4697_v23  ;;  %4955 = vrot.lane.b32.xlu0 %v4954_v62, %s5057_s10  ;;  %v4708_v36 = vunpack.i.h.bf16 %v7801_v31 }
 0x236   :  { %v4272_v58 = vsel %vm4182_vm7, %v4260_v30, %v4698_v59  ;;  %v4707_v57 = vunpack.i.l.bf16 %v7801_v31  ;;  %v4733_v26 = vunpack.i.h.bf16 %v4731_v11  ;;  %v4732_v56 = vunpack.i.l.bf16 %v4731_v11 }
 0x237   :  { %v4723_v48 = vunpack.i.h.bf16 %v4721_v17  ;;  %v4722_v38 = vunpack.i.l.bf16 %v4721_v17  ;;  %5000 = vrot.lane.b32.xlu1 %v4999_v21, %s5060_s13  ;;  %v4283_v3 = vsel %vm4195_vm8, %v4271_v47, %v4712_v61  ;;  %v4284_v10 = vsel %vm4195_vm8, %v4272_v58, %v4713_v37 }
 0x238   :  { %v4183_v5 = vsel %vm4182_vm7, %v4170_v12, %v4682_v60  ;;  %v4295_v59 = vsel %vm4208_vm9, %v4283_v3, %v4732_v56  ;;  %v4296_v23 = vsel %vm4208_vm9, %v4284_v10, %v4733_v26  ;;  %v9066_v31 = vcombine.low %v7728_v54, %v7768_v15  ;;  %v4741_v19 = vpop.permute.xlu1 %4740 }
 0x239   :  { %v4196_v17 = vsel %vm4195_vm8, %v4183_v5, %v4692_v8  ;;  %v4197_v46 = vsel %vm4195_vm8, %v4184_v50, %v4693_v24  ;;  %4965 = vrot.lane.b32.xlu0 %v4964_v43, %s5056_s9  ;;  %v4608_v40 = vpack.c.bf16 %v4296_v23, %v4295_v59  ;;  %v2238_v12 = vcombine.high %v7821_v22, %v9030_v9 }
 0x23a   :  { %v5009_v62 = vpack.i.bf16 %v7821_v22, %v9066_v31  ;;  %v4209_v32 = vsel %vm4208_vm9, %v4196_v17, %v4707_v57  ;;  %v4210_v20 = vsel %vm4208_vm9, %v4197_v46, %v4708_v36  ;;  %v4743_v18 = vunpack.i.h.bf16 %v4741_v19  ;;  %v9069_v31 = vld [vmem:[#allocation39_spill] sm:$0xff]  ;;  %v9072_v46 = vld [vmem:[#allocation25_spill] sm:$0xff] }
 0x23b   :  { %v4742_v60 = vunpack.i.l.bf16 %v4741_v19  ;;  %v9067_v37 = vcombine.high %v7713_v1, %v7731_v39  ;;  %4609 = vmatprep.subr.bf16.mxu0 %v4608_v40  ;;  %4634 = vmatprep.subr.bf16.mxu1 %v4608_v40  ;;  %v4222_v50 = vsel %vm4221_vm10, %v4209_v32, %v4722_v38  ;;  %v4223_v34 = vsel %vm4221_vm10, %v4210_v20, %v4723_v48  ;;  %v9073_v19 = vld [vmem:[#allocation26_spill] sm:$0xff] }
 0x23c   :  { %v9068_v22 = vcombine.high %v9043_v14, %v9042_v53  ;;  %5010 = vrot.lane.b32.xlu1 %v5009_v62, %s5061_s14  ;;  %v4236_v21 = vsel %vm4234_vm11, %v4223_v34, %v4743_v18  ;;  %v2172_v1 = vcombine.high %v7728_v54, %v7768_v15  ;;  %v3523_v39 = vcombine.low %v7810_v55, %v7815_v2  ;;  %v4751_v2 = vpop.permute.xlu1 %4750  ;;  %v9070_v62 = vld [vmem:[#allocation79_spill] sm:$0xff]  ;;  %v9078_v34 = vld [vmem:[#allocation54_spill] sm:$0xff] }
 0x23d   :  { %v4974_v61 = vpack.i.bf16 %v7824_v41, %v9067_v37  ;;  %v4235_v43 = vsel %vm4234_vm11, %v4222_v50, %v4742_v60  ;;  %v7913_v41 = vpop.permute.xlu0 %4735  ;;  %v3533_v53 = vcombine.low %v7807_v49, %v7818_v16  ;;  %v4589_v8 = vcombine.high %v7610_v42, %v7626_v4  ;;  %v9075_v60 = vld [vmem:[#allocation47_spill] sm:$0xff]  ;;  %v9076_v37 = vld [vmem:[#allocation49_spill] sm:$0xff] }
 0x23e   :  { %v3434_v30 = vrot.slane %v9068_v22, %v5423_v6  ;;  %v4610_v6 = vpack.c.bf16 %v4236_v21, %v4235_v43  ;;  %v5019_v24 = vpack.i.bf16 %v2238_v12, %v2172_v1  ;;  %v3578_v54 = vcombine.high %v7828_v0, %v9030_v9  ;;  %v9079_v22 = vld [vmem:[#allocation82_spill] sm:$0xff] }
 0x23f   :  { %4975 = vrot.lane.b32.xlu0 %v4974_v61, %s5058_s11  ;;  %v4984_v15 = vpack.i.bf16 %v7828_v0, %v3533_v53  ;;  %v3530_v55 = vrot.slane %v3523_v39, %v5487_v44  ;;  %v3576_v4 = vrot.slane %v4589_v8, %v5487_v44  ;;  %v4703_v26 = vunpack.i.h.bf16 %v7787_v35 }
 0x240   :  { %v3499_v14 = vcombine.low %v3434_v30, %v7790_v27  ;;  %4611 = vmatpush1.bf16.msra.mxu0 %v4610_v6  ;;  %4640 = vmatpush1.bf16.msra.mxu1 %v4610_v6  ;;  %v3534_v27 = vcombine.high %v7807_v49, %v7818_v16  ;;  %v7932_v0 = vpop.permute.xlu1 %4760  ;;  %v4702_v56 = vunpack.i.l.bf16 %v7787_v35  ;;  %v4717_v38 = vunpack.i.l.bf16 %v7851_v25 }
 0x241   :  { %5020 = vrot.lane.b32.xlu1 %v5019_v24, %s5062_s15  ;;  %v4746_v42 = vpop.permute.xlu0 %4745  ;;  %v3579_v57 = vcombine.high %v3576_v4, %v9030_v9  ;;  %v4728_v3 = vunpack.i.h.bf16 %v7877_v33  ;;  %v4727_v10 = vunpack.i.l.bf16 %v7877_v33  ;;  %v9071_v17 = vcombine.low %v9069_v31, %v9070_v62 }
 0x242   :  { %v3506_v47 = vrot.slane %v3499_v14, %v5487_v44  ;;  %v4994_v58 = vpack.i.bf16 %v3578_v54, %v3534_v27  ;;  %v4718_v44 = vunpack.i.h.bf16 %v7851_v25  ;;  %v4748_v59 = vunpack.i.h.bf16 %v4746_v42 }
 0x243   :  { %4985 = vrot.lane.b32.xlu0 %v4984_v15, %s5057_s10  ;;  %v4747_v23 = vunpack.i.l.bf16 %v4746_v42  ;;  %v4159_v35 = vsel %vm4156_vm5, %v9071_v17, %v4702_v56  ;;  %v9074_v40 = vcombine.low %v9072_v46, %v9073_v19  ;;  %v9077_v61 = vcombine.low %v9075_v60, %v9076_v37  ;;  %v9081_v37 = vld [vmem:[#allocation31_spill] sm:$0xff] }
 0x244   :  { %v3535_v11 = vcombine.low %v3506_v47, %v3530_v55  ;;  %v3536_v49 = vcombine.high %v3506_v47, %v3530_v55  ;;  %v4771_v16 = vpop.permute.xlu1 %4770  ;;  %v4172_v18 = vsel %vm4169_vm6, %v4159_v35, %v4717_v38  ;;  %v9080_v30 = vcombine.low %v9078_v34, %v9079_v22 }
 0x245   :  { %v4756_v48 = vpop.permute.xlu0 %4755  ;;  %v4160_v12 = vsel %vm4156_vm5, %v9074_v40, %v4703_v26  ;;  %v4250_v50 = vsel %vm4156_vm5, %v9077_v61, %v4728_v3  ;;  %v4773_v1 = vunpack.i.h.bf16 %v4771_v16  ;;  %v4772_v39 = vunpack.i.l.bf16 %v4771_v16  ;;  %v9082_v61 = vld [vmem:[#allocation87_spill] sm:$0xff] }
 0x246   :  { %v5004_v36 = vpack.i.bf16 %v3576_v4, %v3535_v11  ;;  %v5014_v5 = vpack.i.bf16 %v3579_v57, %v3536_v49  ;;  %v4758_v32 = vunpack.i.h.bf16 %v4756_v48  ;;  %v4757_v20 = vunpack.i.l.bf16 %v4756_v48 }
 0x247   :  { %4995 = vrot.lane.b32.xlu0 %v4994_v58, %s5058_s11  ;;  %v4173_v33 = vsel %vm4169_vm6, %v4160_v12, %v4718_v44  ;;  %v4249_v43 = vsel %vm4156_vm5, %v9080_v30, %v4727_v10  ;;  %v4738_v53 = vunpack.i.h.bf16 %v7913_v41  ;;  %v4737_v6 = vunpack.i.l.bf16 %v7913_v41 }
 0x248   :  { %v4781_v25 = vpop.permute.xlu1 %4780  ;;  %v4261_v14 = vsel %vm4169_vm6, %v4249_v43, %v4747_v23  ;;  %v4262_v24 = vsel %vm4169_vm6, %v4250_v50, %v4748_v59  ;;  %v4753_v8 = vunpack.i.h.bf16 %v4751_v2  ;;  %v4752_v54 = vunpack.i.l.bf16 %v4751_v2 }
 0x249   :  { %v4766_v21 = vpop.permute.xlu0 %4765  ;;  %v4273_v15 = vsel %vm4182_vm7, %v4261_v14, %v4757_v20  ;;  %v4274_v55 = vsel %vm4182_vm7, %v4262_v24, %v4758_v32  ;;  %v4783_v41 = vunpack.i.h.bf16 %v4781_v25  ;;  %v4782_v57 = vunpack.i.l.bf16 %v4781_v25 }
 0x24a   :  { %v4768_v47 = vunpack.i.h.bf16 %v4766_v21  ;;  %v4767_v4 = vunpack.i.l.bf16 %v4766_v21  ;;  %v4285_v11 = vsel %vm4195_vm8, %v4273_v15, %v4772_v39  ;;  %v4185_v26 = vsel %vm4182_vm7, %v4172_v18, %v4737_v6  ;;  %v9085_v39 = vld [vmem:[#allocation94_spill] sm:$0xff] }
 0x24b   :  { %5005 = vrot.lane.b32.xlu0 %v5004_v36, %s5059_s12  ;;  %v4286_v36 = vsel %vm4195_vm8, %v4274_v55, %v4773_v1  ;;  %v4186_v56 = vsel %vm4182_vm7, %v4173_v33, %v4738_v53  ;;  %v4198_v49 = vsel %vm4195_vm8, %v4185_v26, %v4752_v54  ;;  %v4763_v20 = vunpack.i.h.bf16 %v7932_v0  ;;  %v9084_v1 = vld [vmem:[#allocation100_spill] sm:$0xff] }
 0x24c   :  { %v4791_v27 = vpop.permute.xlu1 %4790  ;;  %v4199_v16 = vsel %vm4195_vm8, %v4186_v56, %v4753_v8  ;;  %v4211_v3 = vsel %vm4208_vm9, %v4198_v49, %v4767_v4  ;;  %v4762_v33 = vunpack.i.l.bf16 %v7932_v0  ;;  %v9083_v50 = vcombine.low %v9081_v37, %v9082_v61  ;;  %v9088_v4 = vld [vmem:[#allocation42_spill] sm:$0xff] }
 0x24d   :  { %v4793_v42 = vunpack.i.h.bf16 %v4791_v27  ;;  %v4792_v58 = vunpack.i.l.bf16 %v4791_v27  ;;  %v4212_v10 = vsel %vm4208_vm9, %v4199_v16, %v4768_v47  ;;  %v4224_v23 = vsel %vm4221_vm10, %v4211_v3, %v4782_v57  ;;  %v4776_v19 = vpop.permute.xlu0 %4775  ;;  %v9087_v47 = vld [vmem:[#allocation73_spill] sm:$0xff] }
 0x24e   :  { %v4225_v31 = vsel %vm4221_vm10, %v4212_v10, %v4783_v41  ;;  %v4778_v60 = vunpack.i.h.bf16 %v4776_v19  ;;  %v4162_v34 = vsel %vm4156_vm5, %v9083_v50, %v4763_v20  ;;  %v4777_v22 = vunpack.i.l.bf16 %v4776_v19 }
 0x24f   :  { %5015 = vrot.lane.b32.xlu0 %v5014_v5, %s5060_s13  ;;  %v4297_v2 = vsel %vm4208_vm9, %v4285_v11, %v4792_v58  ;;  %v4298_v48 = vsel %vm4208_vm9, %v4286_v36, %v4793_v42  ;;  %v9086_v53 = vcombine.low %v9084_v1, %v9085_v39  ;;  %v9089_v42 = vcombine.low %v9087_v47, %v9088_v4  ;;  %v9090_v11 = vld [vmem:[#allocation50_spill] sm:$0xff]  ;;  %v9091_v36 = vld [vmem:[#allocation35_spill] sm:$0xff] }
 0x250   :  { %v4801_v44 = vpop.permute.xlu1 %4800  ;;  %v4612_v38 = vpack.c.bf16 %v4298_v48, %v4297_v2  ;;  %v4175_v15 = vsel %vm4169_vm6, %v4162_v34, %v4778_v60  ;;  %v9092_v41 = vcombine.low %v9090_v11, %v9091_v36 }
 0x251   :  { %v4803_v5 = vunpack.i.h.bf16 %v4801_v44  ;;  %v4802_v59 = vunpack.i.l.bf16 %v4801_v44  ;;  %v4161_v6 = vsel %vm4156_vm5, %v9086_v53, %v4762_v33 }
 0x252   :  { %4613 = vmatprep.subr.bf16.mxu0 %v4612_v38  ;;  %4635 = vmatprep.subr.bf16.mxu1 %v4612_v38  ;;  %v4174_v55 = vsel %vm4169_vm6, %v4161_v6, %v4777_v22 }
 0x253   :  { %v4237_v62 = vsel %vm4234_vm11, %v4224_v23, %v4802_v59  ;;  %v4238_v17 = vsel %vm4234_vm11, %v4225_v31, %v4803_v5 }
 0x254   :  { %v4811_v35 = vpop.permute.xlu1 %4810  ;;  %v4614_v46 = vpack.c.bf16 %v4238_v17, %v4237_v62 }
 0x255   :  { %v4813_v27 = vunpack.i.h.bf16 %v4811_v35  ;;  %v4812_v62 = vunpack.i.l.bf16 %v4811_v35 }
 0x256   :  { %4615 = vmatpush1.bf16.msra.mxu0 %v4614_v46  ;;  %4641 = vmatpush1.bf16.msra.mxu1 %v4614_v46 }
 0x258   :  { %v7981_v40 = vpop.permute.xlu1 %4820 }
 0x25e   :  { %v4786_v12 = vpop.permute.xlu0 %4785 }
 0x25f   :  { %v4788_v30 = vunpack.i.h.bf16 %v4786_v12  ;;  %v4787_v43 = vunpack.i.l.bf16 %v4786_v12 }
 0x261   :  { %v4831_v32 = vpop.permute.xlu1 %4830  ;;  %v4252_v58 = vsel %vm4156_vm5, %v9089_v42, %v4788_v30  ;;  %v4251_v57 = vsel %vm4156_vm5, %v9092_v41, %v4787_v43 }
 0x262   :  { %v4833_v56 = vunpack.i.h.bf16 %v4831_v32  ;;  %v4832_v2 = vunpack.i.l.bf16 %v4831_v32 }
 0x263   :  { %v4796_v25 = vpop.permute.xlu0 %4795 }
 0x264   :  { %v4798_v14 = vunpack.i.h.bf16 %v4796_v25  ;;  %v4797_v24 = vunpack.i.l.bf16 %v4796_v25 }
 0x265   :  { %v4841_v18 = vpop.permute.xlu1 %4840 }
 0x266   :  { %v4187_v16 = vsel %vm4182_vm7, %v4174_v55, %v4797_v24  ;;  %v4188_v44 = vsel %vm4182_vm7, %v4175_v15, %v4798_v14  ;;  %v4843_v17 = vunpack.i.h.bf16 %v4841_v18  ;;  %v4842_v60 = vunpack.i.l.bf16 %v4841_v18 }
 0x267   :  { %v4200_v37 = vsel %vm4195_vm8, %v4187_v16, %v4812_v62  ;;  %v4201_v61 = vsel %vm4195_vm8, %v4188_v44, %v4813_v27  ;;  %v4823_v15 = vunpack.i.h.bf16 %v7981_v40  ;;  %v4822_v55 = vunpack.i.l.bf16 %v7981_v40  ;;  %v9096_v16 = vld [vmem:[#allocation65_spill] sm:$0xff] }
 0x268   :  { %v9097_v44 = vld [vmem:[#allocation61_spill] sm:$0xff] }
 0x269   :  { %v4806_v21 = vpop.permute.xlu0 %4805 }
 0x26a   :  { %v4808_v8 = vunpack.i.h.bf16 %v4806_v21  ;;  %v4807_v0 = vunpack.i.l.bf16 %v4806_v21  ;;  %v4851_v54 = vpop.permute.xlu1 %4850 }
 0x26b   :  { %v4853_v5 = vunpack.i.h.bf16 %v4851_v54  ;;  %v4852_v59 = vunpack.i.l.bf16 %v4851_v54 }
 0x26c   :  { %v4263_v38 = vsel %vm4169_vm6, %v4251_v57, %v4807_v0  ;;  %v4264_v3 = vsel %vm4169_vm6, %v4252_v58, %v4808_v8 }
 0x26d   :  { %v4816_v26 = vpop.permute.xlu0 %4815 }
 0x26e   :  { %v4818_v48 = vunpack.i.h.bf16 %v4816_v26  ;;  %v4817_v49 = vunpack.i.l.bf16 %v4816_v26 }
 0x270   :  { %v4861_v10 = vpop.permute.xlu1 %4860  ;;  %v4275_v23 = vsel %vm4182_vm7, %v4263_v38, %v4817_v49  ;;  %v4276_v31 = vsel %vm4182_vm7, %v4264_v3, %v4818_v48  ;;  %v9098_v38 = vcombine.low %v9096_v16, %v9097_v44 }
 0x271   :  { %v4287_v19 = vsel %vm4195_vm8, %v4275_v23, %v4832_v2  ;;  %v4288_v12 = vsel %vm4195_vm8, %v4276_v31, %v4833_v56  ;;  %v4863_v34 = vunpack.i.h.bf16 %v4861_v10  ;;  %v4862_v22 = vunpack.i.l.bf16 %v4861_v10  ;;  %v9093_v56 = vld [vmem:[#allocation32_spill] sm:$0xff] }
 0x272   :  { %v4299_v25 = vsel %vm4208_vm9, %v4287_v19, %v4852_v59  ;;  %v4300_v33 = vsel %vm4208_vm9, %v4288_v12, %v4853_v5  ;;  %v9094_v2 = vld [vmem:[#allocation28_spill] sm:$0xff]  ;;  %v4163_v40 = vsel %vm4156_vm5, %v9098_v38, %v4822_v55  ;;  %v9099_v59 = vld [vmem:[#allocation29_spill] sm:$0xff] }
 0x273   :  { %v4826_v46 = vpop.permute.xlu0 %4825  ;;  %v4616_v35 = vpack.c.bf16 %v4300_v33, %v4299_v25  ;;  %v9095_v48 = vcombine.low %v9093_v56, %v9094_v2  ;;  %v9100_v23 = vld [vmem:[#allocation20_spill] sm:$0xff] }
 0x274   :  { %v4828_v32 = vunpack.i.h.bf16 %v4826_v46  ;;  %v4827_v20 = vunpack.i.l.bf16 %v4826_v46  ;;  %v8015_v50 = vpop.permute.xlu1 %4870  ;;  %v9101_v31 = vcombine.low %v9099_v59, %v9100_v23  ;;  %v9103_v46 = vld [vmem:[#allocation63_spill] sm:$0xff] }
 0x275   :  { %4617 = vmatprep.subr.bf16.mxu0 %v4616_v35  ;;  %4636 = vmatprep.subr.bf16.mxu1 %v4616_v35  ;;  %v4164_v49 = vsel %vm4156_vm5, %v9095_v48, %v4823_v15  ;;  %v4873_v3 = vunpack.i.h.bf16 %v8015_v50 }
 0x276   :  { %v4213_v30 = vsel %vm4208_vm9, %v4200_v37, %v4827_v20  ;;  %v4214_v43 = vsel %vm4208_vm9, %v4201_v61, %v4828_v32 }
 0x277   :  { %v4836_v21 = vpop.permute.xlu0 %4835  ;;  %v4226_v1 = vsel %vm4221_vm10, %v4213_v30, %v4842_v60  ;;  %v4227_v18 = vsel %vm4221_vm10, %v4214_v43, %v4843_v17  ;;  %v9102_v17 = vld [vmem:[#allocation67_spill] sm:$0xff] }
 0x278   :  { %v4239_v39 = vsel %vm4234_vm11, %v4226_v1, %v4862_v22  ;;  %v4240_v53 = vsel %vm4234_vm11, %v4227_v18, %v4863_v34  ;;  %v4838_v27 = vunpack.i.h.bf16 %v4836_v21  ;;  %v4837_v47 = vunpack.i.l.bf16 %v4836_v21 }
 0x279   :  { %v8023_v6 = vpop.permute.xlu1 %4880  ;;  %v4618_v14 = vpack.c.bf16 %v4240_v53, %v4239_v39  ;;  %v9104_v19 = vcombine.low %v9102_v17, %v9103_v46  ;;  %v4872_v18 = vunpack.i.l.bf16 %v8015_v50  ;;  %v9105_v17 = vld [vmem:[#allocation21_spill] sm:$0xff] }
 0x27a   :  { %v4177_v10 = vsel %vm4169_vm6, %v4164_v49, %v4838_v27  ;;  %v4176_v5 = vsel %vm4169_vm6, %v4163_v40, %v4837_v47  ;;  %v4882_v40 = vunpack.i.l.bf16 %v8023_v6  ;;  %v9106_v46 = vld [vmem:[#allocation101_spill] sm:$0xff] }
 0x27b   :  { %v4846_v24 = vpop.permute.xlu0 %4845  ;;  %4619 = vmatpush1.bf16.msra.mxu0 %v4618_v14  ;;  %4642 = vmatpush1.bf16.msra.mxu1 %v4618_v14 }
 0x27c   :  { %v4848_v4 = vunpack.i.h.bf16 %v4846_v24  ;;  %v4847_v42 = vunpack.i.l.bf16 %v4846_v24 }
 0x27d   :  { %v4891_v8 = vpop.permute.xlu1 %4890 }
 0x27e   :  { %v4254_v62 = vsel %vm4156_vm5, %v9101_v31, %v4848_v4  ;;  %v4253_v12 = vsel %vm4156_vm5, %v9104_v19, %v4847_v42  ;;  %v4893_v20 = vunpack.i.h.bf16 %v4891_v8  ;;  %v4892_v25 = vunpack.i.l.bf16 %v4891_v8 }
 0x27f   :  { %v4856_v0 = vpop.permute.xlu0 %4855  ;;  %v9107_v19 = vcombine.low %v9105_v17, %v9106_v46 }
 0x280   :  { %v4858_v11 = vunpack.i.h.bf16 %v4856_v0  ;;  %v4857_v36 = vunpack.i.l.bf16 %v4856_v0 }
 0x281   :  { %v4901_v54 = vpop.permute.xlu1 %4900 }
 0x282   :  { %v4189_v37 = vsel %vm4182_vm7, %v4176_v5, %v4857_v36  ;;  %v4190_v61 = vsel %vm4182_vm7, %v4177_v10, %v4858_v11  ;;  %v4903_v39 = vunpack.i.h.bf16 %v4901_v54  ;;  %v4902_v27 = vunpack.i.l.bf16 %v4901_v54 }
 0x283   :  { %v4866_v58 = vpop.permute.xlu0 %4865  ;;  %v4202_v47 = vsel %vm4195_vm8, %v4189_v37, %v4872_v18  ;;  %v4203_v4 = vsel %vm4195_vm8, %v4190_v61, %v4873_v3  ;;  %v4883_v3 = vunpack.i.h.bf16 %v8023_v6  ;;  %v9112_v18 = vcombine.low %v9019_v52, %v9018_v51 }
 0x284   :  { %v4868_v41 = vunpack.i.h.bf16 %v4866_v58  ;;  %v4867_v57 = vunpack.i.l.bf16 %v4866_v58 }
 0x285   :  { %v4911_v26 = vpop.permute.xlu1 %4910 }
 0x286   :  { %v4265_v35 = vsel %vm4169_vm6, %v4253_v12, %v4867_v57  ;;  %v4266_v34 = vsel %vm4169_vm6, %v4254_v62, %v4868_v41  ;;  %v4913_v30 = vunpack.i.h.bf16 %v4911_v26  ;;  %v4912_v43 = vunpack.i.l.bf16 %v4911_v26 }
 0x287   :  { %v4876_v32 = vpop.permute.xlu0 %4875  ;;  %v4165_v12 = vsel %vm4156_vm5, %v9107_v19, %v4882_v40 }
 0x288   :  { %v4878_v33 = vunpack.i.h.bf16 %v4876_v32  ;;  %v4877_v60 = vunpack.i.l.bf16 %v4876_v32  ;;  %v9108_v32 = vld [vmem:[#allocation75_spill] sm:$0xff] }
 0x289   :  { %v4921_v22 = vpop.permute.xlu1 %4920 }
 0x28a   :  { %v4277_v21 = vsel %vm4182_vm7, %v4265_v35, %v4877_v60  ;;  %v4278_v1 = vsel %vm4182_vm7, %v4266_v34, %v4878_v33  ;;  %v4923_v58 = vunpack.i.h.bf16 %v4921_v22  ;;  %v4922_v11 = vunpack.i.l.bf16 %v4921_v22 }
 0x28b   :  { %v4886_v53 = vpop.permute.xlu0 %4885  ;;  %v4289_v14 = vsel %vm4195_vm8, %v4277_v21, %v4892_v25  ;;  %v4290_v24 = vsel %vm4195_vm8, %v4278_v1, %v4893_v20  ;;  %v9109_v20 = vld [vmem:[#allocation64_spill] sm:$0xff]  ;;  %v9111_v21 = vcombine.low %v7294_v13, %v7297_v63 }
 0x28c   :  { %v4888_v8 = vunpack.i.h.bf16 %v4886_v53  ;;  %v4887_v0 = vunpack.i.l.bf16 %v4886_v53  ;;  %v4301_v15 = vsel %vm4208_vm9, %v4289_v14, %v4912_v43  ;;  %v4302_v55 = vsel %vm4208_vm9, %v4290_v24, %v4913_v30 }
 0x28d   :  { %v8059_v42 = vpop.permute.xlu1 %4930  ;;  %v4620_v50 = vpack.c.bf16 %v4302_v55, %v4301_v15  ;;  %v9110_v25 = vcombine.low %v9108_v32, %v9109_v20 }
 0x28e   :  { %v4215_v36 = vsel %vm4208_vm9, %v4202_v47, %v4887_v0  ;;  %v4216_v41 = vsel %vm4208_vm9, %v4203_v4, %v4888_v8  ;;  %v4933_v35 = vunpack.i.h.bf16 %v8059_v42  ;;  %v4932_v34 = vunpack.i.l.bf16 %v8059_v42 }
 0x28f   :  { %v4896_v57 = vpop.permute.xlu0 %4895  ;;  %4621 = vmatprep.subr.bf16.mxu0 %v4620_v50  ;;  %4637 = vmatprep.subr.bf16.mxu1 %v4620_v50  ;;  %v4228_v26 = vsel %vm4221_vm10, %v4215_v36, %v4902_v27  ;;  %v4229_v54 = vsel %vm4221_vm10, %v4216_v41, %v4903_v39  ;;  %v4166_v33 = vsel %vm4156_vm5, %v9110_v25, %v4883_v3 }
 0x290   :  { %v4241_v56 = vsel %vm4234_vm11, %v4228_v26, %v4922_v11  ;;  %v4242_v2 = vsel %vm4234_vm11, %v4229_v54, %v4923_v58  ;;  %v4898_v5 = vunpack.i.h.bf16 %v4896_v57  ;;  %v4897_v59 = vunpack.i.l.bf16 %v4896_v57 }
 0x291   :  { %v4622_v48 = vpack.c.bf16 %v4242_v2, %v4241_v56  ;;  %v8067_v49 = vpop.permute.xlu1 %4940 }
 0x292   :  { %v4179_v22 = vsel %vm4169_vm6, %v4166_v33, %v4898_v5  ;;  %v4178_v43 = vsel %vm4169_vm6, %v4165_v12, %v4897_v59  ;;  %v4943_v12 = vunpack.i.h.bf16 %v8067_v49  ;;  %v4942_v32 = vunpack.i.l.bf16 %v8067_v49 }
 0x293   :  { %v4906_v16 = vpop.permute.xlu0 %4905  ;;  %4623 = vmatpush1.bf16.msra.mxu0 %v4622_v48  ;;  %4643 = vmatpush1.bf16.msra.mxu1 %v4622_v48 }
 0x294   :  { %v4908_v23 = vunpack.i.h.bf16 %v4906_v16  ;;  %v4907_v31 = vunpack.i.l.bf16 %v4906_v16 }
 0x295   :  { %v4951_v44 = vpop.permute.xlu1 %4950 }
 0x296   :  { %v4256_v1 = vsel %vm4156_vm5, %v9111_v21, %v4908_v23  ;;  %v4255_v39 = vsel %vm4156_vm5, %v9112_v18, %v4907_v31  ;;  %v4953_v53 = vunpack.i.h.bf16 %v4951_v44  ;;  %v4952_v27 = vunpack.i.l.bf16 %v4951_v44 }
 0x297   :  { %v4916_v38 = vpop.permute.xlu0 %4915 }
 0x298   :  { %v4917_v60 = vunpack.i.l.bf16 %v4916_v38  ;;  %v4918_v30 = vunpack.i.h.bf16 %v4916_v38 }
 0x299   :  { %v4961_v10 = vpop.permute.xlu1 %4960 }
 0x29a   :  { %v4191_v55 = vsel %vm4182_vm7, %v4178_v43, %v4917_v60  ;;  %v4192_v4 = vsel %vm4182_vm7, %v4179_v22, %v4918_v30  ;;  %v4963_v42 = vunpack.i.h.bf16 %v4961_v10  ;;  %v4962_v2 = vunpack.i.l.bf16 %v4961_v10 }
 0x29b   :  { %v4926_v62 = vpop.permute.xlu0 %4925  ;;  %v4204_v48 = vsel %vm4195_vm8, %v4191_v55, %v4932_v34  ;;  %v4205_v16 = vsel %vm4195_vm8, %v4192_v4, %v4933_v35 }
 0x29c   :  { %v4928_v37 = vunpack.i.h.bf16 %v4926_v62  ;;  %v4927_v61 = vunpack.i.l.bf16 %v4926_v62 }
 0x29d   :  { %v4971_v6 = vpop.permute.xlu1 %4970 }
 0x29e   :  { %v4973_v0 = vunpack.i.h.bf16 %v4971_v6  ;;  %v4972_v15 = vunpack.i.l.bf16 %v4971_v6  ;;  %v4267_v47 = vsel %vm4169_vm6, %v4255_v39, %v4927_v61  ;;  %v4268_v13 = vsel %vm4169_vm6, %v4256_v1, %v4928_v37  ;;  %v9113_v6 = vld [vmem:[#allocation106_spill] sm:$0xff] }
 0x29f   :  { %v4936_v14 = vpop.permute.xlu0 %4935  ;;  %v4168_v61 = vsel %vm4156_vm5, %v7637_v29, %v4943_v12  ;;  %v9114_v35 = vcombine.low %v7445_v7, %v9113_v6  ;;  %v4316_v12 = vld [vmem:[%s8252_s1 + $0x48] sm:$0xff] }
 0x2a0   :  { %v4938_v24 = vunpack.i.h.bf16 %v4936_v14  ;;  %v4937_v8 = vunpack.i.l.bf16 %v4936_v14  ;;  %v4320_v6 = vld [vmem:[%s8252_s1 + $0x68] sm:$0xff] }
 0x2a1   :  { %v4981_v63 = vpop.permute.xlu1 %4980  ;;  %v4167_v34 = vsel %vm4156_vm5, %v9114_v35, %v4942_v32  ;;  %v4309_v32 = vld [vmem:[%s8252_s1 + $0x10] sm:$0xff] }
 0x2a2   :  { %v4279_v52 = vsel %vm4182_vm7, %v4267_v47, %v4937_v8  ;;  %v4280_v51 = vsel %vm4182_vm7, %v4268_v13, %v4938_v24  ;;  %v4983_v58 = vunpack.i.h.bf16 %v4981_v63  ;;  %v4982_v11 = vunpack.i.l.bf16 %v4981_v63  ;;  %v4313_v35 = vld [vmem:[%s8252_s1 + $0x30] sm:$0xff] }
 0x2a3   :  { %v4946_v50 = vpop.permute.xlu0 %4945  ;;  %v4291_v36 = vsel %vm4195_vm8, %v4279_v52, %v4952_v27  ;;  %v4292_v41 = vsel %vm4195_vm8, %v4280_v51, %v4953_v53 }
 0x2a4   :  { %v4948_v57 = vunpack.i.h.bf16 %v4946_v50  ;;  %v4947_v26 = vunpack.i.l.bf16 %v4946_v50  ;;  %v4303_v54 = vsel %vm4208_vm9, %v4291_v36, %v4972_v15  ;;  %v4304_v56 = vsel %vm4208_vm9, %v4292_v41, %v4973_v0  ;;  %v9115_v36 = vld [vmem:[#allocation68_spill] sm:$0xff] }
 0x2a5   :  { %v4624_v44 = vpack.c.bf16 %v4304_v56, %v4303_v54  ;;  %v4991_v23 = vpop.permute.xlu1 %4990 }
 0x2a6   :  { %v4217_v38 = vsel %vm4208_vm9, %v4204_v48, %v4947_v26  ;;  %v4218_v40 = vsel %vm4208_vm9, %v4205_v16, %v4948_v57  ;;  %v4993_v1 = vunpack.i.h.bf16 %v4991_v23  ;;  %v4992_v18 = vunpack.i.l.bf16 %v4991_v23 }
 0x2a7   :  { %v4956_v3 = vpop.permute.xlu0 %4955  ;;  %4625 = vmatprep.subr.bf16.mxu0 %v4624_v44  ;;  %4638 = vmatprep.subr.bf16.mxu1 %v4624_v44  ;;  %v4230_v5 = vsel %vm4221_vm10, %v4217_v38, %v4962_v2  ;;  %v4231_v59 = vsel %vm4221_vm10, %v4218_v40, %v4963_v42  ;;  %v9116_v57 = vcombine.low %v9065_v45, %v9064_v28 }
 0x2a8   :  { %v4243_v31 = vsel %vm4234_vm11, %v4230_v5, %v4982_v11  ;;  %v4244_v10 = vsel %vm4234_vm11, %v4231_v59, %v4983_v58  ;;  %v4958_v20 = vunpack.i.h.bf16 %v4956_v3  ;;  %v4957_v25 = vunpack.i.l.bf16 %v4956_v3 }
 0x2a9   :  { %v4626_v62 = vpack.c.bf16 %v4244_v10, %v4243_v31  ;;  %v5001_v46 = vpop.permute.xlu1 %5000 }
 0x2aa   :  { %v4181_v30 = vsel %vm4169_vm6, %v4168_v61, %v4958_v20  ;;  %v4180_v43 = vsel %vm4169_vm6, %v4167_v34, %v4957_v25  ;;  %v5003_v24 = vunpack.i.h.bf16 %v5001_v46  ;;  %v5002_v8 = vunpack.i.l.bf16 %v5001_v46  ;;  %v4315_v46 = vld [vmem:[%s8252_s1 + $0x40] sm:$0xff]  ;;  %v4317_v20 = vld [vmem:[%s8252_s1 + $0x50] sm:$0xff]  ;;  %v4310_v25 = vld [vmem:[%s8252_s1 + $0x18] sm:$0xff] }
 0x2ab   :  { %v4966_v17 = vpop.permute.xlu0 %4965  ;;  %4627 = vmatpush1.bf16.msra.mxu0 %v4626_v62  ;;  %4644 = vmatpush1.bf16.msra.mxu1 %v4626_v62  ;;  %v4312_v61 = vld [vmem:[%s8252_s1 + $0x28] sm:$0xff]  ;;  %v4321_v34 = vld [vmem:[%s8252_s1 + $0x70] sm:$0xff] }
 0x2ac   :  { %v4968_v14 = vunpack.i.h.bf16 %v4966_v17  ;;  %v4967_v7 = vunpack.i.l.bf16 %v4966_v17  ;;  %v4307_v17 = vld [vmem:[%s8252_s1] sm:$0xff] }
 0x2ae   :  { %v5011_v22 = vpop.permute.xlu1 %5010  ;;  %v4258_v41 = vsel %vm4156_vm5, %v9115_v36, %v4968_v14  ;;  %v4257_v26 = vsel %vm4156_vm5, %v9116_v57, %v4967_v7 }
 0x2af   :  { %v5013_v15 = vunpack.i.h.bf16 %v5011_v22  ;;  %v5012_v55 = vunpack.i.l.bf16 %v5011_v22  ;;  %v4314_v22 = vld [vmem:[%s8252_s1 + $0x38] sm:$0xff] }
 0x2b1   :  { %v4976_v19 = vpop.permute.xlu0 %4975 }
 0x2b2   :  { %v4978_v33 = vunpack.i.h.bf16 %v4976_v19  ;;  %v4977_v60 = vunpack.i.l.bf16 %v4976_v19  ;;  %v4308_v19 = vld [vmem:[%s8252_s1 + $0x8] sm:$0xff] }
 0x2b3   :  { %v5021_v0 = vpop.permute.xlu1 %5020 }
 0x2b4   :  { %v4193_v49 = vsel %vm4182_vm7, %v4180_v43, %v4977_v60  ;;  %v4194_v21 = vsel %vm4182_vm7, %v4181_v30, %v4978_v33  ;;  %v5023_v51 = vunpack.i.h.bf16 %v5021_v0  ;;  %v5022_v50 = vunpack.i.l.bf16 %v5021_v0  ;;  %v4318_v33 = vld [vmem:[%s8252_s1 + $0x58] sm:$0xff]  ;;  %v4311_v60 = vld [vmem:[%s8252_s1 + $0x20] sm:$0xff] }
 0x2b5   :  { %v4986_v37 = vpop.permute.xlu0 %4985  ;;  %v4206_v53 = vsel %vm4195_vm8, %v4193_v49, %v4992_v18  ;;  %v4207_v29 = vsel %vm4195_vm8, %v4194_v21, %v4993_v1  ;;  %v4322_v30 = vld [vmem:[%s8252_s1 + $0x78] sm:$0xff] }
 0x2b6   :  { %v4988_v27 = vunpack.i.h.bf16 %v4986_v37  ;;  %v4987_v47 = vunpack.i.l.bf16 %v4986_v37  ;;  %v4219_v63 = vsel %vm4208_vm9, %v4206_v53, %v5002_v8  ;;  %v4220_v4 = vsel %vm4208_vm9, %v4207_v29, %v5003_v24  ;;  %v4319_v37 = vld [vmem:[%s8252_s1 + $0x60] sm:$0xff]  ;;  %s5064_s1 = smov [#allocation2]  }
 0x2b7   :  { %v4232_v54 = vsel %vm4221_vm10, %v4219_v63, %v5012_v55  ;;  %v4233_v56 = vsel %vm4221_vm10, %v4220_v4, %v5013_v15  ;;  %s4578_s20 = sshll.u32 %s5064_s1, 4  ;;  %s4579_s20 = int_to_ptr.vmem [resolvable:$true] %s4578_s20 }
 0x2b8   :  { %v4269_v2 = vsel %vm4169_vm6, %v4257_v26, %v4987_v47  ;;  %v4270_v48 = vsel %vm4169_vm6, %v4258_v41, %v4988_v27  ;;  %v4245_v45 = vsel %vm4234_vm11, %v4232_v54, %v5022_v50  ;;  %v4246_v28 = vsel %vm4234_vm11, %v4233_v56, %v5023_v51  ;;  %s5024_s21 = scalar_lea.vmem %s4579_s20, 4096  ;;  %p5029_p1 = scmp.lt.s32.totalorder %s4579_s20, %s4579_s20 }
 0x2b9   :  { %v4996_v39 = vpop.permute.xlu0 %4995  ;;  %v4631_v62 = vpack.c.bf16 %v4246_v28, %v4245_v45  ;;  %p5025_p0 = scmp.ne.s32.totalorder %s4579_s20, %s5024_s21  ;;  %p5030_p2 = scmp.lt.s32.totalorder %s5024_s21, %s5024_s21 }
 0x2ba   :  { %v4998_v42 = vunpack.i.h.bf16 %v4996_v39  ;;  %v4997_v52 = vunpack.i.l.bf16 %v4996_v39 }
 0x2bb   :  { %p5031_p3 = por %p5030_p2, %p5029_p1 }
 0x2bc   :  { %v4281_v44 = vsel %vm4182_vm7, %v4269_v2, %v4997_v52  ;;  %v4282_v38 = vsel %vm4182_vm7, %v4270_v48, %v4998_v42 }
 0x2bd   :  { %v5006_v13 = vpop.permute.xlu0 %5005  ;;  %p5032_p4 = pnand %p5031_p3, %p5025_p0 }
 0x2be   :  { %v5008_v58 = vunpack.i.h.bf16 %v5006_v13  ;;  %v5007_v11 = vunpack.i.l.bf16 %v5006_v13 }
 0x2c0   :  { %v4293_v5 = vsel %vm4195_vm8, %v4281_v44, %v5007_v11  ;;  %v4294_v59 = vsel %vm4195_vm8, %v4282_v38, %v5008_v58 }
 0x2c1   :  { %v5016_v16 = vpop.permute.xlu0 %5015 }
 0x2c2   :  { %v5018_v40 = vunpack.i.h.bf16 %v5016_v16  ;;  %v5017_v3 = vunpack.i.l.bf16 %v5016_v16 }
 0x2c4   :  { %v4305_v23 = vsel %vm4208_vm9, %v4293_v5, %v5017_v3  ;;  %v4306_v31 = vsel %vm4208_vm9, %v4294_v59, %v5018_v40 }
 0x2c5   :  { %v4628_v10 = vpack.c.bf16 %v4306_v31, %v4305_v23 }
 0x2c7   :  { %4630 = vmatprep.subr.msk.bf16.mxu0 %vm4629_vm14, %v4628_v10  ;;  %4639 = vmatprep.subr.msk.bf16.mxu1 %vm4629_vm14, %v4628_v10 }
 0x2c8   :  { %4633 = vmatpush1.bf16.msk.msra.mxu0 %vm4629_vm14, %v4631_v62  ;;  %4645 = vmatpush1.bf16.msk.msra.mxu1 %vm4629_vm14, %v4631_v62 }
 0x2cb   :  { %4592 = vmatmul.mubr.msk.f32.vlgmr.msra.gmra.mrb[0].mxu0 %vm4323_vm15, %v4307_v17  ;;  %4600 = vmatmul.mubr.msk.f32.vlgmr.msra.gmra.mrb[0].mxu1 %vm4323_vm15, %v4315_v46 }
 0x2cc   :  { %4449 = vmatprep.mubr.f32.mxu0 %v9030_v9  ;;  %4497 = vmatprep.mubr.f32.mxu1 %v9030_v9 }
 0x2cf   :  { %4593 = vmatmul.mubr.msk.f32.gmra.mrb[2].mxu0 %vm4323_vm15, %v4308_v19  ;;  %4601 = vmatmul.mubr.msk.f32.gmra.mrb[2].mxu1 %vm4323_vm15, %v4316_v12 }
 0x2d0   :  { %4455 = vmatprep.mubr.f32.mxu0 %v9030_v9  ;;  %4503 = vmatprep.mubr.f32.mxu1 %v9030_v9 }
 0x2d3   :  { %4594 = vmatmul.mubr.msk.f32.gmra.mrb[4].mxu0 %vm4323_vm15, %v4309_v32  ;;  %4602 = vmatmul.mubr.msk.f32.gmra.mrb[4].mxu1 %vm4323_vm15, %v4317_v20 }
 0x2d4   :  { %4461 = vmatprep.mubr.f32.mxu0 %v9030_v9  ;;  %4509 = vmatprep.mubr.f32.mxu1 %v9030_v9 }
 0x2d7   :  { %4595 = vmatmul.mubr.msk.f32.gmra.mrb[6].mxu0 %vm4323_vm15, %v4310_v25  ;;  %4603 = vmatmul.mubr.msk.f32.gmra.mrb[6].mxu1 %vm4323_vm15, %v4318_v33 }
 0x2d8   :  { %4467 = vmatprep.mubr.f32.mxu0 %v9030_v9  ;;  %4515 = vmatprep.mubr.f32.mxu1 %v9030_v9 }
 0x2db   :  { %4596 = vmatmul.mubr.msk.f32.gmra.mrb[8].mxu0 %vm4323_vm15, %v4311_v60  ;;  %4604 = vmatmul.mubr.msk.f32.gmra.mrb[8].mxu1 %vm4323_vm15, %v4319_v37 }
 0x2dc   :  { %4473 = vmatprep.mubr.f32.mxu0 %v9030_v9  ;;  %4521 = vmatprep.mubr.f32.mxu1 %v9030_v9 }
 0x2df   :  { %4597 = vmatmul.mubr.msk.f32.gmra.mrb[10].mxu0 %vm4323_vm15, %v4312_v61  ;;  %4605 = vmatmul.mubr.msk.f32.gmra.mrb[10].mxu1 %vm4323_vm15, %v4320_v6 }
 0x2e0   :  { %4479 = vmatprep.mubr.f32.mxu0 %v9030_v9  ;;  %4527 = vmatprep.mubr.f32.mxu1 %v9030_v9 }
 0x2e3   :  { %4598 = vmatmul.mubr.msk.f32.gmra.mrb[12].mxu0 %vm4323_vm15, %v4313_v35  ;;  %4606 = vmatmul.mubr.msk.f32.gmra.mrb[12].mxu1 %vm4323_vm15, %v4321_v34 }
 0x2e4   :  { %4485 = vmatprep.mubr.f32.mxu0 %v9030_v9  ;;  %4533 = vmatprep.mubr.f32.mxu1 %v9030_v9 }
 0x2e7   :  { %4599 = vmatmul.mubr.msk.f32.gmra.mrb[14].mxu0 %vm4323_vm15, %v4314_v22  ;;  %4607 = vmatmul.mubr.msk.f32.gmra.mrb[14].mxu1 %vm4323_vm15, %v4322_v30 }
 0x39e   :  { %v4445_v43 = vpop.f32.mrb[0].mxu0  ;;  %v4493_v49 = vpop.f32.mrb[0].mxu1 }
 0x39f   :  { %4540 = vst [vmem:[#allocation2] sm:$0xff] %v4445_v43  ;;  %4557 = vst [vmem:[#allocation2 + $0x80] sm:$0xff] %v4493_v49  ;;  %v4447_v21 = vpop.f32.mrb[1].mxu0  ;;  %v4495_v1 = vpop.f32.mrb[1].mxu1 }
 0x3a0   :  { %4541 = vst.msk [vmem:[#allocation2 + $0x8] sm:$0xff] %vm4221_vm10, %v4447_v21  ;;  %4558 = vst.msk [vmem:[#allocation2 + $0x88] sm:$0xff] %vm4221_vm10, %v4495_v1 }
 0x3a2   :  { %v4451_v9 = vpop.f32.mrb[2].mxu0  ;;  %v4499_v18 = vpop.f32.mrb[2].mxu1 }
 0x3a3   :  { %4542 = vst [vmem:[#allocation2 + $0x10] sm:$0xff] %v4451_v9  ;;  %4559 = vst [vmem:[#allocation2 + $0x90] sm:$0xff] %v4499_v18  ;;  %v4453_v39 = vpop.f32.mrb[3].mxu0  ;;  %v4501_v53 = vpop.f32.mrb[3].mxu1 }
 0x3a4   :  { %4543 = vst.msk [vmem:[#allocation2 + $0x18] sm:$0xff] %vm4221_vm10, %v4453_v39  ;;  %4560 = vst.msk [vmem:[#allocation2 + $0x98] sm:$0xff] %vm4221_vm10, %v4501_v53 }
 0x3a6   :  { %v4457_v29 = vpop.f32.mrb[4].mxu0  ;;  %v4505_v14 = vpop.f32.mrb[4].mxu1 }
 0x3a7   :  { %4544 = vst [vmem:[#allocation2 + $0x20] sm:$0xff] %v4457_v29  ;;  %4561 = vst [vmem:[#allocation2 + $0xa0] sm:$0xff] %v4505_v14  ;;  %v4459_v7 = vpop.f32.mrb[5].mxu0  ;;  %v4507_v24 = vpop.f32.mrb[5].mxu1 }
 0x3a8   :  { %4545 = vst.msk [vmem:[#allocation2 + $0x28] sm:$0xff] %vm4221_vm10, %v4459_v7  ;;  %4562 = vst.msk [vmem:[#allocation2 + $0xa8] sm:$0xff] %vm4221_vm10, %v4507_v24 }
 0x3aa   :  { %v4463_v8 = vpop.f32.mrb[6].mxu0  ;;  %v4511_v0 = vpop.f32.mrb[6].mxu1 }
 0x3ab   :  { %4546 = vst [vmem:[#allocation2 + $0x30] sm:$0xff] %v4463_v8  ;;  %4563 = vst [vmem:[#allocation2 + $0xb0] sm:$0xff] %v4511_v0  ;;  %v4465_v15 = vpop.f32.mrb[7].mxu0  ;;  %v4513_v55 = vpop.f32.mrb[7].mxu1 }
 0x3ac   :  { %4547 = vst.msk [vmem:[#allocation2 + $0x38] sm:$0xff] %vm4221_vm10, %v4465_v15  ;;  %4564 = vst.msk [vmem:[#allocation2 + $0xb8] sm:$0xff] %vm4221_vm10, %v4513_v55 }
 0x3ae   :  { %v4469_v27 = vpop.f32.mrb[8].mxu0  ;;  %v4517_v47 = vpop.f32.mrb[8].mxu1 }
 0x3af   :  { %4548 = vst [vmem:[#allocation2 + $0x40] sm:$0xff] %v4469_v27  ;;  %4565 = vst [vmem:[#allocation2 + $0xc0] sm:$0xff] %v4517_v47  ;;  %v4471_v13 = vpop.f32.mrb[9].mxu0  ;;  %v4519_v63 = vpop.f32.mrb[9].mxu1 }
 0x3b0   :  { %4549 = vst.msk [vmem:[#allocation2 + $0x48] sm:$0xff] %vm4221_vm10, %v4471_v13  ;;  %4566 = vst.msk [vmem:[#allocation2 + $0xc8] sm:$0xff] %vm4221_vm10, %v4519_v63 }
 0x3b2   :  { %v4475_v4 = vpop.f32.mrb[10].mxu0  ;;  %v4523_v42 = vpop.f32.mrb[10].mxu1 }
 0x3b3   :  { %4550 = vst [vmem:[#allocation2 + $0x50] sm:$0xff] %v4475_v4  ;;  %4567 = vst [vmem:[#allocation2 + $0xd0] sm:$0xff] %v4523_v42  ;;  %v4477_v52 = vpop.f32.mrb[11].mxu0  ;;  %v4525_v51 = vpop.f32.mrb[11].mxu1 }
 0x3b4   :  { %4551 = vst.msk [vmem:[#allocation2 + $0x58] sm:$0xff] %vm4221_vm10, %v4477_v52  ;;  %4568 = vst.msk [vmem:[#allocation2 + $0xd8] sm:$0xff] %vm4221_vm10, %v4525_v51 }
 0x3b6   :  { %v4481_v50 = vpop.f32.mrb[12].mxu0  ;;  %v4529_v58 = vpop.f32.mrb[12].mxu1 }
 0x3b7   :  { %4552 = vst [vmem:[#allocation2 + $0x60] sm:$0xff] %v4481_v50  ;;  %4569 = vst [vmem:[#allocation2 + $0xe0] sm:$0xff] %v4529_v58  ;;  %v4483_v11 = vpop.f32.mrb[13].mxu0  ;;  %v4531_v36 = vpop.f32.mrb[13].mxu1 }
 0x3b8   :  { %4553 = vst.msk [vmem:[#allocation2 + $0x68] sm:$0xff] %vm4221_vm10, %v4483_v11  ;;  %4570 = vst.msk [vmem:[#allocation2 + $0xe8] sm:$0xff] %vm4221_vm10, %v4531_v36 }
 0x3ba   :  { %v4487_v41 = vpop.f32.mrb[14].mxu0  ;;  %v4535_v57 = vpop.f32.mrb[14].mxu1 }
 0x3bb   :  { %4554 = vst [vmem:[#allocation2 + $0x70] sm:$0xff] %v4487_v41  ;;  %4571 = vst [vmem:[#allocation2 + $0xf0] sm:$0xff] %v4535_v57  ;;  %v4489_v26 = vpop.f32.mrb[15].mxu0  ;;  %v4537_v54 = vpop.f32.mrb[15].mxu1 }
 0x3bc   :  { %4555 = vst.msk [vmem:[#allocation2 + $0x78] sm:$0xff] %vm4221_vm10, %v4489_v26  ;;  %4572 = vst.msk [vmem:[#allocation2 + $0xf8] sm:$0xff] %vm4221_vm10, %v4537_v54 }
 0x3bd   :  { %5035 = shalt.err (!%p5032_p4)
}
 0x3be   :  { %s5036_s24 = scalar_lea.hbm %s8253_s2, 4096 }
 0x3bf   :  { %p5037_p5 = scmp.ne.s32.totalorder %s8253_s2, %s5036_s24  ;;  %p5040_p6 = scmp.lt.u32.totalorder %s5036_s24, %s8253_s2 }
 0x3c1   :  { %p5042_p7 = pnand %p5040_p6, %p5037_p5 }
 0x3c3   :  { %5045 = shalt.err (!%p5042_p7)
}
 0x3c4   :  { %s5065_s29 = smov 256  }
 0x3c5   :  { %4584 = dma.vmem_to_hbm [thread:$0]  %s4579_s20, 4096, %s8253_s2, [#allocation3], %s5065_s29, %s5065_s29, %s5056_s9  }
 0x3c6   :  { %5046 = dma.done.wait [#allocation3], 4096  }
 0x3c7   :  { %5047 = vsyncadd [#allocation3], 4294963200 }
 0x3c8   :  { %4588 = vsyncpa [#allocation3], 1 }

</bundles_post_ra>
